<compile_context>
chip_gen: v6e
topology: v6e:2x2x1
jax: 0.10.0
libtpu: 0.0.40
codegen_flags: <defaults>
</compile_context>

<pallas_src>
import functools

import numpy as np
import jax
import jax.numpy as jnp
from jax import lax
from jax.experimental import pallas as pl
from jax.experimental.pallas import tpu as pltpu

EPS = 1e-5

# Row offsets inside the packed mask/one-hot slab (maskE).
_MW_OFF = 0    # 7 rows: W-direction validity masks (dx = -3..3), row 7 unused
_MH_OFF = 8    # 7 rows: H-direction validity masks (dy = -3..3), row 15 unused
_E_OFF = 16    # B rows: per-batch one-hot over the flattened lane index


# --------------------------------------------------------------------------
# Fused Pallas kernel
# --------------------------------------------------------------------------

def _fused_kernel(x_ref, cm_ref, cols_ref, dw_ref, fc_ref, me_ref, pool_ref,
                  o_ref, *, C, W, B, N):
    f32 = jnp.float32
    x = x_ref[...].astype(f32)            # (C, N)  channels on sublanes, b*H*W on lanes
    cm = cm_ref[...]                      # (4C, C) [msca_M^T ; w1^T ; pw1^T ; pw2^T]
    cols = cols_ref[...]                  # (C, 8)  per-channel bias / BN scale / shift
    dwall = dw_ref[...]                   # (2C, 49) depthwise taps, t = i7*7 + j7
    pool = pool_ref[...]                  # (N, B)  per-batch mean-pool matrix (1/HW)

    MT, w1T = cm[0:C], cm[C:2 * C]
    pw1T, pw2T = cm[2 * C:3 * C], cm[3 * C:4 * C]
    t1, tpw1, s2, t2 = cols[:, 0:1], cols[:, 1:2], cols[:, 2:3], cols[:, 3:4]
    tpw2, s3, t3 = cols[:, 4:5], cols[:, 5:6], cols[:, 6:7]

    # ---- MSCA: per-batch GAP -> banded channel conv (k=3+5+7) -> sigmoid gate
    ymean = jnp.dot(x, pool, preferred_element_type=f32)                   # (C, B)
    att = jax.nn.sigmoid(jnp.dot(MT, ymean, preferred_element_type=f32))   # (C, B)
    expand = me_ref[pl.ds(_E_OFF, B), :]                                   # (B, N) 0/1
    x = x * jnp.dot(att, expand, preferred_element_type=f32)               # (C, N)

    # ---- conv1 (1x1) + folded BN + ReLU -------------------------------------
    x = jnp.maximum(jnp.dot(w1T, x, preferred_element_type=f32) + t1, 0.0)

    def lane_shift(v, off):
        # out[:, n] = v[:, (n + off) mod N]; the edge masks zero every lane
        # where the circular wrap (or a row/batch crossing) would matter.
        if off == 0:
            return v
        return pltpu.roll(v, (-off) % N, axis=1)

    def msdc_block(xin, pwT, tpw, wd, s, t):
        # grouped 1x1 conv (merged block-diagonal) + folded BN + ReLU
        yv = jnp.maximum(jnp.dot(pwT, xin, preferred_element_type=f32) + tpw, 0.0)
        # depthwise 7x7 SAME, factored as
        #   z = sum_dy maskH_dy * shift_{dy*W}( sum_dx w[:,dy,dx] *
        #                                        (maskW_dx * shift_dx(yv)) )
        # -> 7 + 7 lane rolls per block instead of 49; no halo buffer.
        us = []
        for j7 in range(7):
            u = lane_shift(yv, j7 - 3) * me_ref[pl.ds(_MW_OFF + j7, 1), :]
            us.append(u)
        acc = None
        for i7 in range(7):
            inner = None
            for j7 in range(7):
                tap = i7 * 7 + j7
                term = us[j7] * wd[:, tap:tap + 1]        # per-channel tap weight
                inner = term if inner is None else inner + term
            row = lane_shift(inner, (i7 - 3) * W) * me_ref[pl.ds(_MH_OFF + i7, 1), :]
            acc = row if acc is None else acc + row
        # post-block BN + ReLU (br2 / br3)
        return jnp.maximum(acc * s + t, 0.0)

    x = msdc_block(x, pw1T, tpw1, dwall[0:C], s2, t2)
    x = msdc_block(x, pw2T, tpw2, dwall[C:2 * C], s3, t3)

    # ---- head: GAP -> Linear -> LogSoftmax  (computed as (classes, B)) ------
    g = jnp.dot(x, pool, preferred_element_type=f32)                       # (C, B)
    fcv = fc_ref[...]                                                      # (classes, C+1)
    logits = jnp.dot(fcv[:, 0:C], g, preferred_element_type=f32) + fcv[:, C:C + 1]
    m = jnp.max(logits, axis=0, keepdims=True)
    z = logits - m
    lse = jnp.log(jnp.sum(jnp.exp(z), axis=0, keepdims=True))
    o_ref[...] = (z - lse).astype(o_ref.dtype)


# --------------------------------------------------------------------------
# Static geometry (numpy constants): edge masks, per-batch one-hot, pool matrix
# --------------------------------------------------------------------------

def _geometry(B, H, W):
    HW = H * W
    N = B * HW
    n = np.arange(N)
    h = (n % HW) // W
    w = n % W
    b = n // HW
    maskW = np.zeros((8, N), np.float32)
    maskH = np.zeros((8, N), np.float32)
    for j7 in range(7):
        d = j7 - 3
        maskW[j7] = ((w + d >= 0) & (w + d < W)).astype(np.float32)
    for i7 in range(7):
        d = i7 - 3
        maskH[i7] = ((h + d >= 0) & (h + d < H)).astype(np.float32)
    onehot = (b[None, :] == np.arange(B)[:, None]).astype(np.float32)   # (B, N)
    maskE = np.concatenate([maskW, maskH, onehot], axis=0)              # (16+B, N)
    pool = (onehot.T / float(HW)).astype(np.float32)                    # (N, B)
    return jnp.asarray(maskE), jnp.asarray(pool)


# --------------------------------------------------------------------------
# Parameter folding + packing (plain JAX, traced once inside jit — tiny)
# --------------------------------------------------------------------------

def prepare_fused_params(params, sp, ks, C):
    s1, t1 = params['br1_scale'], params['br1_shift']
    w1 = params['conv1_w'] * s1[None, :]                  # fold BN scale into c_out
    b1 = params['conv1_b'] * s1 + t1                      # fold conv bias + BN shift

    def fold_msdc(gp):
        pw = jnp.zeros((C, C), jnp.float32)
        tpw = jnp.zeros((C,), jnp.float32)
        dw = jnp.zeros((7, 7, C), jnp.float32)
        start = 0
        for p, cg, k in zip(gp, sp, ks):
            pw = pw.at[start:start + cg, start:start + cg].set(
                p['pw_w'] * p['bn_scale'][None, :])
            tpw = tpw.at[start:start + cg].set(
                p['pw_b'] * p['bn_scale'] + p['bn_shift'])
            off = (7 - k) // 2
            dw = dw.at[off:off + k, off:off + k, start:start + cg].set(p['dw_w'])
            start += cg
        return pw, tpw, dw

    pw1, tpw1, dw1 = fold_msdc(params['msdc1'])
    pw2, tpw2, dw2 = fold_msdc(params['msdc2'])

    # Slab 1: the four (C,C) matrices, transposed for the (C, N) layout.
    cmats = jnp.concatenate([params['msca_M'].T, w1.T, pw1.T, pw2.T], axis=0)
    # Slab 2: per-channel columns.
    cols = jnp.stack([b1, tpw1,
                      params['br2_scale'], params['br2_shift'],
                      tpw2,
                      params['br3_scale'], params['br3_shift'],
                      jnp.zeros((C,), jnp.float32)], axis=1)            # (C, 8)
    # Slab 3: depthwise taps (tap index t = i7*7 + j7), both blocks stacked.
    dws = jnp.concatenate([dw1.reshape(49, C).T, dw2.reshape(49, C).T], axis=0)
    # Slab 4: classifier.
    classes = params['fc_w'].shape[1]
    fc = jnp.concatenate([params['fc_w'].T,
                          params['fc_b'].reshape(classes, 1)], axis=1)  # (classes, C+1)
    return cmats, cols, dws, fc


# --------------------------------------------------------------------------
# Forward: one pallas_call, single grid step (batch folded onto lanes)
# --------------------------------------------------------------------------

def msca_msdc_forward(X, params, sp, ks):
    # X: (B, 1, bands, H, W) — same input as the PyTorch module.
    B, _, C, H, W = X.shape
    N = B * H * W
    classes = params['fc_w'].shape[1]

    # channel-major layout: channels on sublanes, (batch * H * W) on lanes
    x_cn = jnp.transpose(X[:, 0], (1, 0, 2, 3)).reshape(C, N).astype(jnp.float32)

    cmats, cols, dws, fc = prepare_fused_params(params, sp, ks, C)
    maskE, pool = _geometry(B, H, W)

    kern = functools.partial(_fused_kernel, C=C, W=W, B=B, N=N)
    # No grid: the whole (tiny) batch is one step, everything lives in VMEM.
    # On v7x, a grid=(B,) "parallel" variant is the alternative to profile.
    outT = pl.pallas_call(
        kern,
        out_shape=jax.ShapeDtypeStruct((classes, B), jnp.float32),
    )(x_cn, cmats, cols, dws, fc, maskE, pool)
    return outT.T                                           # (B, classes)


# --------------------------------------------------------------------------
# Parameter setup (glue, plain JAX / numpy)
# --------------------------------------------------------------------------

def _split_channels(channels, num_groups):
    sp = [channels // num_groups for _ in range(num_groups)]
    sp[0] += channels - sum(sp)
    return sp


def _bn_fold(gamma, beta, mean, var, eps=EPS):
    scale = gamma / jnp.sqrt(var + eps)
    shift = beta - mean * scale
    return scale, shift


def build_msca_matrix(ws, C):
    # a[c_out] = sum_k sum_j w_k[j] * y[c_out + j - pad_k]  (zero-padded)
    # expressed as a = y @ M with M[c_in, c_out] = sum_k w_k[c_in - c_out + pad_k]
    Mn = np.zeros((C, C), np.float32)
    for w in ws:
        w = np.asarray(w)
        k = w.shape[0]
        pad = (k - 1) // 2
        for c_out in range(C):
            for j in range(k):
                c_in = c_out + j - pad
                if 0 <= c_in < C:
                    Mn[c_in, c_out] += w[j]
    return jnp.asarray(Mn)


def init_params(key, bands, classes, sp, ks):
    keys = iter(jax.random.split(key, 256))

    def nrm(shape, s=0.1):
        return s * jax.random.normal(next(keys), shape, jnp.float32)

    def bn(c):
        gamma = 1.0 + 0.1 * jax.random.normal(next(keys), (c,), jnp.float32)
        beta = 0.1 * jax.random.normal(next(keys), (c,), jnp.float32)
        mean = 0.1 * jax.random.normal(next(keys), (c,), jnp.float32)
        var = 0.9 + 0.2 * jax.random.uniform(next(keys), (c,), jnp.float32)
        return _bn_fold(gamma, beta, mean, var)

    p = {}
    p['msca_w'] = [nrm((3,), 0.3), nrm((5,), 0.3), nrm((7,), 0.3)]
    p['msca_M'] = build_msca_matrix(p['msca_w'], bands)
    p['conv1_w'] = nrm((bands, bands))
    p['conv1_b'] = nrm((bands,))
    p['br1_scale'], p['br1_shift'] = bn(bands)

    def msdc_params():
        gp = []
        for cg, k in zip(sp, ks):
            s, t = bn(cg)
            gp.append(dict(pw_w=nrm((cg, cg)), pw_b=nrm((cg,)),
                           bn_scale=s, bn_shift=t,
                           dw_w=nrm((k, k, cg), 0.2)))
        return gp

    p['msdc1'] = msdc_params()
    p['br2_scale'], p['br2_shift'] = bn(bands)
    p['msdc2'] = msdc_params()
    p['br3_scale'], p['br3_shift'] = bn(bands)
    p['fc_w'] = nrm((bands, classes))
    p['fc_b'] = nrm((classes,))
    return p


# --------------------------------------------------------------------------
# Pure-JAX reference (independent formulation, unfolded params) for validation
# --------------------------------------------------------------------------

def ref_forward(X, params, sp, ks):
    x = jnp.transpose(X[:, 0], (0, 2, 3, 1)).astype(jnp.float32)
    B, H, W, C = x.shape

    # MSCA
    y = jnp.mean(x, axis=(1, 2))                                   # (B, C)
    a = jnp.zeros_like(y)
    for w in params['msca_w']:
        k = w.shape[0]
        pad = (k - 1) // 2
        yp = jnp.pad(y, ((0, 0), (pad, pad)))
        a = a + sum(w[j] * yp[:, j:j + C] for j in range(k))
    x = x * jax.nn.sigmoid(a)[:, None, None, :]

    def pw(x_, Wm, b):
        return jnp.einsum('bhwc,cd->bhwd', x_, Wm) + b

    def bnrelu(x_, s, t):
        return jnp.maximum(x_ * s + t, 0.0)

    x = bnrelu(pw(x, params['conv1_w'], params['conv1_b']),
               params['br1_scale'], params['br1_shift'])

    def ref_msdc(x_, gp, brs, brt):
        outs = []
        start = 0
        for p, cg, k in zip(gp, sp, ks):
            xg = x_[..., start:start + cg]
            yg = bnrelu(pw(xg, p['pw_w'], p['pw_b']), p['bn_scale'], p['bn_shift'])
            w_hwio = p['dw_w'].reshape(k, k, 1, cg)
            z = lax.conv_general_dilated(
                yg, w_hwio, (1, 1), 'SAME',
                dimension_numbers=('NHWC', 'HWIO', 'NHWC'),
                feature_group_count=cg)
            z = jnp.maximum(z * brs[start:start + cg] + brt[start:start + cg], 0.0)
            outs.append(z)
            start += cg
        return jnp.concatenate(outs, axis=-1)

    x = ref_msdc(x, params['msdc1'], params['br2_scale'], params['br2_shift'])
    x = ref_msdc(x, params['msdc2'], params['br3_scale'], params['br3_shift'])
    g = jnp.mean(x, axis=(1, 2))
    logits = g @ params['fc_w'] + params['fc_b']
    return jax.nn.log_softmax(logits, axis=1)


# --------------------------------------------------------------------------

if __name__ == "__main__":
    bands, classes = 16, 9
    B, H, W = 2, 8, 8
    ks = [3, 5, 7]
    sp = _split_channels(bands, len(ks))       # -> [6, 5, 5]

    key = jax.random.PRNGKey(0)
    kx, kp = jax.random.split(key)
    X = jax.random.normal(kx, (B, 1, bands, H, W), jnp.float32)
    params = init_params(kp, bands, classes, sp, ks)

    fwd = jax.jit(functools.partial(msca_msdc_forward, sp=sp, ks=ks))
    out = jax.block_until_ready(fwd(X, params))

    ref = ref_forward(X, params, sp, ks)
    assert out.shape == (B, classes)
    np.testing.assert_allclose(np.asarray(out), np.asarray(ref), rtol=2e-4, atol=2e-4)
    print("KERNEL_OK")
</pallas_src>

<mosaic_0001>
module attributes {stable_mosaic.version = 11 : i64} {
  func.func @_fused_kernel(%arg0: memref<16x128xf32, #tpu.memory_space<vmem>>, %arg1: memref<64x16xf32, #tpu.memory_space<vmem>>, %arg2: memref<16x8xf32, #tpu.memory_space<vmem>>, %arg3: memref<32x49xf32, #tpu.memory_space<vmem>>, %arg4: memref<9x17xf32, #tpu.memory_space<vmem>>, %arg5: memref<18x128xf32, #tpu.memory_space<vmem>>, %arg6: memref<128x2xf32, #tpu.memory_space<vmem>>, %arg7: memref<9x2xf32, #tpu.memory_space<vmem>>) attributes {dimension_semantics = [], scalar_prefetch = 0 : i64, scratch_operands = 0 : i64, tpu.core_type = #tpu.core_type<tc>} {
    %c0 = arith.constant 0 : index
    %c0_0 = arith.constant 0 : index
    %0 = vector.load %arg0[%c0, %c0_0] : memref<16x128xf32, #tpu.memory_space<vmem>>, vector<16x128xf32>
    %c0_1 = arith.constant 0 : index
    %c0_2 = arith.constant 0 : index
    %1 = vector.load %arg1[%c0_1, %c0_2] : memref<64x16xf32, #tpu.memory_space<vmem>>, vector<64x16xf32>
    %c0_3 = arith.constant 0 : index
    %c0_4 = arith.constant 0 : index
    %2 = vector.load %arg2[%c0_3, %c0_4] : memref<16x8xf32, #tpu.memory_space<vmem>>, vector<16x8xf32>
    %c0_5 = arith.constant 0 : index
    %c0_6 = arith.constant 0 : index
    %3 = vector.load %arg3[%c0_5, %c0_6] : memref<32x49xf32, #tpu.memory_space<vmem>>, vector<32x49xf32>
    %c0_7 = arith.constant 0 : index
    %c0_8 = arith.constant 0 : index
    %4 = vector.load %arg6[%c0_7, %c0_8] : memref<128x2xf32, #tpu.memory_space<vmem>>, vector<128x2xf32>
    %5 = vector.extract_strided_slice %1 {offsets = [0, 0], sizes = [16, 16], strides = [1, 1]} : vector<64x16xf32> to vector<16x16xf32>
    %6 = vector.extract_strided_slice %1 {offsets = [16, 0], sizes = [16, 16], strides = [1, 1]} : vector<64x16xf32> to vector<16x16xf32>
    %7 = vector.extract_strided_slice %1 {offsets = [32, 0], sizes = [16, 16], strides = [1, 1]} : vector<64x16xf32> to vector<16x16xf32>
    %8 = vector.extract_strided_slice %1 {offsets = [48, 0], sizes = [16, 16], strides = [1, 1]} : vector<64x16xf32> to vector<16x16xf32>
    %9 = vector.extract_strided_slice %2 {offsets = [0, 0], sizes = [16, 1], strides = [1, 1]} : vector<16x8xf32> to vector<16x1xf32>
    %10 = vector.extract_strided_slice %2 {offsets = [0, 1], sizes = [16, 1], strides = [1, 1]} : vector<16x8xf32> to vector<16x1xf32>
    %11 = vector.extract_strided_slice %2 {offsets = [0, 2], sizes = [16, 1], strides = [1, 1]} : vector<16x8xf32> to vector<16x1xf32>
    %12 = vector.extract_strided_slice %2 {offsets = [0, 3], sizes = [16, 1], strides = [1, 1]} : vector<16x8xf32> to vector<16x1xf32>
    %13 = vector.extract_strided_slice %2 {offsets = [0, 4], sizes = [16, 1], strides = [1, 1]} : vector<16x8xf32> to vector<16x1xf32>
    %14 = vector.extract_strided_slice %2 {offsets = [0, 5], sizes = [16, 1], strides = [1, 1]} : vector<16x8xf32> to vector<16x1xf32>
    %15 = vector.extract_strided_slice %2 {offsets = [0, 6], sizes = [16, 1], strides = [1, 1]} : vector<16x8xf32> to vector<16x1xf32>
    %cst = arith.constant dense<0.000000e+00> : vector<16x2xf32>
    %16 = tpu.matmul %0, %4, %cst {dimension_numbers = #tpu.dot_dimension_numbers<[1], [0], [0], [1], [0, 0, 1, 1], [], []>} : vector<16x128xf32>, vector<128x2xf32>, vector<16x2xf32> -> vector<16x2xf32>
    %cst_9 = arith.constant dense<0.000000e+00> : vector<16x2xf32>
    %17 = tpu.matmul %5, %16, %cst_9 {dimension_numbers = #tpu.dot_dimension_numbers<[1], [0], [0], [1], [0, 0, 1, 1], [], []>} : vector<16x16xf32>, vector<16x2xf32>, vector<16x2xf32> -> vector<16x2xf32>
    %18 = arith.negf %17 : vector<16x2xf32>
    %19 = math.exp %18 : vector<16x2xf32>
    %cst_10 = arith.constant 1.000000e+00 : f32
    %20 = vector.broadcast %cst_10 : f32 to vector<16x2xf32>
    %21 = arith.addf %20, %19 : vector<16x2xf32>
    %22 = arith.divf %20, %21 : vector<16x2xf32>
    %c16 = arith.constant 16 : index
    %c0_11 = arith.constant 0 : index
    %23 = vector.load %arg5[%c16, %c0_11] : memref<18x128xf32, #tpu.memory_space<vmem>>, vector<2x128xf32>
    %cst_12 = arith.constant dense<0.000000e+00> : vector<16x128xf32>
    %24 = tpu.matmul %22, %23, %cst_12 {dimension_numbers = #tpu.dot_dimension_numbers<[1], [0], [0], [1], [0, 0, 1, 1], [], []>} : vector<16x2xf32>, vector<2x128xf32>, vector<16x128xf32> -> vector<16x128xf32>
    %25 = arith.mulf %0, %24 : vector<16x128xf32>
    %cst_13 = arith.constant dense<0.000000e+00> : vector<16x128xf32>
    %26 = tpu.matmul %6, %25, %cst_13 {dimension_numbers = #tpu.dot_dimension_numbers<[1], [0], [0], [1], [0, 0, 1, 1], [], []>} : vector<16x16xf32>, vector<16x128xf32>, vector<16x128xf32> -> vector<16x128xf32>
    %27 = vector.broadcast %9 : vector<16x1xf32> to vector<16x128xf32>
    %28 = arith.addf %26, %27 : vector<16x128xf32>
    %cst_14 = arith.constant 0.000000e+00 : f32
    %29 = vector.broadcast %cst_14 : f32 to vector<16x128xf32>
    %30 = arith.maximumf %28, %29 : vector<16x128xf32>
    %31 = vector.extract_strided_slice %3 {offsets = [0, 0], sizes = [16, 49], strides = [1, 1]} : vector<32x49xf32> to vector<16x49xf32>
    %cst_15 = arith.constant dense<0.000000e+00> : vector<16x128xf32>
    %32 = tpu.matmul %7, %30, %cst_15 {dimension_numbers = #tpu.dot_dimension_numbers<[1], [0], [0], [1], [0, 0, 1, 1], [], []>} : vector<16x16xf32>, vector<16x128xf32>, vector<16x128xf32> -> vector<16x128xf32>
    %33 = vector.broadcast %10 : vector<16x1xf32> to vector<16x128xf32>
    %34 = arith.addf %32, %33 : vector<16x128xf32>
    %cst_16 = arith.constant 0.000000e+00 : f32
    %35 = vector.broadcast %cst_16 : f32 to vector<16x128xf32>
    %36 = arith.maximumf %34, %35 : vector<16x128xf32>
    %c3_i32 = arith.constant 3 : i32
    %37 = tpu.dynamic_rotate %36 by %c3_i32 dim 1 : vector<16x128xf32>, i32 -> vector<16x128xf32>
    %c0_17 = arith.constant 0 : index
    %c0_18 = arith.constant 0 : index
    %38 = vector.load %arg5[%c0_17, %c0_18] : memref<18x128xf32, #tpu.memory_space<vmem>>, vector<1x128xf32>
    %39 = vector.broadcast %38 : vector<1x128xf32> to vector<16x128xf32>
    %40 = arith.mulf %37, %39 : vector<16x128xf32>
    %c2_i32 = arith.constant 2 : i32
    %41 = tpu.dynamic_rotate %36 by %c2_i32 dim 1 : vector<16x128xf32>, i32 -> vector<16x128xf32>
    %c1 = arith.constant 1 : index
    %c0_19 = arith.constant 0 : index
    %42 = vector.load %arg5[%c1, %c0_19] : memref<18x128xf32, #tpu.memory_space<vmem>>, vector<1x128xf32>
    %43 = vector.broadcast %42 : vector<1x128xf32> to vector<16x128xf32>
    %44 = arith.mulf %41, %43 : vector<16x128xf32>
    %c1_i32 = arith.constant 1 : i32
    %45 = tpu.dynamic_rotate %36 by %c1_i32 dim 1 : vector<16x128xf32>, i32 -> vector<16x128xf32>
    %c2 = arith.constant 2 : index
    %c0_20 = arith.constant 0 : index
    %46 = vector.load %arg5[%c2, %c0_20] : memref<18x128xf32, #tpu.memory_space<vmem>>, vector<1x128xf32>
    %47 = vector.broadcast %46 : vector<1x128xf32> to vector<16x128xf32>
    %48 = arith.mulf %45, %47 : vector<16x128xf32>
    %c3 = arith.constant 3 : index
    %c0_21 = arith.constant 0 : index
    %49 = vector.load %arg5[%c3, %c0_21] : memref<18x128xf32, #tpu.memory_space<vmem>>, vector<1x128xf32>
    %50 = vector.broadcast %49 : vector<1x128xf32> to vector<16x128xf32>
    %51 = arith.mulf %36, %50 : vector<16x128xf32>
    %c127_i32 = arith.constant 127 : i32
    %52 = tpu.dynamic_rotate %36 by %c127_i32 dim 1 : vector<16x128xf32>, i32 -> vector<16x128xf32>
    %c4 = arith.constant 4 : index
    %c0_22 = arith.constant 0 : index
    %53 = vector.load %arg5[%c4, %c0_22] : memref<18x128xf32, #tpu.memory_space<vmem>>, vector<1x128xf32>
    %54 = vector.broadcast %53 : vector<1x128xf32> to vector<16x128xf32>
    %55 = arith.mulf %52, %54 : vector<16x128xf32>
    %c126_i32 = arith.constant 126 : i32
    %56 = tpu.dynamic_rotate %36 by %c126_i32 dim 1 : vector<16x128xf32>, i32 -> vector<16x128xf32>
    %c5 = arith.constant 5 : index
    %c0_23 = arith.constant 0 : index
    %57 = vector.load %arg5[%c5, %c0_23] : memref<18x128xf32, #tpu.memory_space<vmem>>, vector<1x128xf32>
    %58 = vector.broadcast %57 : vector<1x128xf32> to vector<16x128xf32>
    %59 = arith.mulf %56, %58 : vector<16x128xf32>
    %c125_i32 = arith.constant 125 : i32
    %60 = tpu.dynamic_rotate %36 by %c125_i32 dim 1 : vector<16x128xf32>, i32 -> vector<16x128xf32>
    %c6 = arith.constant 6 : index
    %c0_24 = arith.constant 0 : index
    %61 = vector.load %arg5[%c6, %c0_24] : memref<18x128xf32, #tpu.memory_space<vmem>>, vector<1x128xf32>
    %62 = vector.broadcast %61 : vector<1x128xf32> to vector<16x128xf32>
    %63 = arith.mulf %60, %62 : vector<16x128xf32>
    %64 = vector.extract_strided_slice %31 {offsets = [0, 0], sizes = [16, 1], strides = [1, 1]} : vector<16x49xf32> to vector<16x1xf32>
    %65 = vector.broadcast %64 : vector<16x1xf32> to vector<16x128xf32>
    %66 = arith.mulf %40, %65 : vector<16x128xf32>
    %67 = vector.extract_strided_slice %31 {offsets = [0, 1], sizes = [16, 1], strides = [1, 1]} : vector<16x49xf32> to vector<16x1xf32>
    %68 = vector.broadcast %67 : vector<16x1xf32> to vector<16x128xf32>
    %69 = arith.mulf %44, %68 : vector<16x128xf32>
    %70 = arith.addf %66, %69 : vector<16x128xf32>
    %71 = vector.extract_strided_slice %31 {offsets = [0, 2], sizes = [16, 1], strides = [1, 1]} : vector<16x49xf32> to vector<16x1xf32>
    %72 = vector.broadcast %71 : vector<16x1xf32> to vector<16x128xf32>
    %73 = arith.mulf %48, %72 : vector<16x128xf32>
    %74 = arith.addf %70, %73 : vector<16x128xf32>
    %75 = vector.extract_strided_slice %31 {offsets = [0, 3], sizes = [16, 1], strides = [1, 1]} : vector<16x49xf32> to vector<16x1xf32>
    %76 = vector.broadcast %75 : vector<16x1xf32> to vector<16x128xf32>
    %77 = arith.mulf %51, %76 : vector<16x128xf32>
    %78 = arith.addf %74, %77 : vector<16x128xf32>
    %79 = vector.extract_strided_slice %31 {offsets = [0, 4], sizes = [16, 1], strides = [1, 1]} : vector<16x49xf32> to vector<16x1xf32>
    %80 = vector.broadcast %79 : vector<16x1xf32> to vector<16x128xf32>
    %81 = arith.mulf %55, %80 : vector<16x128xf32>
    %82 = arith.addf %78, %81 : vector<16x128xf32>
    %83 = vector.extract_strided_slice %31 {offsets = [0, 5], sizes = [16, 1], strides = [1, 1]} : vector<16x49xf32> to vector<16x1xf32>
    %84 = vector.broadcast %83 : vector<16x1xf32> to vector<16x128xf32>
    %85 = arith.mulf %59, %84 : vector<16x128xf32>
    %86 = arith.addf %82, %85 : vector<16x128xf32>
    %87 = vector.extract_strided_slice %31 {offsets = [0, 6], sizes = [16, 1], strides = [1, 1]} : vector<16x49xf32> to vector<16x1xf32>
    %88 = vector.broadcast %87 : vector<16x1xf32> to vector<16x128xf32>
    %89 = arith.mulf %63, %88 : vector<16x128xf32>
    %90 = arith.addf %86, %89 : vector<16x128xf32>
    %c24_i32 = arith.constant 24 : i32
    %91 = tpu.dynamic_rotate %90 by %c24_i32 dim 1 : vector<16x128xf32>, i32 -> vector<16x128xf32>
    %c8 = arith.constant 8 : index
    %c0_25 = arith.constant 0 : index
    %92 = vector.load %arg5[%c8, %c0_25] : memref<18x128xf32, #tpu.memory_space<vmem>>, vector<1x128xf32>
    %93 = vector.broadcast %92 : vector<1x128xf32> to vector<16x128xf32>
    %94 = arith.mulf %91, %93 : vector<16x128xf32>
    %95 = vector.extract_strided_slice %31 {offsets = [0, 7], sizes = [16, 1], strides = [1, 1]} : vector<16x49xf32> to vector<16x1xf32>
    %96 = vector.broadcast %95 : vector<16x1xf32> to vector<16x128xf32>
    %97 = arith.mulf %40, %96 : vector<16x128xf32>
    %98 = vector.extract_strided_slice %31 {offsets = [0, 8], sizes = [16, 1], strides = [1, 1]} : vector<16x49xf32> to vector<16x1xf32>
    %99 = vector.broadcast %98 : vector<16x1xf32> to vector<16x128xf32>
    %100 = arith.mulf %44, %99 : vector<16x128xf32>
    %101 = arith.addf %97, %100 : vector<16x128xf32>
    %102 = vector.extract_strided_slice %31 {offsets = [0, 9], sizes = [16, 1], strides = [1, 1]} : vector<16x49xf32> to vector<16x1xf32>
    %103 = vector.broadcast %102 : vector<16x1xf32> to vector<16x128xf32>
    %104 = arith.mulf %48, %103 : vector<16x128xf32>
    %105 = arith.addf %101, %104 : vector<16x128xf32>
    %106 = vector.extract_strided_slice %31 {offsets = [0, 10], sizes = [16, 1], strides = [1, 1]} : vector<16x49xf32> to vector<16x1xf32>
    %107 = vector.broadcast %106 : vector<16x1xf32> to vector<16x128xf32>
    %108 = arith.mulf %51, %107 : vector<16x128xf32>
    %109 = arith.addf %105, %108 : vector<16x128xf32>
    %110 = vector.extract_strided_slice %31 {offsets = [0, 11], sizes = [16, 1], strides = [1, 1]} : vector<16x49xf32> to vector<16x1xf32>
    %111 = vector.broadcast %110 : vector<16x1xf32> to vector<16x128xf32>
    %112 = arith.mulf %55, %111 : vector<16x128xf32>
    %113 = arith.addf %109, %112 : vector<16x128xf32>
    %114 = vector.extract_strided_slice %31 {offsets = [0, 12], sizes = [16, 1], strides = [1, 1]} : vector<16x49xf32> to vector<16x1xf32>
    %115 = vector.broadcast %114 : vector<16x1xf32> to vector<16x128xf32>
    %116 = arith.mulf %59, %115 : vector<16x128xf32>
    %117 = arith.addf %113, %116 : vector<16x128xf32>
    %118 = vector.extract_strided_slice %31 {offsets = [0, 13], sizes = [16, 1], strides = [1, 1]} : vector<16x49xf32> to vector<16x1xf32>
    %119 = vector.broadcast %118 : vector<16x1xf32> to vector<16x128xf32>
    %120 = arith.mulf %63, %119 : vector<16x128xf32>
    %121 = arith.addf %117, %120 : vector<16x128xf32>
    %c16_i32 = arith.constant 16 : i32
    %122 = tpu.dynamic_rotate %121 by %c16_i32 dim 1 : vector<16x128xf32>, i32 -> vector<16x128xf32>
    %c9 = arith.constant 9 : index
    %c0_26 = arith.constant 0 : index
    %123 = vector.load %arg5[%c9, %c0_26] : memref<18x128xf32, #tpu.memory_space<vmem>>, vector<1x128xf32>
    %124 = vector.broadcast %123 : vector<1x128xf32> to vector<16x128xf32>
    %125 = arith.mulf %122, %124 : vector<16x128xf32>
    %126 = arith.addf %94, %125 : vector<16x128xf32>
    %127 = vector.extract_strided_slice %31 {offsets = [0, 14], sizes = [16, 1], strides = [1, 1]} : vector<16x49xf32> to vector<16x1xf32>
    %128 = vector.broadcast %127 : vector<16x1xf32> to vector<16x128xf32>
    %129 = arith.mulf %40, %128 : vector<16x128xf32>
    %130 = vector.extract_strided_slice %31 {offsets = [0, 15], sizes = [16, 1], strides = [1, 1]} : vector<16x49xf32> to vector<16x1xf32>
    %131 = vector.broadcast %130 : vector<16x1xf32> to vector<16x128xf32>
    %132 = arith.mulf %44, %131 : vector<16x128xf32>
    %133 = arith.addf %129, %132 : vector<16x128xf32>
    %134 = vector.extract_strided_slice %31 {offsets = [0, 16], sizes = [16, 1], strides = [1, 1]} : vector<16x49xf32> to vector<16x1xf32>
    %135 = vector.broadcast %134 : vector<16x1xf32> to vector<16x128xf32>
    %136 = arith.mulf %48, %135 : vector<16x128xf32>
    %137 = arith.addf %133, %136 : vector<16x128xf32>
    %138 = vector.extract_strided_slice %31 {offsets = [0, 17], sizes = [16, 1], strides = [1, 1]} : vector<16x49xf32> to vector<16x1xf32>
    %139 = vector.broadcast %138 : vector<16x1xf32> to vector<16x128xf32>
    %140 = arith.mulf %51, %139 : vector<16x128xf32>
    %141 = arith.addf %137, %140 : vector<16x128xf32>
    %142 = vector.extract_strided_slice %31 {offsets = [0, 18], sizes = [16, 1], strides = [1, 1]} : vector<16x49xf32> to vector<16x1xf32>
    %143 = vector.broadcast %142 : vector<16x1xf32> to vector<16x128xf32>
    %144 = arith.mulf %55, %143 : vector<16x128xf32>
    %145 = arith.addf %141, %144 : vector<16x128xf32>
    %146 = vector.extract_strided_slice %31 {offsets = [0, 19], sizes = [16, 1], strides = [1, 1]} : vector<16x49xf32> to vector<16x1xf32>
    %147 = vector.broadcast %146 : vector<16x1xf32> to vector<16x128xf32>
    %148 = arith.mulf %59, %147 : vector<16x128xf32>
    %149 = arith.addf %145, %148 : vector<16x128xf32>
    %150 = vector.extract_strided_slice %31 {offsets = [0, 20], sizes = [16, 1], strides = [1, 1]} : vector<16x49xf32> to vector<16x1xf32>
    %151 = vector.broadcast %150 : vector<16x1xf32> to vector<16x128xf32>
    %152 = arith.mulf %63, %151 : vector<16x128xf32>
    %153 = arith.addf %149, %152 : vector<16x128xf32>
    %c8_i32 = arith.constant 8 : i32
    %154 = tpu.dynamic_rotate %153 by %c8_i32 dim 1 : vector<16x128xf32>, i32 -> vector<16x128xf32>
    %c10 = arith.constant 10 : index
    %c0_27 = arith.constant 0 : index
    %155 = vector.load %arg5[%c10, %c0_27] : memref<18x128xf32, #tpu.memory_space<vmem>>, vector<1x128xf32>
    %156 = vector.broadcast %155 : vector<1x128xf32> to vector<16x128xf32>
    %157 = arith.mulf %154, %156 : vector<16x128xf32>
    %158 = arith.addf %126, %157 : vector<16x128xf32>
    %159 = vector.extract_strided_slice %31 {offsets = [0, 21], sizes = [16, 1], strides = [1, 1]} : vector<16x49xf32> to vector<16x1xf32>
    %160 = vector.broadcast %159 : vector<16x1xf32> to vector<16x128xf32>
    %161 = arith.mulf %40, %160 : vector<16x128xf32>
    %162 = vector.extract_strided_slice %31 {offsets = [0, 22], sizes = [16, 1], strides = [1, 1]} : vector<16x49xf32> to vector<16x1xf32>
    %163 = vector.broadcast %162 : vector<16x1xf32> to vector<16x128xf32>
    %164 = arith.mulf %44, %163 : vector<16x128xf32>
    %165 = arith.addf %161, %164 : vector<16x128xf32>
    %166 = vector.extract_strided_slice %31 {offsets = [0, 23], sizes = [16, 1], strides = [1, 1]} : vector<16x49xf32> to vector<16x1xf32>
    %167 = vector.broadcast %166 : vector<16x1xf32> to vector<16x128xf32>
    %168 = arith.mulf %48, %167 : vector<16x128xf32>
    %169 = arith.addf %165, %168 : vector<16x128xf32>
    %170 = vector.extract_strided_slice %31 {offsets = [0, 24], sizes = [16, 1], strides = [1, 1]} : vector<16x49xf32> to vector<16x1xf32>
    %171 = vector.broadcast %170 : vector<16x1xf32> to vector<16x128xf32>
    %172 = arith.mulf %51, %171 : vector<16x128xf32>
    %173 = arith.addf %169, %172 : vector<16x128xf32>
    %174 = vector.extract_strided_slice %31 {offsets = [0, 25], sizes = [16, 1], strides = [1, 1]} : vector<16x49xf32> to vector<16x1xf32>
    %175 = vector.broadcast %174 : vector<16x1xf32> to vector<16x128xf32>
    %176 = arith.mulf %55, %175 : vector<16x128xf32>
    %177 = arith.addf %173, %176 : vector<16x128xf32>
    %178 = vector.extract_strided_slice %31 {offsets = [0, 26], sizes = [16, 1], strides = [1, 1]} : vector<16x49xf32> to vector<16x1xf32>
    %179 = vector.broadcast %178 : vector<16x1xf32> to vector<16x128xf32>
    %180 = arith.mulf %59, %179 : vector<16x128xf32>
    %181 = arith.addf %177, %180 : vector<16x128xf32>
    %182 = vector.extract_strided_slice %31 {offsets = [0, 27], sizes = [16, 1], strides = [1, 1]} : vector<16x49xf32> to vector<16x1xf32>
    %183 = vector.broadcast %182 : vector<16x1xf32> to vector<16x128xf32>
    %184 = arith.mulf %63, %183 : vector<16x128xf32>
    %185 = arith.addf %181, %184 : vector<16x128xf32>
    %c11 = arith.constant 11 : index
    %c0_28 = arith.constant 0 : index
    %186 = vector.load %arg5[%c11, %c0_28] : memref<18x128xf32, #tpu.memory_space<vmem>>, vector<1x128xf32>
    %187 = vector.broadcast %186 : vector<1x128xf32> to vector<16x128xf32>
    %188 = arith.mulf %185, %187 : vector<16x128xf32>
    %189 = arith.addf %158, %188 : vector<16x128xf32>
    %190 = vector.extract_strided_slice %31 {offsets = [0, 28], sizes = [16, 1], strides = [1, 1]} : vector<16x49xf32> to vector<16x1xf32>
    %191 = vector.broadcast %190 : vector<16x1xf32> to vector<16x128xf32>
    %192 = arith.mulf %40, %191 : vector<16x128xf32>
    %193 = vector.extract_strided_slice %31 {offsets = [0, 29], sizes = [16, 1], strides = [1, 1]} : vector<16x49xf32> to vector<16x1xf32>
    %194 = vector.broadcast %193 : vector<16x1xf32> to vector<16x128xf32>
    %195 = arith.mulf %44, %194 : vector<16x128xf32>
    %196 = arith.addf %192, %195 : vector<16x128xf32>
    %197 = vector.extract_strided_slice %31 {offsets = [0, 30], sizes = [16, 1], strides = [1, 1]} : vector<16x49xf32> to vector<16x1xf32>
    %198 = vector.broadcast %197 : vector<16x1xf32> to vector<16x128xf32>
    %199 = arith.mulf %48, %198 : vector<16x128xf32>
    %200 = arith.addf %196, %199 : vector<16x128xf32>
    %201 = vector.extract_strided_slice %31 {offsets = [0, 31], sizes = [16, 1], strides = [1, 1]} : vector<16x49xf32> to vector<16x1xf32>
    %202 = vector.broadcast %201 : vector<16x1xf32> to vector<16x128xf32>
    %203 = arith.mulf %51, %202 : vector<16x128xf32>
    %204 = arith.addf %200, %203 : vector<16x128xf32>
    %205 = vector.extract_strided_slice %31 {offsets = [0, 32], sizes = [16, 1], strides = [1, 1]} : vector<16x49xf32> to vector<16x1xf32>
    %206 = vector.broadcast %205 : vector<16x1xf32> to vector<16x128xf32>
    %207 = arith.mulf %55, %206 : vector<16x128xf32>
    %208 = arith.addf %204, %207 : vector<16x128xf32>
    %209 = vector.extract_strided_slice %31 {offsets = [0, 33], sizes = [16, 1], strides = [1, 1]} : vector<16x49xf32> to vector<16x1xf32>
    %210 = vector.broadcast %209 : vector<16x1xf32> to vector<16x128xf32>
    %211 = arith.mulf %59, %210 : vector<16x128xf32>
    %212 = arith.addf %208, %211 : vector<16x128xf32>
    %213 = vector.extract_strided_slice %31 {offsets = [0, 34], sizes = [16, 1], strides = [1, 1]} : vector<16x49xf32> to vector<16x1xf32>
    %214 = vector.broadcast %213 : vector<16x1xf32> to vector<16x128xf32>
    %215 = arith.mulf %63, %214 : vector<16x128xf32>
    %216 = arith.addf %212, %215 : vector<16x128xf32>
    %c120_i32 = arith.constant 120 : i32
    %217 = tpu.dynamic_rotate %216 by %c120_i32 dim 1 : vector<16x128xf32>, i32 -> vector<16x128xf32>
    %c12 = arith.constant 12 : index
    %c0_29 = arith.constant 0 : index
    %218 = vector.load %arg5[%c12, %c0_29] : memref<18x128xf32, #tpu.memory_space<vmem>>, vector<1x128xf32>
    %219 = vector.broadcast %218 : vector<1x128xf32> to vector<16x128xf32>
    %220 = arith.mulf %217, %219 : vector<16x128xf32>
    %221 = arith.addf %189, %220 : vector<16x128xf32>
    %222 = vector.extract_strided_slice %31 {offsets = [0, 35], sizes = [16, 1], strides = [1, 1]} : vector<16x49xf32> to vector<16x1xf32>
    %223 = vector.broadcast %222 : vector<16x1xf32> to vector<16x128xf32>
    %224 = arith.mulf %40, %223 : vector<16x128xf32>
    %225 = vector.extract_strided_slice %31 {offsets = [0, 36], sizes = [16, 1], strides = [1, 1]} : vector<16x49xf32> to vector<16x1xf32>
    %226 = vector.broadcast %225 : vector<16x1xf32> to vector<16x128xf32>
    %227 = arith.mulf %44, %226 : vector<16x128xf32>
    %228 = arith.addf %224, %227 : vector<16x128xf32>
    %229 = vector.extract_strided_slice %31 {offsets = [0, 37], sizes = [16, 1], strides = [1, 1]} : vector<16x49xf32> to vector<16x1xf32>
    %230 = vector.broadcast %229 : vector<16x1xf32> to vector<16x128xf32>
    %231 = arith.mulf %48, %230 : vector<16x128xf32>
    %232 = arith.addf %228, %231 : vector<16x128xf32>
    %233 = vector.extract_strided_slice %31 {offsets = [0, 38], sizes = [16, 1], strides = [1, 1]} : vector<16x49xf32> to vector<16x1xf32>
    %234 = vector.broadcast %233 : vector<16x1xf32> to vector<16x128xf32>
    %235 = arith.mulf %51, %234 : vector<16x128xf32>
    %236 = arith.addf %232, %235 : vector<16x128xf32>
    %237 = vector.extract_strided_slice %31 {offsets = [0, 39], sizes = [16, 1], strides = [1, 1]} : vector<16x49xf32> to vector<16x1xf32>
    %238 = vector.broadcast %237 : vector<16x1xf32> to vector<16x128xf32>
    %239 = arith.mulf %55, %238 : vector<16x128xf32>
    %240 = arith.addf %236, %239 : vector<16x128xf32>
    %241 = vector.extract_strided_slice %31 {offsets = [0, 40], sizes = [16, 1], strides = [1, 1]} : vector<16x49xf32> to vector<16x1xf32>
    %242 = vector.broadcast %241 : vector<16x1xf32> to vector<16x128xf32>
    %243 = arith.mulf %59, %242 : vector<16x128xf32>
    %244 = arith.addf %240, %243 : vector<16x128xf32>
    %245 = vector.extract_strided_slice %31 {offsets = [0, 41], sizes = [16, 1], strides = [1, 1]} : vector<16x49xf32> to vector<16x1xf32>
    %246 = vector.broadcast %245 : vector<16x1xf32> to vector<16x128xf32>
    %247 = arith.mulf %63, %246 : vector<16x128xf32>
    %248 = arith.addf %244, %247 : vector<16x128xf32>
    %c112_i32 = arith.constant 112 : i32
    %249 = tpu.dynamic_rotate %248 by %c112_i32 dim 1 : vector<16x128xf32>, i32 -> vector<16x128xf32>
    %c13 = arith.constant 13 : index
    %c0_30 = arith.constant 0 : index
    %250 = vector.load %arg5[%c13, %c0_30] : memref<18x128xf32, #tpu.memory_space<vmem>>, vector<1x128xf32>
    %251 = vector.broadcast %250 : vector<1x128xf32> to vector<16x128xf32>
    %252 = arith.mulf %249, %251 : vector<16x128xf32>
    %253 = arith.addf %221, %252 : vector<16x128xf32>
    %254 = vector.extract_strided_slice %31 {offsets = [0, 42], sizes = [16, 1], strides = [1, 1]} : vector<16x49xf32> to vector<16x1xf32>
    %255 = vector.broadcast %254 : vector<16x1xf32> to vector<16x128xf32>
    %256 = arith.mulf %40, %255 : vector<16x128xf32>
    %257 = vector.extract_strided_slice %31 {offsets = [0, 43], sizes = [16, 1], strides = [1, 1]} : vector<16x49xf32> to vector<16x1xf32>
    %258 = vector.broadcast %257 : vector<16x1xf32> to vector<16x128xf32>
    %259 = arith.mulf %44, %258 : vector<16x128xf32>
    %260 = arith.addf %256, %259 : vector<16x128xf32>
    %261 = vector.extract_strided_slice %31 {offsets = [0, 44], sizes = [16, 1], strides = [1, 1]} : vector<16x49xf32> to vector<16x1xf32>
    %262 = vector.broadcast %261 : vector<16x1xf32> to vector<16x128xf32>
    %263 = arith.mulf %48, %262 : vector<16x128xf32>
    %264 = arith.addf %260, %263 : vector<16x128xf32>
    %265 = vector.extract_strided_slice %31 {offsets = [0, 45], sizes = [16, 1], strides = [1, 1]} : vector<16x49xf32> to vector<16x1xf32>
    %266 = vector.broadcast %265 : vector<16x1xf32> to vector<16x128xf32>
    %267 = arith.mulf %51, %266 : vector<16x128xf32>
    %268 = arith.addf %264, %267 : vector<16x128xf32>
    %269 = vector.extract_strided_slice %31 {offsets = [0, 46], sizes = [16, 1], strides = [1, 1]} : vector<16x49xf32> to vector<16x1xf32>
    %270 = vector.broadcast %269 : vector<16x1xf32> to vector<16x128xf32>
    %271 = arith.mulf %55, %270 : vector<16x128xf32>
    %272 = arith.addf %268, %271 : vector<16x128xf32>
    %273 = vector.extract_strided_slice %31 {offsets = [0, 47], sizes = [16, 1], strides = [1, 1]} : vector<16x49xf32> to vector<16x1xf32>
    %274 = vector.broadcast %273 : vector<16x1xf32> to vector<16x128xf32>
    %275 = arith.mulf %59, %274 : vector<16x128xf32>
    %276 = arith.addf %272, %275 : vector<16x128xf32>
    %277 = vector.extract_strided_slice %31 {offsets = [0, 48], sizes = [16, 1], strides = [1, 1]} : vector<16x49xf32> to vector<16x1xf32>
    %278 = vector.broadcast %277 : vector<16x1xf32> to vector<16x128xf32>
    %279 = arith.mulf %63, %278 : vector<16x128xf32>
    %280 = arith.addf %276, %279 : vector<16x128xf32>
    %c104_i32 = arith.constant 104 : i32
    %281 = tpu.dynamic_rotate %280 by %c104_i32 dim 1 : vector<16x128xf32>, i32 -> vector<16x128xf32>
    %c14 = arith.constant 14 : index
    %c0_31 = arith.constant 0 : index
    %282 = vector.load %arg5[%c14, %c0_31] : memref<18x128xf32, #tpu.memory_space<vmem>>, vector<1x128xf32>
    %283 = vector.broadcast %282 : vector<1x128xf32> to vector<16x128xf32>
    %284 = arith.mulf %281, %283 : vector<16x128xf32>
    %285 = arith.addf %253, %284 : vector<16x128xf32>
    %286 = vector.broadcast %11 : vector<16x1xf32> to vector<16x128xf32>
    %287 = arith.mulf %285, %286 : vector<16x128xf32>
    %288 = vector.broadcast %12 : vector<16x1xf32> to vector<16x128xf32>
    %289 = arith.addf %287, %288 : vector<16x128xf32>
    %cst_32 = arith.constant 0.000000e+00 : f32
    %290 = vector.broadcast %cst_32 : f32 to vector<16x128xf32>
    %291 = arith.maximumf %289, %290 : vector<16x128xf32>
    %292 = vector.extract_strided_slice %3 {offsets = [16, 0], sizes = [16, 49], strides = [1, 1]} : vector<32x49xf32> to vector<16x49xf32>
    %cst_33 = arith.constant dense<0.000000e+00> : vector<16x128xf32>
    %293 = tpu.matmul %8, %291, %cst_33 {dimension_numbers = #tpu.dot_dimension_numbers<[1], [0], [0], [1], [0, 0, 1, 1], [], []>} : vector<16x16xf32>, vector<16x128xf32>, vector<16x128xf32> -> vector<16x128xf32>
    %294 = vector.broadcast %13 : vector<16x1xf32> to vector<16x128xf32>
    %295 = arith.addf %293, %294 : vector<16x128xf32>
    %cst_34 = arith.constant 0.000000e+00 : f32
    %296 = vector.broadcast %cst_34 : f32 to vector<16x128xf32>
    %297 = arith.maximumf %295, %296 : vector<16x128xf32>
    %c3_i32_35 = arith.constant 3 : i32
    %298 = tpu.dynamic_rotate %297 by %c3_i32_35 dim 1 : vector<16x128xf32>, i32 -> vector<16x128xf32>
    %c0_36 = arith.constant 0 : index
    %c0_37 = arith.constant 0 : index
    %299 = vector.load %arg5[%c0_36, %c0_37] : memref<18x128xf32, #tpu.memory_space<vmem>>, vector<1x128xf32>
    %300 = vector.broadcast %299 : vector<1x128xf32> to vector<16x128xf32>
    %301 = arith.mulf %298, %300 : vector<16x128xf32>
    %c2_i32_38 = arith.constant 2 : i32
    %302 = tpu.dynamic_rotate %297 by %c2_i32_38 dim 1 : vector<16x128xf32>, i32 -> vector<16x128xf32>
    %c1_39 = arith.constant 1 : index
    %c0_40 = arith.constant 0 : index
    %303 = vector.load %arg5[%c1_39, %c0_40] : memref<18x128xf32, #tpu.memory_space<vmem>>, vector<1x128xf32>
    %304 = vector.broadcast %303 : vector<1x128xf32> to vector<16x128xf32>
    %305 = arith.mulf %302, %304 : vector<16x128xf32>
    %c1_i32_41 = arith.constant 1 : i32
    %306 = tpu.dynamic_rotate %297 by %c1_i32_41 dim 1 : vector<16x128xf32>, i32 -> vector<16x128xf32>
    %c2_42 = arith.constant 2 : index
    %c0_43 = arith.constant 0 : index
    %307 = vector.load %arg5[%c2_42, %c0_43] : memref<18x128xf32, #tpu.memory_space<vmem>>, vector<1x128xf32>
    %308 = vector.broadcast %307 : vector<1x128xf32> to vector<16x128xf32>
    %309 = arith.mulf %306, %308 : vector<16x128xf32>
    %c3_44 = arith.constant 3 : index
    %c0_45 = arith.constant 0 : index
    %310 = vector.load %arg5[%c3_44, %c0_45] : memref<18x128xf32, #tpu.memory_space<vmem>>, vector<1x128xf32>
    %311 = vector.broadcast %310 : vector<1x128xf32> to vector<16x128xf32>
    %312 = arith.mulf %297, %311 : vector<16x128xf32>
    %c127_i32_46 = arith.constant 127 : i32
    %313 = tpu.dynamic_rotate %297 by %c127_i32_46 dim 1 : vector<16x128xf32>, i32 -> vector<16x128xf32>
    %c4_47 = arith.constant 4 : index
    %c0_48 = arith.constant 0 : index
    %314 = vector.load %arg5[%c4_47, %c0_48] : memref<18x128xf32, #tpu.memory_space<vmem>>, vector<1x128xf32>
    %315 = vector.broadcast %314 : vector<1x128xf32> to vector<16x128xf32>
    %316 = arith.mulf %313, %315 : vector<16x128xf32>
    %c126_i32_49 = arith.constant 126 : i32
    %317 = tpu.dynamic_rotate %297 by %c126_i32_49 dim 1 : vector<16x128xf32>, i32 -> vector<16x128xf32>
    %c5_50 = arith.constant 5 : index
    %c0_51 = arith.constant 0 : index
    %318 = vector.load %arg5[%c5_50, %c0_51] : memref<18x128xf32, #tpu.memory_space<vmem>>, vector<1x128xf32>
    %319 = vector.broadcast %318 : vector<1x128xf32> to vector<16x128xf32>
    %320 = arith.mulf %317, %319 : vector<16x128xf32>
    %c125_i32_52 = arith.constant 125 : i32
    %321 = tpu.dynamic_rotate %297 by %c125_i32_52 dim 1 : vector<16x128xf32>, i32 -> vector<16x128xf32>
    %c6_53 = arith.constant 6 : index
    %c0_54 = arith.constant 0 : index
    %322 = vector.load %arg5[%c6_53, %c0_54] : memref<18x128xf32, #tpu.memory_space<vmem>>, vector<1x128xf32>
    %323 = vector.broadcast %322 : vector<1x128xf32> to vector<16x128xf32>
    %324 = arith.mulf %321, %323 : vector<16x128xf32>
    %325 = vector.extract_strided_slice %292 {offsets = [0, 0], sizes = [16, 1], strides = [1, 1]} : vector<16x49xf32> to vector<16x1xf32>
    %326 = vector.broadcast %325 : vector<16x1xf32> to vector<16x128xf32>
    %327 = arith.mulf %301, %326 : vector<16x128xf32>
    %328 = vector.extract_strided_slice %292 {offsets = [0, 1], sizes = [16, 1], strides = [1, 1]} : vector<16x49xf32> to vector<16x1xf32>
    %329 = vector.broadcast %328 : vector<16x1xf32> to vector<16x128xf32>
    %330 = arith.mulf %305, %329 : vector<16x128xf32>
    %331 = arith.addf %327, %330 : vector<16x128xf32>
    %332 = vector.extract_strided_slice %292 {offsets = [0, 2], sizes = [16, 1], strides = [1, 1]} : vector<16x49xf32> to vector<16x1xf32>
    %333 = vector.broadcast %332 : vector<16x1xf32> to vector<16x128xf32>
    %334 = arith.mulf %309, %333 : vector<16x128xf32>
    %335 = arith.addf %331, %334 : vector<16x128xf32>
    %336 = vector.extract_strided_slice %292 {offsets = [0, 3], sizes = [16, 1], strides = [1, 1]} : vector<16x49xf32> to vector<16x1xf32>
    %337 = vector.broadcast %336 : vector<16x1xf32> to vector<16x128xf32>
    %338 = arith.mulf %312, %337 : vector<16x128xf32>
    %339 = arith.addf %335, %338 : vector<16x128xf32>
    %340 = vector.extract_strided_slice %292 {offsets = [0, 4], sizes = [16, 1], strides = [1, 1]} : vector<16x49xf32> to vector<16x1xf32>
    %341 = vector.broadcast %340 : vector<16x1xf32> to vector<16x128xf32>
    %342 = arith.mulf %316, %341 : vector<16x128xf32>
    %343 = arith.addf %339, %342 : vector<16x128xf32>
    %344 = vector.extract_strided_slice %292 {offsets = [0, 5], sizes = [16, 1], strides = [1, 1]} : vector<16x49xf32> to vector<16x1xf32>
    %345 = vector.broadcast %344 : vector<16x1xf32> to vector<16x128xf32>
    %346 = arith.mulf %320, %345 : vector<16x128xf32>
    %347 = arith.addf %343, %346 : vector<16x128xf32>
    %348 = vector.extract_strided_slice %292 {offsets = [0, 6], sizes = [16, 1], strides = [1, 1]} : vector<16x49xf32> to vector<16x1xf32>
    %349 = vector.broadcast %348 : vector<16x1xf32> to vector<16x128xf32>
    %350 = arith.mulf %324, %349 : vector<16x128xf32>
    %351 = arith.addf %347, %350 : vector<16x128xf32>
    %c24_i32_55 = arith.constant 24 : i32
    %352 = tpu.dynamic_rotate %351 by %c24_i32_55 dim 1 : vector<16x128xf32>, i32 -> vector<16x128xf32>
    %c8_56 = arith.constant 8 : index
    %c0_57 = arith.constant 0 : index
    %353 = vector.load %arg5[%c8_56, %c0_57] : memref<18x128xf32, #tpu.memory_space<vmem>>, vector<1x128xf32>
    %354 = vector.broadcast %353 : vector<1x128xf32> to vector<16x128xf32>
    %355 = arith.mulf %352, %354 : vector<16x128xf32>
    %356 = vector.extract_strided_slice %292 {offsets = [0, 7], sizes = [16, 1], strides = [1, 1]} : vector<16x49xf32> to vector<16x1xf32>
    %357 = vector.broadcast %356 : vector<16x1xf32> to vector<16x128xf32>
    %358 = arith.mulf %301, %357 : vector<16x128xf32>
    %359 = vector.extract_strided_slice %292 {offsets = [0, 8], sizes = [16, 1], strides = [1, 1]} : vector<16x49xf32> to vector<16x1xf32>
    %360 = vector.broadcast %359 : vector<16x1xf32> to vector<16x128xf32>
    %361 = arith.mulf %305, %360 : vector<16x128xf32>
    %362 = arith.addf %358, %361 : vector<16x128xf32>
    %363 = vector.extract_strided_slice %292 {offsets = [0, 9], sizes = [16, 1], strides = [1, 1]} : vector<16x49xf32> to vector<16x1xf32>
    %364 = vector.broadcast %363 : vector<16x1xf32> to vector<16x128xf32>
    %365 = arith.mulf %309, %364 : vector<16x128xf32>
    %366 = arith.addf %362, %365 : vector<16x128xf32>
    %367 = vector.extract_strided_slice %292 {offsets = [0, 10], sizes = [16, 1], strides = [1, 1]} : vector<16x49xf32> to vector<16x1xf32>
    %368 = vector.broadcast %367 : vector<16x1xf32> to vector<16x128xf32>
    %369 = arith.mulf %312, %368 : vector<16x128xf32>
    %370 = arith.addf %366, %369 : vector<16x128xf32>
    %371 = vector.extract_strided_slice %292 {offsets = [0, 11], sizes = [16, 1], strides = [1, 1]} : vector<16x49xf32> to vector<16x1xf32>
    %372 = vector.broadcast %371 : vector<16x1xf32> to vector<16x128xf32>
    %373 = arith.mulf %316, %372 : vector<16x128xf32>
    %374 = arith.addf %370, %373 : vector<16x128xf32>
    %375 = vector.extract_strided_slice %292 {offsets = [0, 12], sizes = [16, 1], strides = [1, 1]} : vector<16x49xf32> to vector<16x1xf32>
    %376 = vector.broadcast %375 : vector<16x1xf32> to vector<16x128xf32>
    %377 = arith.mulf %320, %376 : vector<16x128xf32>
    %378 = arith.addf %374, %377 : vector<16x128xf32>
    %379 = vector.extract_strided_slice %292 {offsets = [0, 13], sizes = [16, 1], strides = [1, 1]} : vector<16x49xf32> to vector<16x1xf32>
    %380 = vector.broadcast %379 : vector<16x1xf32> to vector<16x128xf32>
    %381 = arith.mulf %324, %380 : vector<16x128xf32>
    %382 = arith.addf %378, %381 : vector<16x128xf32>
    %c16_i32_58 = arith.constant 16 : i32
    %383 = tpu.dynamic_rotate %382 by %c16_i32_58 dim 1 : vector<16x128xf32>, i32 -> vector<16x128xf32>
    %c9_59 = arith.constant 9 : index
    %c0_60 = arith.constant 0 : index
    %384 = vector.load %arg5[%c9_59, %c0_60] : memref<18x128xf32, #tpu.memory_space<vmem>>, vector<1x128xf32>
    %385 = vector.broadcast %384 : vector<1x128xf32> to vector<16x128xf32>
    %386 = arith.mulf %383, %385 : vector<16x128xf32>
    %387 = arith.addf %355, %386 : vector<16x128xf32>
    %388 = vector.extract_strided_slice %292 {offsets = [0, 14], sizes = [16, 1], strides = [1, 1]} : vector<16x49xf32> to vector<16x1xf32>
    %389 = vector.broadcast %388 : vector<16x1xf32> to vector<16x128xf32>
    %390 = arith.mulf %301, %389 : vector<16x128xf32>
    %391 = vector.extract_strided_slice %292 {offsets = [0, 15], sizes = [16, 1], strides = [1, 1]} : vector<16x49xf32> to vector<16x1xf32>
    %392 = vector.broadcast %391 : vector<16x1xf32> to vector<16x128xf32>
    %393 = arith.mulf %305, %392 : vector<16x128xf32>
    %394 = arith.addf %390, %393 : vector<16x128xf32>
    %395 = vector.extract_strided_slice %292 {offsets = [0, 16], sizes = [16, 1], strides = [1, 1]} : vector<16x49xf32> to vector<16x1xf32>
    %396 = vector.broadcast %395 : vector<16x1xf32> to vector<16x128xf32>
    %397 = arith.mulf %309, %396 : vector<16x128xf32>
    %398 = arith.addf %394, %397 : vector<16x128xf32>
    %399 = vector.extract_strided_slice %292 {offsets = [0, 17], sizes = [16, 1], strides = [1, 1]} : vector<16x49xf32> to vector<16x1xf32>
    %400 = vector.broadcast %399 : vector<16x1xf32> to vector<16x128xf32>
    %401 = arith.mulf %312, %400 : vector<16x128xf32>
    %402 = arith.addf %398, %401 : vector<16x128xf32>
    %403 = vector.extract_strided_slice %292 {offsets = [0, 18], sizes = [16, 1], strides = [1, 1]} : vector<16x49xf32> to vector<16x1xf32>
    %404 = vector.broadcast %403 : vector<16x1xf32> to vector<16x128xf32>
    %405 = arith.mulf %316, %404 : vector<16x128xf32>
    %406 = arith.addf %402, %405 : vector<16x128xf32>
    %407 = vector.extract_strided_slice %292 {offsets = [0, 19], sizes = [16, 1], strides = [1, 1]} : vector<16x49xf32> to vector<16x1xf32>
    %408 = vector.broadcast %407 : vector<16x1xf32> to vector<16x128xf32>
    %409 = arith.mulf %320, %408 : vector<16x128xf32>
    %410 = arith.addf %406, %409 : vector<16x128xf32>
    %411 = vector.extract_strided_slice %292 {offsets = [0, 20], sizes = [16, 1], strides = [1, 1]} : vector<16x49xf32> to vector<16x1xf32>
    %412 = vector.broadcast %411 : vector<16x1xf32> to vector<16x128xf32>
    %413 = arith.mulf %324, %412 : vector<16x128xf32>
    %414 = arith.addf %410, %413 : vector<16x128xf32>
    %c8_i32_61 = arith.constant 8 : i32
    %415 = tpu.dynamic_rotate %414 by %c8_i32_61 dim 1 : vector<16x128xf32>, i32 -> vector<16x128xf32>
    %c10_62 = arith.constant 10 : index
    %c0_63 = arith.constant 0 : index
    %416 = vector.load %arg5[%c10_62, %c0_63] : memref<18x128xf32, #tpu.memory_space<vmem>>, vector<1x128xf32>
    %417 = vector.broadcast %416 : vector<1x128xf32> to vector<16x128xf32>
    %418 = arith.mulf %415, %417 : vector<16x128xf32>
    %419 = arith.addf %387, %418 : vector<16x128xf32>
    %420 = vector.extract_strided_slice %292 {offsets = [0, 21], sizes = [16, 1], strides = [1, 1]} : vector<16x49xf32> to vector<16x1xf32>
    %421 = vector.broadcast %420 : vector<16x1xf32> to vector<16x128xf32>
    %422 = arith.mulf %301, %421 : vector<16x128xf32>
    %423 = vector.extract_strided_slice %292 {offsets = [0, 22], sizes = [16, 1], strides = [1, 1]} : vector<16x49xf32> to vector<16x1xf32>
    %424 = vector.broadcast %423 : vector<16x1xf32> to vector<16x128xf32>
    %425 = arith.mulf %305, %424 : vector<16x128xf32>
    %426 = arith.addf %422, %425 : vector<16x128xf32>
    %427 = vector.extract_strided_slice %292 {offsets = [0, 23], sizes = [16, 1], strides = [1, 1]} : vector<16x49xf32> to vector<16x1xf32>
    %428 = vector.broadcast %427 : vector<16x1xf32> to vector<16x128xf32>
    %429 = arith.mulf %309, %428 : vector<16x128xf32>
    %430 = arith.addf %426, %429 : vector<16x128xf32>
    %431 = vector.extract_strided_slice %292 {offsets = [0, 24], sizes = [16, 1], strides = [1, 1]} : vector<16x49xf32> to vector<16x1xf32>
    %432 = vector.broadcast %431 : vector<16x1xf32> to vector<16x128xf32>
    %433 = arith.mulf %312, %432 : vector<16x128xf32>
    %434 = arith.addf %430, %433 : vector<16x128xf32>
    %435 = vector.extract_strided_slice %292 {offsets = [0, 25], sizes = [16, 1], strides = [1, 1]} : vector<16x49xf32> to vector<16x1xf32>
    %436 = vector.broadcast %435 : vector<16x1xf32> to vector<16x128xf32>
    %437 = arith.mulf %316, %436 : vector<16x128xf32>
    %438 = arith.addf %434, %437 : vector<16x128xf32>
    %439 = vector.extract_strided_slice %292 {offsets = [0, 26], sizes = [16, 1], strides = [1, 1]} : vector<16x49xf32> to vector<16x1xf32>
    %440 = vector.broadcast %439 : vector<16x1xf32> to vector<16x128xf32>
    %441 = arith.mulf %320, %440 : vector<16x128xf32>
    %442 = arith.addf %438, %441 : vector<16x128xf32>
    %443 = vector.extract_strided_slice %292 {offsets = [0, 27], sizes = [16, 1], strides = [1, 1]} : vector<16x49xf32> to vector<16x1xf32>
    %444 = vector.broadcast %443 : vector<16x1xf32> to vector<16x128xf32>
    %445 = arith.mulf %324, %444 : vector<16x128xf32>
    %446 = arith.addf %442, %445 : vector<16x128xf32>
    %c11_64 = arith.constant 11 : index
    %c0_65 = arith.constant 0 : index
    %447 = vector.load %arg5[%c11_64, %c0_65] : memref<18x128xf32, #tpu.memory_space<vmem>>, vector<1x128xf32>
    %448 = vector.broadcast %447 : vector<1x128xf32> to vector<16x128xf32>
    %449 = arith.mulf %446, %448 : vector<16x128xf32>
    %450 = arith.addf %419, %449 : vector<16x128xf32>
    %451 = vector.extract_strided_slice %292 {offsets = [0, 28], sizes = [16, 1], strides = [1, 1]} : vector<16x49xf32> to vector<16x1xf32>
    %452 = vector.broadcast %451 : vector<16x1xf32> to vector<16x128xf32>
    %453 = arith.mulf %301, %452 : vector<16x128xf32>
    %454 = vector.extract_strided_slice %292 {offsets = [0, 29], sizes = [16, 1], strides = [1, 1]} : vector<16x49xf32> to vector<16x1xf32>
    %455 = vector.broadcast %454 : vector<16x1xf32> to vector<16x128xf32>
    %456 = arith.mulf %305, %455 : vector<16x128xf32>
    %457 = arith.addf %453, %456 : vector<16x128xf32>
    %458 = vector.extract_strided_slice %292 {offsets = [0, 30], sizes = [16, 1], strides = [1, 1]} : vector<16x49xf32> to vector<16x1xf32>
    %459 = vector.broadcast %458 : vector<16x1xf32> to vector<16x128xf32>
    %460 = arith.mulf %309, %459 : vector<16x128xf32>
    %461 = arith.addf %457, %460 : vector<16x128xf32>
    %462 = vector.extract_strided_slice %292 {offsets = [0, 31], sizes = [16, 1], strides = [1, 1]} : vector<16x49xf32> to vector<16x1xf32>
    %463 = vector.broadcast %462 : vector<16x1xf32> to vector<16x128xf32>
    %464 = arith.mulf %312, %463 : vector<16x128xf32>
    %465 = arith.addf %461, %464 : vector<16x128xf32>
    %466 = vector.extract_strided_slice %292 {offsets = [0, 32], sizes = [16, 1], strides = [1, 1]} : vector<16x49xf32> to vector<16x1xf32>
    %467 = vector.broadcast %466 : vector<16x1xf32> to vector<16x128xf32>
    %468 = arith.mulf %316, %467 : vector<16x128xf32>
    %469 = arith.addf %465, %468 : vector<16x128xf32>
    %470 = vector.extract_strided_slice %292 {offsets = [0, 33], sizes = [16, 1], strides = [1, 1]} : vector<16x49xf32> to vector<16x1xf32>
    %471 = vector.broadcast %470 : vector<16x1xf32> to vector<16x128xf32>
    %472 = arith.mulf %320, %471 : vector<16x128xf32>
    %473 = arith.addf %469, %472 : vector<16x128xf32>
    %474 = vector.extract_strided_slice %292 {offsets = [0, 34], sizes = [16, 1], strides = [1, 1]} : vector<16x49xf32> to vector<16x1xf32>
    %475 = vector.broadcast %474 : vector<16x1xf32> to vector<16x128xf32>
    %476 = arith.mulf %324, %475 : vector<16x128xf32>
    %477 = arith.addf %473, %476 : vector<16x128xf32>
    %c120_i32_66 = arith.constant 120 : i32
    %478 = tpu.dynamic_rotate %477 by %c120_i32_66 dim 1 : vector<16x128xf32>, i32 -> vector<16x128xf32>
    %c12_67 = arith.constant 12 : index
    %c0_68 = arith.constant 0 : index
    %479 = vector.load %arg5[%c12_67, %c0_68] : memref<18x128xf32, #tpu.memory_space<vmem>>, vector<1x128xf32>
    %480 = vector.broadcast %479 : vector<1x128xf32> to vector<16x128xf32>
    %481 = arith.mulf %478, %480 : vector<16x128xf32>
    %482 = arith.addf %450, %481 : vector<16x128xf32>
    %483 = vector.extract_strided_slice %292 {offsets = [0, 35], sizes = [16, 1], strides = [1, 1]} : vector<16x49xf32> to vector<16x1xf32>
    %484 = vector.broadcast %483 : vector<16x1xf32> to vector<16x128xf32>
    %485 = arith.mulf %301, %484 : vector<16x128xf32>
    %486 = vector.extract_strided_slice %292 {offsets = [0, 36], sizes = [16, 1], strides = [1, 1]} : vector<16x49xf32> to vector<16x1xf32>
    %487 = vector.broadcast %486 : vector<16x1xf32> to vector<16x128xf32>
    %488 = arith.mulf %305, %487 : vector<16x128xf32>
    %489 = arith.addf %485, %488 : vector<16x128xf32>
    %490 = vector.extract_strided_slice %292 {offsets = [0, 37], sizes = [16, 1], strides = [1, 1]} : vector<16x49xf32> to vector<16x1xf32>
    %491 = vector.broadcast %490 : vector<16x1xf32> to vector<16x128xf32>
    %492 = arith.mulf %309, %491 : vector<16x128xf32>
    %493 = arith.addf %489, %492 : vector<16x128xf32>
    %494 = vector.extract_strided_slice %292 {offsets = [0, 38], sizes = [16, 1], strides = [1, 1]} : vector<16x49xf32> to vector<16x1xf32>
    %495 = vector.broadcast %494 : vector<16x1xf32> to vector<16x128xf32>
    %496 = arith.mulf %312, %495 : vector<16x128xf32>
    %497 = arith.addf %493, %496 : vector<16x128xf32>
    %498 = vector.extract_strided_slice %292 {offsets = [0, 39], sizes = [16, 1], strides = [1, 1]} : vector<16x49xf32> to vector<16x1xf32>
    %499 = vector.broadcast %498 : vector<16x1xf32> to vector<16x128xf32>
    %500 = arith.mulf %316, %499 : vector<16x128xf32>
    %501 = arith.addf %497, %500 : vector<16x128xf32>
    %502 = vector.extract_strided_slice %292 {offsets = [0, 40], sizes = [16, 1], strides = [1, 1]} : vector<16x49xf32> to vector<16x1xf32>
    %503 = vector.broadcast %502 : vector<16x1xf32> to vector<16x128xf32>
    %504 = arith.mulf %320, %503 : vector<16x128xf32>
    %505 = arith.addf %501, %504 : vector<16x128xf32>
    %506 = vector.extract_strided_slice %292 {offsets = [0, 41], sizes = [16, 1], strides = [1, 1]} : vector<16x49xf32> to vector<16x1xf32>
    %507 = vector.broadcast %506 : vector<16x1xf32> to vector<16x128xf32>
    %508 = arith.mulf %324, %507 : vector<16x128xf32>
    %509 = arith.addf %505, %508 : vector<16x128xf32>
    %c112_i32_69 = arith.constant 112 : i32
    %510 = tpu.dynamic_rotate %509 by %c112_i32_69 dim 1 : vector<16x128xf32>, i32 -> vector<16x128xf32>
    %c13_70 = arith.constant 13 : index
    %c0_71 = arith.constant 0 : index
    %511 = vector.load %arg5[%c13_70, %c0_71] : memref<18x128xf32, #tpu.memory_space<vmem>>, vector<1x128xf32>
    %512 = vector.broadcast %511 : vector<1x128xf32> to vector<16x128xf32>
    %513 = arith.mulf %510, %512 : vector<16x128xf32>
    %514 = arith.addf %482, %513 : vector<16x128xf32>
    %515 = vector.extract_strided_slice %292 {offsets = [0, 42], sizes = [16, 1], strides = [1, 1]} : vector<16x49xf32> to vector<16x1xf32>
    %516 = vector.broadcast %515 : vector<16x1xf32> to vector<16x128xf32>
    %517 = arith.mulf %301, %516 : vector<16x128xf32>
    %518 = vector.extract_strided_slice %292 {offsets = [0, 43], sizes = [16, 1], strides = [1, 1]} : vector<16x49xf32> to vector<16x1xf32>
    %519 = vector.broadcast %518 : vector<16x1xf32> to vector<16x128xf32>
    %520 = arith.mulf %305, %519 : vector<16x128xf32>
    %521 = arith.addf %517, %520 : vector<16x128xf32>
    %522 = vector.extract_strided_slice %292 {offsets = [0, 44], sizes = [16, 1], strides = [1, 1]} : vector<16x49xf32> to vector<16x1xf32>
    %523 = vector.broadcast %522 : vector<16x1xf32> to vector<16x128xf32>
    %524 = arith.mulf %309, %523 : vector<16x128xf32>
    %525 = arith.addf %521, %524 : vector<16x128xf32>
    %526 = vector.extract_strided_slice %292 {offsets = [0, 45], sizes = [16, 1], strides = [1, 1]} : vector<16x49xf32> to vector<16x1xf32>
    %527 = vector.broadcast %526 : vector<16x1xf32> to vector<16x128xf32>
    %528 = arith.mulf %312, %527 : vector<16x128xf32>
    %529 = arith.addf %525, %528 : vector<16x128xf32>
    %530 = vector.extract_strided_slice %292 {offsets = [0, 46], sizes = [16, 1], strides = [1, 1]} : vector<16x49xf32> to vector<16x1xf32>
    %531 = vector.broadcast %530 : vector<16x1xf32> to vector<16x128xf32>
    %532 = arith.mulf %316, %531 : vector<16x128xf32>
    %533 = arith.addf %529, %532 : vector<16x128xf32>
    %534 = vector.extract_strided_slice %292 {offsets = [0, 47], sizes = [16, 1], strides = [1, 1]} : vector<16x49xf32> to vector<16x1xf32>
    %535 = vector.broadcast %534 : vector<16x1xf32> to vector<16x128xf32>
    %536 = arith.mulf %320, %535 : vector<16x128xf32>
    %537 = arith.addf %533, %536 : vector<16x128xf32>
    %538 = vector.extract_strided_slice %292 {offsets = [0, 48], sizes = [16, 1], strides = [1, 1]} : vector<16x49xf32> to vector<16x1xf32>
    %539 = vector.broadcast %538 : vector<16x1xf32> to vector<16x128xf32>
    %540 = arith.mulf %324, %539 : vector<16x128xf32>
    %541 = arith.addf %537, %540 : vector<16x128xf32>
    %c104_i32_72 = arith.constant 104 : i32
    %542 = tpu.dynamic_rotate %541 by %c104_i32_72 dim 1 : vector<16x128xf32>, i32 -> vector<16x128xf32>
    %c14_73 = arith.constant 14 : index
    %c0_74 = arith.constant 0 : index
    %543 = vector.load %arg5[%c14_73, %c0_74] : memref<18x128xf32, #tpu.memory_space<vmem>>, vector<1x128xf32>
    %544 = vector.broadcast %543 : vector<1x128xf32> to vector<16x128xf32>
    %545 = arith.mulf %542, %544 : vector<16x128xf32>
    %546 = arith.addf %514, %545 : vector<16x128xf32>
    %547 = vector.broadcast %14 : vector<16x1xf32> to vector<16x128xf32>
    %548 = arith.mulf %546, %547 : vector<16x128xf32>
    %549 = vector.broadcast %15 : vector<16x1xf32> to vector<16x128xf32>
    %550 = arith.addf %548, %549 : vector<16x128xf32>
    %cst_75 = arith.constant 0.000000e+00 : f32
    %551 = vector.broadcast %cst_75 : f32 to vector<16x128xf32>
    %552 = arith.maximumf %550, %551 : vector<16x128xf32>
    %cst_76 = arith.constant dense<0.000000e+00> : vector<16x2xf32>
    %553 = tpu.matmul %552, %4, %cst_76 {dimension_numbers = #tpu.dot_dimension_numbers<[1], [0], [0], [1], [0, 0, 1, 1], [], []>} : vector<16x128xf32>, vector<128x2xf32>, vector<16x2xf32> -> vector<16x2xf32>
    %c0_77 = arith.constant 0 : index
    %c0_78 = arith.constant 0 : index
    %554 = vector.load %arg4[%c0_77, %c0_78] : memref<9x17xf32, #tpu.memory_space<vmem>>, vector<9x17xf32>
    %555 = vector.extract_strided_slice %554 {offsets = [0, 0], sizes = [9, 16], strides = [1, 1]} : vector<9x17xf32> to vector<9x16xf32>
    %cst_79 = arith.constant dense<0.000000e+00> : vector<9x2xf32>
    %556 = tpu.matmul %555, %553, %cst_79 {dimension_numbers = #tpu.dot_dimension_numbers<[1], [0], [0], [1], [0, 0, 1, 1], [], []>} : vector<9x16xf32>, vector<16x2xf32>, vector<9x2xf32> -> vector<9x2xf32>
    %557 = vector.extract_strided_slice %554 {offsets = [0, 16], sizes = [9, 1], strides = [1, 1]} : vector<9x17xf32> to vector<9x1xf32>
    %558 = vector.broadcast %557 : vector<9x1xf32> to vector<9x2xf32>
    %559 = arith.addf %556, %558 : vector<9x2xf32>
    %cst_80 = arith.constant dense<0xFF800000> : vector<2xf32>
    %560 = vector.multi_reduction <maximumf>, %559, %cst_80 [0] : vector<9x2xf32> to vector<2xf32>
    %561 = vector.shape_cast %560 : vector<2xf32> to vector<1x2xf32>
    %562 = vector.broadcast %561 : vector<1x2xf32> to vector<9x2xf32>
    %563 = arith.subf %559, %562 : vector<9x2xf32>
    %564 = math.exp %563 : vector<9x2xf32>
    %cst_81 = arith.constant dense<0.000000e+00> : vector<2xf32>
    %565 = vector.multi_reduction <add>, %564, %cst_81 [0] : vector<9x2xf32> to vector<2xf32>
    %566 = vector.shape_cast %565 : vector<2xf32> to vector<1x2xf32>
    %567 = math.log %566 : vector<1x2xf32>
    %568 = vector.broadcast %567 : vector<1x2xf32> to vector<9x2xf32>
    %569 = arith.subf %563, %568 : vector<9x2xf32>
    %c0_82 = arith.constant 0 : index
    %c0_83 = arith.constant 0 : index
    %570 = vector.load %arg7[%c0_82, %c0_83] : memref<9x2xf32, #tpu.memory_space<vmem>>, vector<9x2xf32>
    tpu.vector_store %arg7[%c0_82, %c0_83], %569 {strides = array<i32>} : memref<9x2xf32, #tpu.memory_space<vmem>>, vector<9x2xf32>,
    return
  }
}

</mosaic_0001>

<bundles_post_ra>
// kernel: msca_msdc_forward.1
= control target key start
LH: loop header
LB: loop body
LE: loop exit
PB: predicated region body
PF: predicated region fallthrough
CT: control target
= control target key end

     0   :  { %vm133_vm0 = vcmask 130048   ;;  %vm235_vm1 = vcmask 1041408   ;;  %vm228_vm2 = vcmask 15360   ;;  %v4493_v34 = vmov 1   ;;  %s2777_s12 = smov 1   ;;  %s2778_s13 = smov 3   ;;  %s4419_s6 = inlined_call_operand.vmem [shape: f32[128,2], index: 6, kind: input, shape index: {}]   ;;  %s4420_s0 = inlined_call_operand.vmem [shape: f32[16,128], index: 0, kind: input, shape index: {}]   ;;  %s4421_s1 = inlined_call_operand.vmem [shape: f32[64,16], index: 1, kind: input, shape index: {}]   ;;  %s4422_s5 = inlined_call_operand.vmem [shape: f32[18,128], index: 5, kind: input, shape index: {}]   ;;  %s4423_s2 = inlined_call_operand.vmem [shape: f32[16,8], index: 2, kind: input, shape index: {}]   ;;  %s4424_s3 = inlined_call_operand.vmem [shape: f32[32,49], index: 3, kind: input, shape index: {}]   ;;  %s4425_s4 = inlined_call_operand.vmem [shape: f32[9,17], index: 4, kind: input, shape index: {}]   ;;  %s4426_s7 = inlined_call_operand.vmem [shape: f32[9,2], index: 7, kind: output, shape index: {}]  }
   0x1   :  { %v57_v0 = vld [vmem:[%s4419_s6 + $0x78] sm:$0xff]  ;;  %v56_v1 = vld [vmem:[%s4419_s6 + $0x70] sm:$0xff]  ;;  %v55_v2 = vld [vmem:[%s4419_s6 + $0x68] sm:$0xff]  ;;  %2494 = vset.pattern.permute.xlu1 %v4493_v34  ;;  %v4497_v36 = vmov 0   ;;  %v4495_v39 = vmov 8   ;;  %v4491_v40 = vmov 7  }
   0x2   :  { %2322 = vmatprep.subr.mxu0 %v57_v0  ;;  %v54_v3 = vld [vmem:[%s4419_s6 + $0x60] sm:$0xff]  ;;  %v53_v5 = vld [vmem:[%s4419_s6 + $0x58] sm:$0xff]  ;;  %v52_v6 = vld [vmem:[%s4419_s6 + $0x50] sm:$0xff]  ;;  %2493 = vset.pattern.permute.xlu0 %v4497_v36  ;;  %v4507_v42 = vmov 2   ;;  %v4487_v43 = vmov 15   ;;  %v4489_v44 = vmov 9  }
   0x3   :  { %2323 = vmatpush3.msra.mxu0 %v57_v0  ;;  %v2851_v4 = vld [vmem:[%s4420_s0] sm:$0xff]  ;;  %v51_v7 = vld [vmem:[%s4419_s6 + $0x48] sm:$0xff]  ;;  %v49_v9 = vld [vmem:[%s4419_s6 + $0x38] sm:$0xff]  ;;  %v4483_v45 = vmov 14   ;;  %v4485_v46 = vmov 10   ;;  %v4501_v47 = vmov 3  }
   0x4   :  { %2324 = vmatprep.subr.mxu0 %v56_v1  ;;  %2354 = vmatprep.mubr.f32.mxu0 %v2851_v4  ;;  %v50_v8 = vld [vmem:[%s4419_s6 + $0x40] sm:$0xff]  ;;  %v48_v10 = vld [vmem:[%s4419_s6 + $0x30] sm:$0xff]  ;;  %v47_v11 = vld [vmem:[%s4419_s6 + $0x28] sm:$0xff]  ;;  %v4499_v48 = vmov 4   ;;  %v4473_v49 = vmov 16   ;;  %v4452_v50 = vmov 5  }
   0x5   :  { %2325 = vmatpush3.msra.mxu0 %v56_v1  ;;  %v46_v12 = vld [vmem:[%s4419_s6 + $0x20] sm:$0xff]  ;;  %v45_v13 = vld [vmem:[%s4419_s6 + $0x18] sm:$0xff]  ;;  %v44_v14 = vld [vmem:[%s4419_s6 + $0x10] sm:$0xff]  ;;  %v4463_v51 = vmov 17   ;;  %v4479_v52 = vmov 11   ;;  %v4481_v53 = vmov 28  }
   0x6   :  { %2326 = vmatprep.subr.mxu0 %v55_v2  ;;  %v43_v15 = vld [vmem:[%s4419_s6 + $0x8] sm:$0xff]  ;;  %v42_v16 = vld [vmem:[%s4419_s6] sm:$0xff]  ;;  %v227_v22 = vld [vmem:[%s4422_s5 + $0x10] sm:$0x3]  ;;  %v4469_v54 = vmov 12   ;;  %v4475_v55 = vmov 18  }
   0x7   :  { %2327 = vmatpush3.msra.mxu0 %v55_v2  ;;  %v2893_v17 = vld [vmem:[%s4420_s0 + $0x8] sm:$0xff]  ;;  %v28_v18 = vld [vmem:[%s4421_s1] sm:$0xff]  ;;  %v30_v33 = vld [vmem:[%s4421_s1 + $0x10] sm:$0xff]  ;;  %v4448_v56 = vmov 30   ;;  %v4467_v57 = vmov 35   ;;  %v4457_v63 = vmov 13  }
   0x8   :  { %2328 = vmatprep.subr.mxu0 %v54_v3  ;;  %v29_v21 = vld [vmem:[%s4421_s1 + $0x8] sm:$0xff]  ;;  %2373 = vmatprep.mubr.msk.f32.mxu1 %vm133_vm0, %v30_v33  ;;  %v36_v37 = vld [vmem:[%s4423_s2] sm:$0xff]  ;;  %v31_v62 = vld [vmem:[%s4421_s1 + $0x18] sm:$0xff]  ;;  %v4440_v0 = vmov 19   ;;  %v4471_v2 = vmov 36   ;;  %s2779_s14 = smov 125  }
   0x9   :  { %2329 = vmatpush3.msra.mxu0 %v54_v3  ;;  %v2917_v35 = vld [vmem:[%s4423_s2 + $0x8] sm:$0xff]  ;;  %v2939_v41 = vld [vmem:[%s4424_s3] sm:$0xff]  ;;  %v4477_v3 = vmov 29   ;;  %s2780_s15 = smov 2   ;;  %s2781_s16 = smov 127   ;;  %vm2200_vm3 = vcmask 8192  }
   0xa   :  { %2330 = vmatprep.subr.mxu0 %v53_v5  ;;  %4532 = vst [vmem:[#allocation2_spill] sm:$0xff] %v2917_v35  ;;  %414 = vperm.xlu1 %2494, %v2917_v35   ;;  %v2928_v38 = vld [vmem:[%s4424_s3 + $0x8] sm:$0xff]  ;;  %v32_v1 = vld [vmem:[%s4421_s1 + $0x20] sm:$0xff]  ;;  %s2782_s17 = smov 126   ;;  %s2790_s8 = smov 8  }
   0xb   :  { %2331 = vmatpush3.msra.mxu0 %v53_v5  ;;  %323 = vperm.xlu0 %2493, %v2917_v35   ;;  %v4459_v5 = vmov 43   ;;  %s2791_s9 = smov 24   ;;  %s2792_s10 = smov 120  }
   0xc   :  { %2332 = vmatprep.subr.mxu0 %v52_v6  ;;  %s2793_s11 = smov 16   ;;  %s2794_s0 = smov 104  }
   0xd   :  { %2333 = vmatpush3.msra.mxu0 %v52_v6  ;;  %v4461_v6 = vmov 31   ;;  %s2795_s18 = smov 112  }
   0xe   :  { %2334 = vmatprep.subr.mxu0 %v51_v7  ;;  %410 = vperm.xlu1 %2494, %v36_v37  }
   0xf   :  { %2335 = vmatpush3.msra.mxu0 %v51_v7  ;;  %318 = vperm.xlu0 %2493, %v36_v37   ;;  %v4465_v7 = vmov 6   ;;  %v33_v37 = vld [vmem:[%s4421_s1 + $0x28] sm:$0xff] }
  0x10   :  { %2336 = vmatprep.subr.mxu0 %v50_v8 }
  0x11   :  { %2337 = vmatpush3.msra.mxu0 %v50_v8  ;;  %v4454_v8 = vmov 32  }
  0x12   :  { %2338 = vmatprep.subr.mxu0 %v49_v9  ;;  %590 = vperm.xlu1 %2494, %v2928_v38  }
  0x13   :  { %2339 = vmatpush3.msra.mxu0 %v49_v9  ;;  %580 = vperm.xlu0 %2493, %v2928_v38   ;;  %v4436_v9 = vmov 20  }
  0x14   :  { %2340 = vmatprep.subr.mxu0 %v48_v10 }
  0x15   :  { %2341 = vmatpush3.msra.mxu0 %v48_v10  ;;  %v4434_v10 = vmov 38  }
  0x16   :  { %2342 = vmatprep.subr.mxu0 %v47_v11  ;;  %2496 = vset.pattern.permute.xlu1 %v4495_v39 }
  0x17   :  { %2343 = vmatpush3.msra.mxu0 %v47_v11  ;;  %2495 = vset.pattern.permute.xlu0 %v4491_v40  ;;  %v4455_v11 = vmov 37  }
  0x18   :  { %2344 = vmatprep.subr.mxu0 %v46_v12  ;;  %683 = vperm.xlu1 %2496, %v2928_v38  }
  0x19   :  { %2345 = vmatpush3.msra.mxu0 %v46_v12  ;;  %673 = vperm.xlu0 %2495, %v2928_v38   ;;  %v4450_v12 = vmov 44  }
  0x1a   :  { %2346 = vmatprep.subr.mxu0 %v45_v13 }
  0x1b   :  { %2347 = vmatpush3.msra.mxu0 %v45_v13  ;;  %v4432_v13 = vmov 33  }
  0x1c   :  { %2348 = vmatprep.subr.mxu0 %v44_v14  ;;  %2497 = vset.pattern.permute.xlu1 %v4497_v36 }
  0x1d   :  { %2349 = vmatpush3.msra.mxu0 %v44_v14  ;;  %2498 = vset.pattern.permute.xlu0 %v4493_v34  ;;  %v4447_v14 = vmov 39   ;;  %v4505_v34 = vmov 23  }
  0x1e   :  { %2350 = vmatprep.subr.mxu0 %v43_v15  ;;  %575 = vperm.xlu1 %2497, %v2939_v41  }
  0x1f   :  { %2351 = vmatpush3.msra.mxu0 %v43_v15  ;;  %586 = vperm.xlu0 %2498, %v2939_v41   ;;  %v4446_v15 = vmov 34  }
  0x20   :  { %2352 = vmatprep.subr.mxu0 %v42_v16 }
  0x21   :  { %2353 = vmatpush3.msra.mxu0 %v42_v16  ;;  %v4430_v16 = vmov 45  }
  0x22   :  { %2355 = vmatmul.mubr.f32.vlgmr.msra.gmra.mxu0 %v2893_v17  ;;  %2499 = vset.pattern.permute.xlu1 %v4507_v42 }
  0x23   :  { %2361 = vmatprep.mubr.msk.f32.mxu0 %vm133_vm0, %v28_v18  ;;  %2501 = vset.pattern.permute.xlu0 %v4495_v39  ;;  %v4427_v18 = vmov 47  }
  0x24   :  { %602 = vperm.xlu1 %2499, %v2928_v38   ;;  %679 = vperm.xlu0 %2501, %v2939_v41  }
  0x28   :  { %2500 = vset.pattern.permute.xlu1 %v4491_v40  ;;  %2504 = vset.pattern.permute.xlu0 %v4487_v43  ;;  %v4503_v40 = vmov 22  }
  0x29   :  { %669 = vperm.xlu1 %2500, %v2939_v41   ;;  %778 = vperm.xlu0 %2504, %v2928_v38  }
  0x2d   :  { %2502 = vset.pattern.permute.xlu1 %v4489_v44  ;;  %2505 = vset.pattern.permute.xlu0 %v4507_v42 }
  0x2e   :  { %695 = vperm.xlu1 %2502, %v2928_v38   ;;  %598 = vperm.xlu0 %2505, %v2939_v41  }
  0x32   :  { %2503 = vset.pattern.permute.xlu1 %v4483_v45  ;;  %2508 = vset.pattern.permute.xlu0 %v4485_v46 }
  0x33   :  { %768 = vperm.xlu1 %2503, %v2928_v38   ;;  %707 = vperm.xlu0 %2508, %v2928_v38  }
  0x37   :  { %2506 = vset.pattern.permute.xlu1 %v4501_v47  ;;  %2512 = vset.pattern.permute.xlu0 %v4499_v48 }
  0x38   :  { %614 = vperm.xlu1 %2506, %v2928_v38   ;;  %626 = vperm.xlu0 %2512, %v2928_v38  }
  0x3c   :  { %2507 = vset.pattern.permute.xlu1 %v4489_v44  ;;  %2513 = vset.pattern.permute.xlu0 %v4473_v49 }
  0x3d   :  { %691 = vperm.xlu1 %2507, %v2939_v41   ;;  %790 = vperm.xlu0 %2513, %v2928_v38  }
  0x41   :  { %2509 = vset.pattern.permute.xlu1 %v4483_v45  ;;  %786 = vperm.xlu0 %2513, %v2939_v41  }
  0x42   :  { %764 = vperm.xlu1 %2509, %v2939_v41  }
  0x45   :  { %2519 = vset.pattern.permute.xlu0 %v4452_v50 }
  0x46   :  { %2510 = vset.pattern.permute.xlu1 %v4487_v43  ;;  %638 = vperm.xlu0 %2519, %v2928_v38  }
  0x47   :  { %774 = vperm.xlu1 %2510, %v2939_v41  }
  0x4a   :  { %2522 = vset.pattern.permute.xlu0 %v4463_v51 }
  0x4b   :  { %2511 = vset.pattern.permute.xlu1 %v4501_v47  ;;  %798 = vperm.xlu0 %2522, %v2939_v41  }
  0x4c   :  { %610 = vperm.xlu1 %2511, %v2939_v41  }
  0x4f   :  { %2523 = vset.pattern.permute.xlu0 %v4477_v3 }
  0x50   :  { %2514 = vset.pattern.permute.xlu1 %v4485_v46  ;;  %964 = vperm.xlu0 %2523, %v2928_v38  }
  0x51   :  { %703 = vperm.xlu1 %2514, %v2939_v41  }
  0x54   :  { %960 = vperm.xlu0 %2523, %v2939_v41  }
  0x55   :  { %2515 = vset.pattern.permute.xlu1 %v4479_v52 }
  0x56   :  { %719 = vperm.xlu1 %2515, %v2928_v38  }
  0x58   :  { %2528 = vset.pattern.permute.xlu0 %v4471_v2 }
  0x59   :  { %1059 = vperm.xlu0 %2528, %v2928_v38  }
  0x5a   :  { %2516 = vset.pattern.permute.xlu1 %v4463_v51 }
  0x5b   :  { %802 = vperm.xlu1 %2516, %v2928_v38  }
  0x5d   :  { %2532 = vset.pattern.permute.xlu0 %v4475_v55 }
  0x5e   :  { %810 = vperm.xlu0 %2532, %v2939_v41  }
  0x5f   :  { %2517 = vset.pattern.permute.xlu1 %v4481_v53 }
  0x60   :  { %954 = vperm.xlu1 %2517, %v2928_v38  }
  0x62   :  { %2535 = vset.pattern.permute.xlu0 %v4461_v6 }
  0x63   :  { %988 = vperm.xlu0 %2535, %v2928_v38  }
  0x64   :  { %2518 = vset.pattern.permute.xlu1 %v4499_v48  ;;  %v4509_v48 = vmov 24  }
  0x65   :  { %622 = vperm.xlu1 %2518, %v2939_v41  }
  0x67   :  { %2536 = vset.pattern.permute.xlu0 %v4465_v7 }
  0x68   :  { %650 = vperm.xlu0 %2536, %v2928_v38  }
  0x69   :  { %2520 = vset.pattern.permute.xlu1 %v4479_v52 }
  0x6a   :  { %715 = vperm.xlu1 %2520, %v2939_v41  }
  0x6c   :  { %646 = vperm.xlu0 %2536, %v2939_v41  }
  0x6e   :  { %2521 = vset.pattern.permute.xlu1 %v4469_v54 }
  0x6f   :  { %731 = vperm.xlu1 %2521, %v2928_v38  }
  0x70   :  { %2543 = vset.pattern.permute.xlu0 %v4436_v9 }
  0x71   :  { %838 = vperm.xlu0 %2543, %v2928_v38  }
  0x73   :  { %2524 = vset.pattern.permute.xlu1 %v4475_v55 }
  0x74   :  { %814 = vperm.xlu1 %2524, %v2928_v38  }
  0x75   :  { %2544 = vset.pattern.permute.xlu0 %v4455_v11 }
  0x76   :  { %1071 = vperm.xlu0 %2544, %v2928_v38  }
  0x78   :  { %2525 = vset.pattern.permute.xlu1 %v4481_v53 }
  0x79   :  { %950 = vperm.xlu1 %2525, %v2939_v41  }
  0x7a   :  { %1067 = vperm.xlu0 %2544, %v2939_v41  }
  0x7d   :  { %2526 = vset.pattern.permute.xlu1 %v4448_v56 }
  0x7e   :  { %976 = vperm.xlu1 %2526, %v2928_v38   ;;  %2549 = vset.pattern.permute.xlu0 %v4459_v5 }
  0x7f   :  { %1150 = vperm.xlu0 %2549, %v2939_v41  }
  0x82   :  { %2527 = vset.pattern.permute.xlu1 %v4467_v57 }
  0x83   :  { %1049 = vperm.xlu1 %2527, %v2928_v38   ;;  %2552 = vset.pattern.permute.xlu0 %v4454_v8 }
  0x84   :  { %996 = vperm.xlu0 %2552, %v2939_v41  }
  0x87   :  { %2529 = vset.pattern.permute.xlu1 %v4452_v50 }
  0x88   :  { %634 = vperm.xlu1 %2529, %v2939_v41   ;;  %2555 = vset.pattern.permute.xlu0 %v4447_v14 }
  0x89   :  { %1095 = vperm.xlu0 %2555, %v2928_v38  }
  0x8c   :  { %2530 = vset.pattern.permute.xlu1 %v4469_v54 }
  0x8d   :  { %727 = vperm.xlu1 %2530, %v2939_v41   ;;  %2559 = vset.pattern.permute.xlu0 %v4446_v15 }
  0x8e   :  { %1024 = vperm.xlu0 %2559, %v2928_v38  }
  0x91   :  { %2531 = vset.pattern.permute.xlu1 %v4457_v63 }
  0x92   :  { %743 = vperm.xlu1 %2531, %v2928_v38   ;;  %2562 = vset.pattern.permute.xlu0 %v4430_v16 }
  0x93   :  { %1174 = vperm.xlu0 %2562, %v2939_v41  }
  0x96   :  { %2533 = vset.pattern.permute.xlu1 %v4440_v0 }
  0x97   :  { %826 = vperm.xlu1 %2533, %v2928_v38  }
  0x9b   :  { %2534 = vset.pattern.permute.xlu1 %v4448_v56 }
  0x9c   :  { %972 = vperm.xlu1 %2534, %v2939_v41  }
  0xa0   :  { %2537 = vset.pattern.permute.xlu1 %v4467_v57 }
  0xa1   :  { %1045 = vperm.xlu1 %2537, %v2939_v41  }
  0xa5   :  { %2538 = vset.pattern.permute.xlu1 %v4471_v2 }
  0xa6   :  { %1055 = vperm.xlu1 %2538, %v2939_v41  }
  0xe2   :  { %v2356_v19 = vpop.f32.mrf.mxu0 }
  0xe3   :  { %2357 = vmatprep.subr.mxu0 %v2356_v19 }
  0xe4   :  { %v124_v20 = vpop.f32.mrf.mxu0  ;;  %2358 = vmatpush3.msra.mxu0 %v2356_v19  ;;  %v3091_v19 = vpop.permute.xlu1 %414 }
  0xe5   :  { %2359 = vmatprep.subr.mxu0 %v124_v20 }
  0xe6   :  { %2360 = vmatpush3.msra.mxu0 %v124_v20  ;;  %v4444_v20 = vmov 46  }
  0xe7   :  { %2362 = vmatmul.mubr.msk.f32.vlgmr.msra.gmra.mxu0 %vm133_vm0, %v29_v21  ;;  %2364 = vmatprep.subr.msk.mxu0 %vm235_vm1, %v227_v22 }
  0xe8   :  { %2365 = vmatpush3.msk.msra.mxu0 %vm235_vm1, %v227_v22  ;;  %v3095_v21 = vpop.permute.xlu1 %410 }
  0xec   :  { %v3099_v22 = vpop.permute.xlu1 %590 }
 0x1a7   :  { %v2363_v23 = vpop.f32.mrf.mxu0 }
 0x1a8   :  { %v2237_v24 = vmul.f32 -1.442695, %v2363_v23  ;;  %v4442_v23 = vmov 41  }
 0x1a9   :  { %v206_v25 = vpop.f32.mrf.mxu0 }
 0x1aa   :  { %2687 = vpow2.f32 %v2237_v24  ;;  %v2236_v26 = vmul.f32 -1.442695, %v206_v25  ;;  %v3103_v24 = vpop.permute.xlu1 %683 }
 0x1ac   :  { %2689 = vpow2.f32 %v2236_v26  ;;  %v324_v26 = vpop.permute.xlu0 %323 }
 0x1ae   :  { %v3108_v25 = vpop.permute.xlu1 %575 }
 0x1af   :  { %4533 = vst [vmem:[#allocation3_spill] sm:$0xff] %v3108_v25 }
 0x1b7   :  { %v2688_v27 = vpop.eup %2687 }
 0x1b8   :  { %v222_v29 = vadd.f32 1.0, %v2688_v27 }
 0x1b9   :  { %v2690_v28 = vpop.eup %2689 }
 0x1ba   :  { %v221_v30 = vadd.f32 1.0, %v2690_v28 }
 0x1bc   :  { %2691 = vrcp.f32 %v221_v30 }
 0x1bd   :  { %2693 = vrcp.f32 %v222_v29  ;;  %v319_v29 = vpop.permute.xlu0 %318 }
 0x1c9   :  { %v2692_v31 = vpop.eup %2691 }
 0x1ca   :  { %v2694_v32 = vpop.eup %2693  ;;  %2366 = vmatprep.mubr.msk.f32.mxu0 %vm228_vm2, %v2692_v31 }
 0x1cb   :  { %2367 = vmatmul.mubr.msk.f32.vlgmr.msra.gmra.mxu0 %vm228_vm2, %v2694_v32 }
 0x28b   :  { %v2368_v58 = vpop.f32.mrf.mxu0 }
 0x28c   :  { %v315_v59 = vmul.f32 %v2368_v58, %v2893_v17  ;;  %v4428_v17 = vmov 40   ;;  %v3116_v58 = vpop.permute.xlu1 %602 }
 0x28d   :  { %v305_v60 = vpop.f32.mrf.mxu0  ;;  %2565 = vset.pattern.permute.xlu0 %v4428_v17 }
 0x28e   :  { %v314_v61 = vmul.f32 %v305_v60, %v2851_v4  ;;  %2369 = vmatprep.subr.mxu1 %v315_v59  ;;  %v4438_v4 = vmov 42   ;;  %1103 = vperm.xlu0 %2565, %v2939_v41  }
 0x28f   :  { %2370 = vmatpush3.msra.mxu1 %v315_v59  ;;  %2539 = vset.pattern.permute.xlu1 %v4438_v4 }
 0x290   :  { %2371 = vmatprep.subr.mxu1 %v314_v61  ;;  %1144 = vperm.xlu1 %2539, %v2928_v38   ;;  %v3118_v59 = vpop.permute.xlu1 %669 }
 0x291   :  { %2372 = vmatpush3.msra.mxu1 %v314_v61  ;;  %4534 = vst [vmem:[#allocation4_spill] sm:$0xff] %v3118_v59 }
 0x292   :  { %2374 = vmatmul.mubr.msk.f32.vlgmr.msra.gmra.mxu1 %vm133_vm0, %v31_v62  ;;  %2568 = vset.pattern.permute.xlu0 %v4427_v18 }
 0x293   :  { %2380 = vmatprep.mubr.msk.f32.mxu1 %vm133_vm0, %v32_v1  ;;  %1202 = vperm.xlu0 %2568, %v2928_v38  }
 0x294   :  { %2540 = vset.pattern.permute.xlu1 %v4459_v5  ;;  %v3120_v60 = vpop.permute.xlu1 %695 }
 0x295   :  { %1154 = vperm.xlu1 %2540, %v2928_v38  }
 0x298   :  { %v3122_v61 = vpop.permute.xlu1 %768 }
 0x299   :  { %2541 = vset.pattern.permute.xlu1 %v4457_v63 }
 0x29a   :  { %739 = vperm.xlu1 %2541, %v2939_v41  }
 0x29c   :  { %v3124_v62 = vpop.permute.xlu1 %614 }
 0x29e   :  { %2542 = vset.pattern.permute.xlu1 %v4440_v0  ;;  %v3159_v0 = vpop.permute.xlu0 %580 }
 0x29f   :  { %822 = vperm.xlu1 %2542, %v2939_v41  }
 0x2a0   :  { %v3126_v1 = vpop.permute.xlu1 %691 }
 0x2a1   :  { %4535 = vst [vmem:[#allocation5_spill] sm:$0xff] %v3126_v1 }
 0x2a3   :  { %2545 = vset.pattern.permute.xlu1 %v4461_v6 }
 0x2a4   :  { %984 = vperm.xlu1 %2545, %v2939_v41  }
 0x2a8   :  { %2546 = vset.pattern.permute.xlu1 %v4454_v8 }
 0x2a9   :  { %1000 = vperm.xlu1 %2546, %v2928_v38  }
 0x2ad   :  { %2547 = vset.pattern.permute.xlu1 %v4434_v10 }
 0x2ae   :  { %1083 = vperm.xlu1 %2547, %v2928_v38  }
 0x2b2   :  { %2548 = vset.pattern.permute.xlu1 %v4438_v4 }
 0x2b3   :  { %1140 = vperm.xlu1 %2548, %v2939_v41  }
 0x2b7   :  { %2550 = vset.pattern.permute.xlu1 %v4450_v12 }
 0x2b8   :  { %1166 = vperm.xlu1 %2550, %v2928_v38  }
 0x2bc   :  { %2551 = vset.pattern.permute.xlu1 %v4436_v9 }
 0x2bd   :  { %834 = vperm.xlu1 %2551, %v2939_v41  }
 0x2c1   :  { %2553 = vset.pattern.permute.xlu1 %v4432_v13 }
 0x2c2   :  { %1012 = vperm.xlu1 %2553, %v2928_v38  }
 0x2c6   :  { %2554 = vset.pattern.permute.xlu1 %v4434_v10 }
 0x2c7   :  { %1079 = vperm.xlu1 %2554, %v2939_v41  }
 0x2cb   :  { %2556 = vset.pattern.permute.xlu1 %v4450_v12 }
 0x2cc   :  { %1162 = vperm.xlu1 %2556, %v2939_v41  }
 0x2d0   :  { %2557 = vset.pattern.permute.xlu1 %v4430_v16 }
 0x2d1   :  { %1178 = vperm.xlu1 %2557, %v2928_v38  }
 0x2d5   :  { %2558 = vset.pattern.permute.xlu1 %v4432_v13 }
 0x2d6   :  { %1008 = vperm.xlu1 %2558, %v2939_v41  }
 0x2da   :  { %2560 = vset.pattern.permute.xlu1 %v4447_v14 }
 0x2db   :  { %1091 = vperm.xlu1 %2560, %v2939_v41  }
 0x2df   :  { %2561 = vset.pattern.permute.xlu1 %v4428_v17 }
 0x2e0   :  { %1107 = vperm.xlu1 %2561, %v2928_v38  }
 0x2e4   :  { %2563 = vset.pattern.permute.xlu1 %v4444_v20 }
 0x2e5   :  { %1190 = vperm.xlu1 %2563, %v2928_v38  }
 0x2e9   :  { %2564 = vset.pattern.permute.xlu1 %v4446_v15 }
 0x2ea   :  { %1020 = vperm.xlu1 %2564, %v2939_v41  }
 0x2ee   :  { %2566 = vset.pattern.permute.xlu1 %v4442_v23 }
 0x2ef   :  { %1119 = vperm.xlu1 %2566, %v2928_v38  }
 0x2f3   :  { %2567 = vset.pattern.permute.xlu1 %v4444_v20 }
 0x2f4   :  { %1186 = vperm.xlu1 %2567, %v2939_v41  }
 0x2f8   :  { %2569 = vset.pattern.permute.xlu1 %v4442_v23  ;;  %v3161_v23 = vpop.permute.xlu0 %673 }
 0x2f9   :  { %1115 = vperm.xlu1 %2569, %v2939_v41  }
 0x2fc   :  { %v3165_v15 = vpop.permute.xlu0 %586 }
 0x2fd   :  { %2570 = vset.pattern.permute.xlu1 %v4427_v18  ;;  %4545 = vst [vmem:[#allocation15_spill] sm:$0xff] %v3165_v15 }
 0x300   :  { %v3169_v56 = vpop.permute.xlu0 %679 }
 0x304   :  { %v3173_v50 = vpop.permute.xlu0 %778 }
 0x308   :  { %v3177_v11 = vpop.permute.xlu0 %598 }
 0x309   :  { %4547 = vst [vmem:[#allocation17_spill] sm:$0xff] %v3177_v11 }
 0x30c   :  { %v3181_v5 = vpop.permute.xlu0 %707 }
 0x310   :  { %v3185_v51 = vpop.permute.xlu0 %626 }
 0x314   :  { %v3189_v57 = vpop.permute.xlu0 %790 }
 0x318   :  { %v3193_v49 = vpop.permute.xlu0 %786 }
 0x319   :  { %4550 = vst [vmem:[#allocation20_spill] sm:$0xff] %v3193_v49 }
 0x31c   :  { %v3204_v45 = vpop.permute.xlu0 %638 }
 0x352   :  { %v2375_v27 = vpop.f32.mrf.mxu1 }
 0x353   :  { %v404_v28 = vadd.f32 %v2375_v27, %v324_v26  ;;  %v3128_v26 = vpop.permute.xlu1 %764 }
 0x354   :  { %v398_v30 = vpop.f32.mrf.mxu1  ;;  %4536 = vst [vmem:[#allocation6_spill] sm:$0xff] %v3128_v26 }
 0x355   :  { %v408_v31 = vmax.f32 %v404_v28, 0.0  ;;  %v399_v32 = vadd.f32 %v398_v30, %v319_v29 }
 0x357   :  { %v407_v33 = vmax.f32 %v399_v32, 0.0  ;;  %2376 = vmatprep.subr.mxu1 %v408_v31  ;;  %v3130_v27 = vpop.permute.xlu1 %774 }
 0x358   :  { %2377 = vmatpush3.msra.mxu1 %v408_v31  ;;  %4537 = vst [vmem:[#allocation7_spill] sm:$0xff] %v3130_v27  ;;  %v4511_v31 = vmov 48  }
 0x359   :  { %2378 = vmatprep.subr.mxu1 %v407_v33  ;;  %2571 = vset.pattern.permute.xlu0 %v4511_v31 }
 0x35a   :  { %2379 = vmatpush3.msra.mxu1 %v407_v33 }
 0x35b   :  { %2381 = vmatmul.mubr.msk.f32.vlgmr.msra.gmra.mxu1 %vm133_vm0, %v33_v37  ;;  %v3132_v28 = vpop.permute.xlu1 %610 }
 0x35c   :  { %4538 = vst [vmem:[#allocation8_spill] sm:$0xff] %v3132_v28 }
 0x35f   :  { %v3134_v29 = vpop.permute.xlu1 %703 }
 0x360   :  { %4539 = vst [vmem:[#allocation9_spill] sm:$0xff] %v3134_v29 }
 0x363   :  { %v3136_v30 = vpop.permute.xlu1 %719 }
 0x367   :  { %v3139_v32 = vpop.permute.xlu1 %802 }
 0x36b   :  { %v3141_v33 = vpop.permute.xlu1 %954 }
 0x36f   :  { %v3143_v37 = vpop.permute.xlu1 %622 }
 0x370   :  { %4540 = vst [vmem:[#allocation10_spill] sm:$0xff] %v3143_v37 }
 0x373   :  { %v3145_v18 = vpop.permute.xlu1 %715 }
 0x374   :  { %4541 = vst [vmem:[#allocation11_spill] sm:$0xff] %v3145_v18  ;;  %v4566_v18 = vmov 24  }
 0x377   :  { %v3147_v17 = vpop.permute.xlu1 %731 }
 0x37b   :  { %v3149_v16 = vpop.permute.xlu1 %814 }
 0x37f   :  { %v3151_v13 = vpop.permute.xlu1 %950 }
 0x380   :  { %4542 = vst [vmem:[#allocation12_spill] sm:$0xff] %v3151_v13 }
 0x383   :  { %v3153_v10 = vpop.permute.xlu1 %976 }
 0x387   :  { %v3155_v9 = vpop.permute.xlu1 %1049 }
 0x38b   :  { %v3157_v4 = vpop.permute.xlu1 %634 }
 0x38c   :  { %4543 = vst [vmem:[#allocation13_spill] sm:$0xff] %v3157_v4  ;;  %v4560_v4 = vmov 2  }
 0x38f   :  { %v3163_v20 = vpop.permute.xlu1 %727 }
 0x390   :  { %4544 = vst [vmem:[#allocation14_spill] sm:$0xff] %v3163_v20  ;;  %v4561_v20 = vmov 22  }
 0x393   :  { %v3167_v14 = vpop.permute.xlu1 %743 }
 0x397   :  { %v3171_v12 = vpop.permute.xlu1 %826 }
 0x39b   :  { %v3175_v8 = vpop.permute.xlu1 %972 }
 0x39c   :  { %4546 = vst [vmem:[#allocation16_spill] sm:$0xff] %v3175_v8 }
 0x39f   :  { %v3179_v63 = vpop.permute.xlu1 %1045 }
 0x3a0   :  { %4548 = vst [vmem:[#allocation18_spill] sm:$0xff] %v3179_v63  ;;  %v4572_v63 = vmov 27  }
 0x3a3   :  { %v3183_v6 = vpop.permute.xlu1 %1055 }
 0x3a4   :  { %4549 = vst [vmem:[#allocation19_spill] sm:$0xff] %v3183_v6  ;;  %v3363_v6 = vld [vmem:[%s4422_s5 + $0x1] ss:$0 sm:$0xff] }
 0x3a7   :  { %v3187_v7 = vpop.permute.xlu1 %1144 }
 0x3ab   :  { %v3191_v54 = vpop.permute.xlu1 %1154 }
 0x3af   :  { %v3195_v55 = vpop.permute.xlu1 %739 }
 0x3b0   :  { %4551 = vst [vmem:[#allocation21_spill] sm:$0xff] %v3195_v55  ;;  %v4515_v55 = vmov 27  }
 0x3b3   :  { %v3206_v46 = vpop.permute.xlu1 %822 }
 0x3b4   :  { %4552 = vst [vmem:[#allocation22_spill] sm:$0xff] %v3206_v46  ;;  %v4517_v46 = vmov 21  }
 0x41b   :  { %v2382_v2 = vpop.f32.mrf.mxu1 }
 0x41c   :  { %v495_v3 = vadd.f32 %v2382_v2, %v3091_v19  ;;  %v3217_v19 = vpop.permute.xlu1 %984 }
 0x41d   :  { %v489_v53 = vpop.f32.mrf.mxu1  ;;  %4555 = vst [vmem:[#allocation25_spill] sm:$0xff] %v3217_v19 }
 0x41e   :  { %v3198_v52 = vmax.f32 %v495_v3, 0.0  ;;  %v490_v43 = vadd.f32 %v489_v53, %v3095_v21  ;;  %v3215_v3 = vpop.permute.xlu0 %798 }
 0x41f   :  { %4554 = vst [vmem:[#allocation24_spill] sm:$0xff] %v3215_v3 }
 0x420   :  { %524 = vrot.lane.b32.xlu0 %v3198_v52, %s2777_s12  ;;  %502 = vrot.lane.b32.xlu1 %v3198_v52, %s2778_s13  ;;  %v3213_v2 = vmax.f32 %v490_v43, 0.0  ;;  %v3229_v53 = vpop.permute.xlu1 %1000 }
 0x422   :  { %4553 = vst [vmem:[#allocation23_spill] sm:$0xff] %v3213_v2  ;;  %v3227_v43 = vpop.permute.xlu0 %964 }
 0x424   :  { %564 = vrot.lane.b32.xlu0 %v3198_v52, %s2779_s14  ;;  %513 = vrot.lane.b32.xlu1 %v3198_v52, %s2780_s15  ;;  %v3236_v44 = vpop.permute.xlu1 %1083 }
 0x426   :  { %v3234_v21 = vpop.permute.xlu0 %960 }
 0x427   :  { %4556 = vst [vmem:[#allocation26_spill] sm:$0xff] %v3234_v21 }
 0x428   :  { %542 = vrot.lane.b32.xlu1 %v3198_v52, %s2781_s16  ;;  %540 = vrot.lane.b32.xlu0 %v3213_v2, %s2781_s16  ;;  %v3247_v36 = vpop.permute.xlu1 %1140 }
 0x429   :  { %4557 = vst [vmem:[#allocation27_spill] sm:$0xff] %v3247_v36 }
 0x42a   :  { %v3245_v39 = vpop.permute.xlu0 %1059 }
 0x42c   :  { %553 = vrot.lane.b32.xlu1 %v3198_v52, %s2782_s17  ;;  %562 = vrot.lane.b32.xlu0 %v3213_v2, %s2779_s14 }
 0x42e   :  { %v3253_v47 = vpop.permute.xlu0 %810 }
 0x42f   :  { %4558 = vst [vmem:[#allocation28_spill] sm:$0xff] %v3253_v47 }
 0x430   :  { %1214 = vperm.xlu0 %2571, %v2928_v38   ;;  %500 = vrot.lane.b32.xlu1 %v3213_v2, %s2778_s13 }
 0x432   :  { %v3263_v42 = vpop.permute.xlu0 %988 }
 0x434   :  { %2574 = vset.pattern.permute.xlu0 %v4503_v40  ;;  %511 = vrot.lane.b32.xlu1 %v3213_v2, %s2780_s15  ;;  %v3255_v40 = vpop.permute.xlu1 %1166 }
 0x435   :  { %873 = vperm.xlu0 %2574, %v2928_v38  }
 0x438   :  { %522 = vrot.lane.b32.xlu1 %v3213_v2, %s2777_s12 }
 0x439   :  { %2576 = vset.pattern.permute.xlu0 %v4505_v34  ;;  %v4513_v34 = vmov 26  }
 0x43a   :  { %885 = vperm.xlu0 %2576, %v2928_v38  }
 0x43c   :  { %1198 = vperm.xlu1 %2570, %v2939_v41  }
 0x43e   :  { %2579 = vset.pattern.permute.xlu0 %v4509_v48  ;;  %v3265_v48 = vpop.permute.xlu1 %834 }
 0x43f   :  { %893 = vperm.xlu0 %2579, %v2939_v41   ;;  %4559 = vst [vmem:[#allocation29_spill] sm:$0xff] %v3265_v48 }
 0x440   :  { %551 = vrot.lane.b32.xlu1 %v3213_v2, %s2782_s17 }
 0x441   :  { %2572 = vset.pattern.permute.xlu1 %v4511_v31  ;;  %v3271_v31 = vpop.permute.xlu0 %650 }
 0x443   :  { %2581 = vset.pattern.permute.xlu0 %v4513_v34  ;;  %v3273_v34 = vpop.permute.xlu1 %1012 }
 0x444   :  { %921 = vperm.xlu0 %2581, %v2928_v38   ;;  %1210 = vperm.xlu1 %2572, %v2939_v41  }
 0x445   :  { %v3278_v48 = vpop.permute.xlu0 %646 }
 0x446   :  { %4562 = vst [vmem:[#allocation30_spill] sm:$0xff] %v3278_v48  ;;  %v4519_v48 = vmov 25  }
 0x448   :  { %2584 = vset.pattern.permute.xlu0 %v4515_v55  ;;  %2573 = vset.pattern.permute.xlu1 %v4517_v46  ;;  %v3280_v55 = vpop.permute.xlu1 %1079  ;;  %v4564_v46 = vmov 23  }
 0x449   :  { %929 = vperm.xlu0 %2584, %v2939_v41   ;;  %863 = vperm.xlu1 %2573, %v2928_v38   ;;  %4563 = vst [vmem:[#allocation31_spill] sm:$0xff] %v3280_v55  ;;  %v3285_v47 = vpop.permute.xlu0 %838 }
 0x44c   :  { %v3287_v37 = vpop.permute.xlu1 %1162 }
 0x44d   :  { %859 = vperm.xlu1 %2573, %v2939_v41   ;;  %2586 = vset.pattern.permute.xlu0 %v4560_v4  ;;  %4565 = vst [vmem:[#allocation32_spill] sm:$0xff] %v3287_v37  ;;  %v3291_v36 = vpop.permute.xlu0 %1071  ;;  %v4570_v37 = vmov 26  }
 0x451   :  { %2575 = vset.pattern.permute.xlu1 %v4561_v20  ;;  %v1179_v20 = vpop.permute.xlu1 %1178 }
 0x452   :  { %869 = vperm.xlu1 %2575, %v2939_v41  }
 0x455   :  { %v3295_v55 = vpop.permute.xlu1 %1008 }
 0x456   :  { %2577 = vset.pattern.permute.xlu1 %v4564_v46  ;;  %4567 = vst [vmem:[#allocation33_spill] sm:$0xff] %v3295_v55  ;;  %v3297_v46 = vpop.permute.xlu0 %1067 }
 0x457   :  { %881 = vperm.xlu1 %2577, %v2939_v41   ;;  %4568 = vst [vmem:[#allocation34_spill] sm:$0xff] %v3297_v46 }
 0x459   :  { %v3300_v19 = vpop.permute.xlu1 %1091 }
 0x45a   :  { %4569 = vst [vmem:[#allocation35_spill] sm:$0xff] %v3300_v19 }
 0x45b   :  { %2578 = vset.pattern.permute.xlu1 %v4566_v18  ;;  %v3303_v18 = vpop.permute.xlu0 %1150 }
 0x45c   :  { %897 = vperm.xlu1 %2578, %v2928_v38   ;;  %4571 = vst [vmem:[#allocation36_spill] sm:$0xff] %v3303_v18 }
 0x45d   :  { %v3307_v3 = vpop.permute.xlu1 %1107 }
 0x460   :  { %2580 = vset.pattern.permute.xlu1 %v4519_v48  ;;  %v3310_v48 = vpop.permute.xlu0 %996 }
 0x461   :  { %909 = vperm.xlu1 %2580, %v2928_v38   ;;  %4573 = vst [vmem:[#allocation37_spill] sm:$0xff] %v3310_v48  ;;  %v3313_v55 = vpop.permute.xlu1 %1190 }
 0x464   :  { %v3316_v19 = vpop.permute.xlu0 %1095 }
 0x465   :  { %905 = vperm.xlu1 %2580, %v2939_v41   ;;  %v3319_v46 = vpop.permute.xlu1 %1020 }
 0x466   :  { %4575 = vst [vmem:[#allocation38_spill] sm:$0xff] %v3319_v46  ;;  %v3343_v46 = vld [vmem:[%s4422_s5 + $0x2] ss:$0 sm:$0xff] }
 0x469   :  { %2582 = vset.pattern.permute.xlu1 %v4570_v37  ;;  %v4574_v37 = vmov 3  }
 0x46a   :  { %917 = vperm.xlu1 %2582, %v2939_v41   ;;  %v3321_v41 = vpop.permute.xlu0 %1024 }
 0x46e   :  { %2583 = vset.pattern.permute.xlu1 %v4572_v63  ;;  %v3323_v63 = vpop.permute.xlu1 %1119  ;;  %v3325_v18 = vpop.permute.xlu0 %1174 }
 0x46f   :  { %933 = vperm.xlu1 %2583, %v2928_v38   ;;  %4576 = vst [vmem:[#allocation39_spill] sm:$0xff] %v3325_v18 }
 0x472   :  { %v3327_v38 = vpop.permute.xlu1 %1186  ;;  %v3329_v48 = vpop.permute.xlu0 %1103 }
 0x473   :  { %2585 = vset.pattern.permute.xlu1 %v4560_v4  ;;  %4577 = vst [vmem:[#allocation40_spill] sm:$0xff] %v3327_v38  ;;  %4578 = vst [vmem:[#allocation41_spill] sm:$0xff] %v3329_v48  ;;  %v3348_v38 = vld [vmem:[%s4422_s5] ss:$0 sm:$0xff] }
 0x474   :  { %1239 = vperm.xlu1 %2585, %v2917_v35  }
 0x476   :  { %v3331_v4 = vpop.permute.xlu1 %1115  ;;  %v3333_v8 = vpop.permute.xlu0 %1202 }
 0x477   :  { %4579 = vst [vmem:[#allocation42_spill] sm:$0xff] %v3331_v4 }
 0x478   :  { %2587 = vset.pattern.permute.xlu1 %v4574_v37  ;;  %v3338_v37 = vld [vmem:[%s4422_s5 + $0x3] ss:$0 sm:$0xff] }
 0x479   :  { %4580 = vst [vmem:[#allocation43_spill] sm:$0xff] %v3338_v37  ;;  %v3352_v4 = vmul.f32 %v3338_v37, %v3198_v52 }
 0x47b   :  { %v1182_v21 = vmul.f32 %v1179_v20, %v3352_v4  ;;  %v806_v52 = vmul.f32 %v3139_v32, %v3352_v4  ;;  %v992_v32 = vmul.f32 %v3263_v42, %v3352_v4 }
 0x492   :  { %v525_v48 = vpop.permute.xlu0 %524  ;;  %v503_v18 = vpop.permute.xlu1 %502 }
 0x493   :  { %v3355_v13 = vmul.f32 %v3343_v46, %v525_v48  ;;  %v3358_v28 = vmul.f32 %v3348_v38, %v503_v18  ;;  %v618_v48 = vmul.f32 %v3124_v62, %v3352_v4  ;;  %v3376_v18 = vld [vmem:[%s4422_s5 + $0x4] ss:$0 sm:$0xff] }
 0x495   :  { %v772_v26 = vmul.f32 %v3122_v61, %v3358_v28  ;;  %v794_v20 = vmul.f32 %v3189_v57, %v3355_v13  ;;  %v958_v11 = vmul.f32 %v3141_v33, %v3358_v28  ;;  %v1148_v61 = vmul.f32 %v3187_v7, %v3358_v28 }
 0x496   :  { %v514_v29 = vpop.permute.xlu1 %513  ;;  %v677_v42 = vmul.f32 %v3161_v23, %v3358_v28  ;;  %v565_v33 = vpop.permute.xlu0 %564  ;;  %v3415_v23 = vld [vmem:[%s4422_s5 + $0x5] ss:$0 sm:$0xff]  ;;  %v980_v2 = vmul.f32 %v3153_v10, %v3355_v13  ;;  %v699_v10 = vmul.f32 %v3120_v60, %v3355_v13 }
 0x497   :  { %v3367_v49 = vmul.f32 %v3363_v6, %v514_v29  ;;  %v584_v29 = vmul.f32 %v3159_v0, %v3358_v28 }
 0x499   :  { %v782_v62 = vmul.f32 %v3173_v50, %v3367_v49  ;;  %v594_v35 = vmul.f32 %v3099_v22, %v3367_v49  ;;  %v968_v57 = vmul.f32 %v3227_v43, %v3367_v49  ;;  %v1158_v0 = vmul.f32 %v3191_v54, %v3367_v49  ;;  %v3405_v22 = vld [vmem:[%s4422_s5 + $0x6] ss:$0 sm:$0xff] }
 0x49a   :  { %v543_v25 = vpop.permute.xlu1 %542  ;;  %v687_v50 = vmul.f32 %v3103_v24, %v3367_v49  ;;  %v606_v54 = vmul.f32 %v3116_v58, %v3355_v13  ;;  %v3424_v58 = vmul.f32 %v3405_v22, %v565_v33 }
 0x49b   :  { %v3408_v7 = vmul.f32 %v3376_v18, %v543_v25  ;;  %v784_v37 = vadd.f32 %v782_v62, %v772_v26  ;;  %v596_v43 = vadd.f32 %v594_v35, %v584_v29  ;;  %v970_v24 = vadd.f32 %v968_v57, %v958_v11 }
 0x49c   :  { %v1160_v27 = vadd.f32 %v1158_v0, %v1148_v61  ;;  %v689_v1 = vadd.f32 %v687_v50, %v677_v42  ;;  %v1170_v25 = vmul.f32 %v3255_v40, %v3355_v13  ;;  %v711_v35 = vmul.f32 %v3181_v5, %v3352_v4  ;;  %v3437_v42 = vpop.permute.xlu0 %540 }
 0x49d   :  { %v796_v59 = vadd.f32 %v794_v20, %v784_v37  ;;  %v608_v15 = vadd.f32 %v606_v54, %v596_v43  ;;  %v818_v11 = vmul.f32 %v3149_v16, %v3408_v7  ;;  %v982_v29 = vadd.f32 %v980_v2, %v970_v24 }
 0x49e   :  { %v554_v26 = vpop.permute.xlu1 %553  ;;  %v630_v40 = vmul.f32 %v3185_v51, %v3408_v7  ;;  %v1004_v61 = vmul.f32 %v3229_v53, %v3408_v7  ;;  %v1172_v57 = vadd.f32 %v1170_v25, %v1160_v27  ;;  %v701_v0 = vadd.f32 %v699_v10, %v689_v1 }
 0x49f   :  { %v3431_v37 = vmul.f32 %v3415_v23, %v554_v26  ;;  %v808_v20 = vadd.f32 %v806_v52, %v796_v59  ;;  %v620_v62 = vadd.f32 %v618_v48, %v608_v15  ;;  %v994_v5 = vadd.f32 %v992_v32, %v982_v29 }
 0x4a0   :  { %v842_v51 = vmul.f32 %v3285_v47, %v3424_v58  ;;  %v654_v52 = vmul.f32 %v3271_v31, %v3424_v58  ;;  %v713_v32 = vadd.f32 %v711_v35, %v701_v0  ;;  %v1184_v50 = vadd.f32 %v1182_v21, %v1172_v57  ;;  %v3461_v21 = vpop.permute.xlu0 %562 }
 0x4a1   :  { %v820_v16 = vadd.f32 %v818_v11, %v808_v20  ;;  %v830_v60 = vmul.f32 %v3171_v12, %v3431_v37  ;;  %v632_v2 = vadd.f32 %v630_v40, %v620_v62  ;;  %v642_v59 = vmul.f32 %v3204_v45, %v3431_v37 }
 0x4a2   :  { %v501_v15 = vpop.permute.xlu1 %500  ;;  %v1006_v53 = vadd.f32 %v1004_v61, %v994_v5  ;;  %v1016_v1 = vmul.f32 %v3273_v34, %v3431_v37  ;;  %v723_v12 = vmul.f32 %v3136_v30, %v3408_v7  ;;  %v735_v45 = vmul.f32 %v3147_v17, %v3431_v37 }
 0x4a3   :  { %v832_v27 = vadd.f32 %v830_v60, %v820_v16  ;;  %v644_v48 = vadd.f32 %v642_v59, %v632_v2  ;;  %v1053_v47 = vmul.f32 %v3155_v9, %v3358_v28  ;;  %v1063_v31 = vmul.f32 %v3245_v39, %v3367_v49  ;;  %v4581_v2 = vld [vmem:[#allocation15_spill] sm:$0xff] }
 0x4a4   :  { %v1018_v54 = vadd.f32 %v1016_v1, %v1006_v53  ;;  %v725_v34 = vadd.f32 %v723_v12, %v713_v32  ;;  %v1194_v25 = vmul.f32 %v3313_v55, %v3408_v7  ;;  %v1075_v30 = vmul.f32 %v3291_v36, %v3355_v13  ;;  %v4585_v53 = vld [vmem:[#allocation23_spill] sm:$0xff]  ;;  %v4588_v32 = vld [vmem:[#allocation17_spill] sm:$0xff] }
 0x4a5   :  { %v844_v33 = vadd.f32 %v842_v51, %v832_v27  ;;  %v656_v43 = vadd.f32 %v654_v52, %v644_v48  ;;  %v1065_v35 = vadd.f32 %v1063_v31, %v1053_v47  ;;  %v1028_v39 = vmul.f32 %v3321_v41, %v3424_v58  ;;  %v4586_v1 = vld [vmem:[#allocation43_spill] sm:$0xff]  ;;  %v4590_v47 = vld [vmem:[#allocation6_spill] sm:$0xff] }
 0x4a6   :  { %v512_v24 = vpop.permute.xlu1 %511  ;;  %v737_v9 = vadd.f32 %v735_v45, %v725_v34  ;;  %v747_v17 = vmul.f32 %v3167_v14, %v3424_v58  ;;  %v1196_v55 = vadd.f32 %v1194_v25, %v1184_v50  ;;  %v1206_v26 = vmul.f32 %v3333_v8, %v3431_v37  ;;  %v4589_v50 = vld [vmem:[#allocation2_spill] sm:$0xff] }
 0x4a7   :  { %847 = vrot.lane.b32.xlu0 %v844_v33, %s2790_s8  ;;  %659 = vrot.lane.b32.xlu1 %v656_v43, %s2791_s9  ;;  %v1077_v36 = vadd.f32 %v1075_v30, %v1065_v35  ;;  %v1087_v11 = vmul.f32 %v3236_v44, %v3352_v4  ;;  %v1030_v29 = vadd.f32 %v1028_v39, %v1018_v54  ;;  %v4591_v33 = vld [vmem:[#allocation20_spill] sm:$0xff]  ;;  %v4592_v25 = vld [vmem:[#allocation26_spill] sm:$0xff] }
 0x4a8   :  { %v749_v10 = vadd.f32 %v747_v17, %v737_v9  ;;  %v1099_v62 = vmul.f32 %v3316_v19, %v3408_v7  ;;  %v1111_v41 = vmul.f32 %v3307_v3, %v3431_v37  ;;  %v3480_v8 = vmul.f32 %v3363_v6, %v512_v24  ;;  %v4593_v9 = vld [vmem:[#allocation9_spill] sm:$0xff] }
 0x4a9   :  { %v1089_v20 = vadd.f32 %v1087_v11, %v1077_v36  ;;  %v1208_v44 = vadd.f32 %v1206_v26, %v1196_v55  ;;  %v3484_v19 = vmul.f32 %v3348_v38, %v501_v15  ;;  %v1123_v16 = vmul.f32 %v3323_v63, %v3424_v58  ;;  %v4583_v15 = vld [vmem:[#allocation5_spill] sm:$0xff]  ;;  %v4584_v63 = vld [vmem:[#allocation7_spill] sm:$0xff]  ;;  %v4595_v11 = vld [vmem:[#allocation8_spill] sm:$0xff] }
 0x4aa   :  { %v523_v40 = vpop.permute.xlu1 %522  ;;  %v686_v6 = vmul.f32 %v3169_v56, %v3480_v8  ;;  %v593_v59 = vmul.f32 %v4581_v2, %v3480_v8  ;;  %v781_v52 = vmul.f32 %v4584_v63, %v3480_v8  ;;  %v3505_v27 = vmul.f32 %v4586_v1, %v4585_v53  ;;  %v4587_v56 = vld [vmem:[#allocation3_spill] sm:$0xff] }
 0x4ab   :  { %1033 = vrot.lane.b32.xlu0 %v1030_v29, %s2792_s10  ;;  %v1215_v14 = vpop.permute.xlu0 %1214  ;;  %752 = vrot.lane.b32.xlu1 %v749_v10, %s2793_s11  ;;  %v1101_v61 = vadd.f32 %v1099_v62, %v1089_v20  ;;  %v3487_v3 = vmul.f32 %v3343_v46, %v523_v40  ;;  %v4582_v46 = vld [vmem:[#allocation4_spill] sm:$0xff]  ;;  %v583_v48 = vmul.f32 %v4587_v56, %v3484_v19  ;;  %v4594_v26 = vld [vmem:[#allocation19_spill] sm:$0xff] }
 0x4ac   :  { %v1218_v5 = vmul.f32 %v1215_v14, %v3424_v58  ;;  %v676_v38 = vmul.f32 %v4582_v46, %v3484_v19  ;;  %v771_v31 = vmul.f32 %v4590_v47, %v3484_v19  ;;  %v967_v35 = vmul.f32 %v4592_v25, %v3480_v8  ;;  %v4596_v20 = vld [vmem:[#allocation12_spill] sm:$0xff]  ;;  %v4605_v63 = vld [vmem:[#allocation11_spill] sm:$0xff] }
 0x4ad   :  { %v1113_v0 = vadd.f32 %v1111_v41, %v1101_v61  ;;  %v698_v51 = vmul.f32 %v4583_v15, %v3487_v3  ;;  %v605_v12 = vmul.f32 %v4588_v32, %v3487_v3  ;;  %v793_v43 = vmul.f32 %v4591_v33, %v3487_v3  ;;  %v4597_v41 = vld [vmem:[#allocation16_spill] sm:$0xff]  ;;  %v4601_v61 = vld [vmem:[#allocation18_spill] sm:$0xff]  ;;  %v4604_v15 = vld [vmem:[#allocation27_spill] sm:$0xff] }
 0x4ae   :  { %v1220_v57 = vadd.f32 %v1218_v5, %v1208_v44  ;;  %v688_v45 = vadd.f32 %v686_v6, %v676_v38  ;;  %v595_v54 = vadd.f32 %v593_v59, %v583_v48  ;;  %v783_v24 = vadd.f32 %v781_v52, %v771_v31  ;;  %v4599_v40 = vld [vmem:[#allocation36_spill] sm:$0xff]  ;;  %v4603_v59 = vld [vmem:[#allocation25_spill] sm:$0xff] }
 0x4af   :  { %v1125_v60 = vadd.f32 %v1123_v16, %v1113_v0  ;;  %v3520_v30 = vmul.f32 %v3376_v18, %v3437_v42  ;;  %v710_v17 = vmul.f32 %v4593_v9, %v3505_v27  ;;  %v1062_v36 = vmul.f32 %v4594_v26, %v3480_v8  ;;  %v4600_v44 = vld [vmem:[#allocation24_spill] sm:$0xff]  ;;  %v4602_v0 = vld [vmem:[#allocation34_spill] sm:$0xff] }
 0x4b0   :  { %1223 = vrot.lane.b32.xlu1 %v1220_v57, %s2794_s0  ;;  %v700_v34 = vadd.f32 %v698_v51, %v688_v45  ;;  %v607_v55 = vadd.f32 %v605_v12, %v595_v54  ;;  %v617_v29 = vmul.f32 %v4595_v11, %v3505_v27  ;;  %v795_v10 = vadd.f32 %v793_v43, %v783_v24  ;;  %v4608_v47 = vld [vmem:[#allocation28_spill] sm:$0xff]  ;;  %v874_v43 = vpop.permute.xlu0 %873  ;;  %v4613_v11 = vld [vmem:[#allocation31_spill] sm:$0xff] }
 0x4b1   :  { %1128 = vrot.lane.b32.xlu0 %v1125_v60, %s2795_s18  ;;  %v957_v62 = vmul.f32 %v4596_v20, %v3484_v19  ;;  %v979_v18 = vmul.f32 %v4597_v41, %v3487_v3  ;;  %v4598_v42 = vmov 4   ;;  %v1157_v14 = vmul.f32 %v4599_v40, %v3480_v8 }
 0x4b2   :  { %v805_v5 = vmul.f32 %v4600_v44, %v3505_v27  ;;  %v1052_v57 = vmul.f32 %v4601_v61, %v3484_v19  ;;  %v1074_v16 = vmul.f32 %v4602_v0, %v3487_v3  ;;  %v3545_v60 = vmul.f32 %v3405_v22, %v3461_v21  ;;  %v4606_v22 = vld [vmem:[#allocation32_spill] sm:$0xff]  ;;  %v4615_v44 = vld [vmem:[#allocation30_spill] sm:$0xff] }
 0x4b3   :  { %v712_v6 = vadd.f32 %v710_v17, %v700_v34  ;;  %v969_v2 = vadd.f32 %v967_v35, %v957_v62  ;;  %v991_v46 = vmul.f32 %v4603_v59, %v3505_v27  ;;  %v1147_v51 = vmul.f32 %v4604_v15, %v3484_v19  ;;  %v4609_v34 = vld [vmem:[#allocation14_spill] sm:$0xff]  ;;  %v4618_v15 = vld [vmem:[#allocation35_spill] sm:$0xff] }
 0x4b4   :  { %1249 = vperm.xlu1 %2587, %v4589_v50   ;;  %v722_v52 = vmul.f32 %v4605_v63, %v3520_v30  ;;  %v619_v53 = vadd.f32 %v617_v29, %v607_v55  ;;  %v1064_v1 = vadd.f32 %v1062_v36, %v1052_v57  ;;  %v1169_v21 = vmul.f32 %v4606_v22, %v3487_v3  ;;  %v4607_v50 = vld [vmem:[#allocation10_spill] sm:$0xff]  ;;  %v4612_v55 = vld [vmem:[#allocation21_spill] sm:$0xff] }
 0x4b5   :  { %v807_v48 = vadd.f32 %v805_v5, %v795_v10  ;;  %v981_v32 = vadd.f32 %v979_v18, %v969_v2  ;;  %v1159_v12 = vadd.f32 %v1157_v14, %v1147_v51  ;;  %v629_v45 = vmul.f32 %v4607_v50, %v3520_v30  ;;  %v4611_v35 = vld [vmem:[#allocation22_spill] sm:$0xff]  ;;  %v4614_v18 = vld [vmem:[#allocation39_spill] sm:$0xff]  ;;  %v4617_v2 = vld [vmem:[#allocation33_spill] sm:$0xff] }
 0x4b6   :  { %v817_v31 = vmul.f32 %v4608_v47, %v3520_v30  ;;  %v1076_v33 = vadd.f32 %v1074_v16, %v1064_v1  ;;  %v724_v54 = vadd.f32 %v722_v52, %v712_v6  ;;  %v746_v26 = vmul.f32 %v4612_v55, %v3545_v60  ;;  %v4616_v16 = vld [vmem:[#allocation37_spill] sm:$0xff]  ;;  %v886_v52 = vpop.permute.xlu0 %885 }
 0x4b7   :  { %v3522_v39 = vpop.permute.xlu1 %1198  ;;  %v631_v36 = vadd.f32 %v629_v45, %v619_v53  ;;  %v1086_v29 = vmul.f32 %v4613_v11, %v3505_v27  ;;  %v1171_v10 = vadd.f32 %v1169_v21, %v1159_v12  ;;  %v993_v41 = vadd.f32 %v991_v46, %v981_v32  ;;  %v4619_v51 = vld [vmem:[#allocation41_spill] sm:$0xff]  ;;  %v4621_v45 = vld [vmem:[#allocation40_spill] sm:$0xff] }
 0x4b8   :  { %2589 = vset.pattern.permute.xlu1 %v4598_v42  ;;  %v819_v62 = vadd.f32 %v817_v31, %v807_v48  ;;  %v1181_v40 = vmul.f32 %v4614_v18, %v3505_v27  ;;  %v653_v5 = vmul.f32 %v4615_v44, %v3545_v60  ;;  %v1003_v6 = vmul.f32 %v4616_v16, %v3520_v30  ;;  %v4620_v22 = vld [vmem:[#allocation29_spill] sm:$0xff]  ;;  %v3619_v44 = vld [vmem:[%s4424_s3 + $0x10] sm:$0xff] }
 0x4b9   :  { %v1088_v61 = vadd.f32 %v1086_v29, %v1076_v33  ;;  %v1098_v46 = vmul.f32 %v4618_v15, %v3520_v30  ;;  %v841_v21 = vmul.f32 %v4620_v22, %v3545_v60  ;;  %v877_v32 = vmul.f32 %v874_v43, %v3367_v49  ;;  %v4622_v49 = vld [vmem:[#allocation38_spill] sm:$0xff] }
 0x4ba   :  { %v1183_v53 = vadd.f32 %v1181_v40, %v1171_v10  ;;  %v1005_v48 = vadd.f32 %v1003_v6, %v993_v41  ;;  %v1193_v47 = vmul.f32 %v4621_v45, %v3520_v30  ;;  %v3601_v43 = vld [vmem:[%s4423_s2] sm:$0xff]  ;;  %v4624_v41 = vmov 3  }
 0x4bb   :  { %v552_v38 = vpop.permute.xlu1 %551  ;;  %v1100_v50 = vadd.f32 %v1098_v46, %v1088_v61  ;;  %v2702_v61 = vld [vmem:[%s4423_s2 + $0x8] sm:$0xff]  ;;  %v4631_v45 = vmov 15  }
 0x4bc   :  { %v3554_v56 = vmul.f32 %v3415_v23, %v552_v38  ;;  %v4610_v23 = vld [vmem:[#allocation13_spill] sm:$0xff] }
 0x4be   :  { %v734_v24 = vmul.f32 %v4609_v34, %v3554_v56  ;;  %v641_v25 = vmul.f32 %v4610_v23, %v3554_v56  ;;  %v829_v9 = vmul.f32 %v4611_v35, %v3554_v56  ;;  %v1015_v59 = vmul.f32 %v4617_v2, %v3554_v56 }
 0x4bf   :  { %v1211_v17 = vpop.permute.xlu1 %1210  ;;  %v1110_v63 = vmul.f32 %v4619_v51, %v3554_v56  ;;  %v1205_v31 = vmul.f32 %v3522_v39, %v3554_v56  ;;  %v889_v34 = vmul.f32 %v886_v52, %v3355_v13  ;;  %v4623_v39 = vld [vmem:[#allocation42_spill] sm:$0xff]  ;;  %v4627_v2 = vmov 1  }
 0x4c0   :  { %v736_v20 = vadd.f32 %v734_v24, %v724_v54  ;;  %v643_v14 = vadd.f32 %v641_v25, %v631_v36  ;;  %v831_v0 = vadd.f32 %v829_v9, %v819_v62  ;;  %v1017_v54 = vadd.f32 %v1015_v59, %v1005_v48 }
 0x4c1   :  { %v1112_v23 = vadd.f32 %v1110_v63, %v1100_v50  ;;  %v1195_v25 = vadd.f32 %v1193_v47, %v1183_v53  ;;  %v1122_v9 = vmul.f32 %v4623_v39, %v3545_v60  ;;  %v4628_v63 = vmov 7   ;;  %v2252_v39 = vld [vmem:[%s4422_s5 + $0x8] ss:$0 sm:$0xff] }
 0x4c2   :  { %v748_v57 = vadd.f32 %v746_v26, %v736_v20  ;;  %v655_v38 = vadd.f32 %v653_v5, %v643_v14  ;;  %v843_v33 = vadd.f32 %v841_v21, %v831_v0  ;;  %v1217_v26 = vmul.f32 %v1211_v17, %v3545_v60  ;;  %v894_v5 = vpop.permute.xlu0 %893 }
 0x4c3   :  { %v1207_v55 = vadd.f32 %v1205_v31, %v1195_v25  ;;  %v1124_v11 = vadd.f32 %v1122_v9, %v1112_v23  ;;  %v4626_v0 = vmov 8   ;;  %v900_v15 = vmul.f32 %v894_v5, %v3505_v27  ;;  %v2253_v9 = vld [vmem:[%s4422_s5 + $0x9] ss:$0 sm:$0xff] }
 0x4c4   :  { %v864_v1 = vpop.permute.xlu1 %863  ;;  %750 = vrot.lane.b32.xlu1 %v748_v57, %s2793_s11  ;;  %657 = vrot.lane.b32.xlu0 %v655_v38, %s2791_s9  ;;  %v4629_v27 = vmov 9   ;;  %v4634_v47 = vmov 28   ;;  %v4635_v31 = vmov 11   ;;  %v4639_v25 = vmov 36  }
 0x4c5   :  { %v867_v12 = vmul.f32 %v864_v1, %v3358_v28  ;;  %v1027_v28 = vmul.f32 %v4622_v49, %v3545_v60  ;;  %v1219_v10 = vadd.f32 %v1217_v26, %v1207_v55  ;;  %v2254_v55 = vld [vmem:[%s4422_s5 + $0xa] ss:$0 sm:$0xff] }
 0x4c6   :  { %v922_v16 = vpop.permute.xlu0 %921 }
 0x4c7   :  { %v879_v24 = vadd.f32 %v877_v32, %v867_v12  ;;  %v1029_v36 = vadd.f32 %v1027_v28, %v1017_v54  ;;  %v925_v46 = vmul.f32 %v922_v16, %v3431_v37  ;;  %v4630_v12 = vmov 2  }
 0x4c8   :  { %v860_v35 = vpop.permute.xlu1 %859  ;;  %845 = vrot.lane.b32.xlu1 %v843_v33, %s2790_s8  ;;  %1235 = vperm.xlu0 %2586, %v3601_v43   ;;  %v4636_v33 = vmov 29  }
 0x4c9   :  { %v891_v13 = vadd.f32 %v889_v34, %v879_v24  ;;  %v866_v20 = vmul.f32 %v860_v35, %v3484_v19  ;;  %v4625_v19 = vmov 0   ;;  %v4637_v34 = vmov 18  }
 0x4ca   :  { %v930_v22 = vpop.permute.xlu0 %929  ;;  %v4638_v24 = vmov 16  }
 0x4cc   :  { %1031 = vrot.lane.b32.xlu1 %v1029_v36, %s2792_s10  ;;  %1126 = vrot.lane.b32.xlu0 %v1124_v11, %s2795_s18 }
 0x4cd   :  { %v870_v29 = vpop.permute.xlu1 %869  ;;  %2588 = vset.pattern.permute.xlu0 %v4624_v41 }
 0x4ce   :  { %v876_v62 = vmul.f32 %v870_v29, %v3480_v8  ;;  %v34_v8 = vld [vmem:[%s4421_s1 + $0x30] sm:$0xff] }
 0x4cf   :  { %2387 = vmatprep.mubr.msk.f32.mxu1 %vm133_vm0, %v34_v8 }
 0x4d0   :  { %v878_v18 = vadd.f32 %v876_v62, %v866_v20  ;;  %1221 = vrot.lane.b32.xlu1 %v1219_v10, %s2794_s0  ;;  %1245 = vperm.xlu0 %2588, %v3601_v43   ;;  %v4641_v62 = vmov 35  }
 0x4d2   :  { %v882_v17 = vpop.permute.xlu1 %881 }
 0x4d3   :  { %v888_v40 = vmul.f32 %v882_v17, %v3487_v3 }
 0x4d4   :  { %1257 = vperm.xlu1 %2589, %v3601_v43   ;;  %2590 = vset.pattern.permute.xlu0 %v4625_v19 }
 0x4d5   :  { %v890_v14 = vadd.f32 %v888_v40, %v878_v18  ;;  %1387 = vperm.xlu0 %2590, %v3619_v44   ;;  %v2256_v18 = vld [vmem:[%s4422_s5 + $0xc] ss:$0 sm:$0xff] }
 0x4d7   :  { %v898_v3 = vpop.permute.xlu1 %897  ;;  %v902_v53 = vadd.f32 %v900_v15, %v890_v14  ;;  %v3725_v14 = vld [vmem:[%s4422_s5 + $0xd] ss:$0 sm:$0xff]  ;;  %v4644_v15 = vmov 31  }
 0x4d8   :  { %1261 = vperm.xlu1 %2589, %v2702_v61   ;;  %v901_v57 = vmul.f32 %v898_v3, %v3352_v4  ;;  %v3641_v4 = vld [vmem:[%s4424_s3 + $0x18] sm:$0xff]  ;;  %v2258_v3 = vld [vmem:[%s4422_s5 + $0xe] ss:$0 sm:$0xff] }
 0x4d9   :  { %2593 = vset.pattern.permute.xlu0 %v4626_v0 }
 0x4da   :  { %1486 = vperm.xlu0 %2593, %v3619_v44   ;;  %v903_v59 = vadd.f32 %v901_v57, %v891_v13  ;;  %v4640_v13 = vmov 12   ;;  %v4642_v57 = vmov 6  }
 0x4dc   :  { %v910_v6 = vpop.permute.xlu1 %909  ;;  %2591 = vset.pattern.permute.xlu1 %v4627_v2 }
 0x4dd   :  { %v913_v38 = vmul.f32 %v910_v6, %v3408_v7  ;;  %1398 = vperm.xlu1 %2591, %v3619_v44   ;;  %v4643_v6 = vmov 17  }
 0x4de   :  { %2596 = vset.pattern.permute.xlu0 %v4628_v63 }
 0x4df   :  { %v915_v51 = vadd.f32 %v913_v38, %v903_v59  ;;  %1480 = vperm.xlu0 %2596, %v3641_v4  }
 0x4e0   :  { %v906_v52 = vpop.permute.xlu1 %905 }
 0x4e1   :  { %v912_v7 = vmul.f32 %v906_v52, %v3520_v30  ;;  %2592 = vset.pattern.permute.xlu1 %v4628_v63  ;;  %v3647_v1 = vadd.f32 %v925_v46, %v915_v51  ;;  %v936_v30 = vmul.f32 %v930_v22, %v3545_v60  ;;  %v4632_v60 = vmov 10  }
 0x4e2   :  { %1476 = vperm.xlu1 %2592, %v3619_v44   ;;  %v4645_v63 = vmov 43  }
 0x4e3   :  { %v914_v37 = vadd.f32 %v912_v7, %v902_v53  ;;  %2599 = vset.pattern.permute.xlu0 %v4629_v27  ;;  %v4646_v7 = vmov 13  }
 0x4e4   :  { %1498 = vperm.xlu0 %2599, %v3619_v44  }
 0x4e5   :  { %v918_v21 = vpop.permute.xlu1 %917 }
 0x4e6   :  { %v924_v48 = vmul.f32 %v918_v21, %v3554_v56  ;;  %2594 = vset.pattern.permute.xlu1 %v4625_v19  ;;  %v4633_v56 = vmov 14  }
 0x4e7   :  { %1392 = vperm.xlu1 %2594, %v3641_v4  }
 0x4e8   :  { %v926_v32 = vadd.f32 %v924_v48, %v914_v37  ;;  %2602 = vset.pattern.permute.xlu0 %v4630_v12 }
 0x4e9   :  { %1414 = vperm.xlu0 %2602, %v3641_v4  }
 0x4ea   :  { %v3657_v50 = vadd.f32 %v936_v30, %v926_v32  ;;  %v934_v54 = vpop.permute.xlu1 %933  ;;  %v4648_v30 = vmov 32  }
 0x4eb   :  { %2595 = vset.pattern.permute.xlu1 %v4627_v2  ;;  %v937_v28 = vmul.f32 %v934_v54, %v3424_v58  ;;  %v4650_v54 = vmov 44  }
 0x4ec   :  { %1402 = vperm.xlu1 %2595, %v3641_v4  }
 0x4ed   :  { %2605 = vset.pattern.permute.xlu0 %v4631_v45  ;;  %v939_v58 = vadd.f32 %v937_v28, %v3647_v1 }
 0x4ee   :  { %1580 = vperm.xlu0 %2605, %v3641_v4  }
 0x4ef   :  { %v1240_v23 = vpop.permute.xlu1 %1239 }
 0x4f0   :  { %2597 = vset.pattern.permute.xlu1 %v4626_v0 }
 0x4f1   :  { %1490 = vperm.xlu1 %2597, %v3641_v4  }
 0x4f2   :  { %2606 = vset.pattern.permute.xlu0 %v4624_v41 }
 0x4f3   :  { %1422 = vperm.xlu0 %2606, %v3619_v44  }
 0x4f5   :  { %2598 = vset.pattern.permute.xlu1 %v4630_v12  ;;  %v4649_v12 = vmov 5  }
 0x4f6   :  { %1410 = vperm.xlu1 %2598, %v3619_v44  }
 0x4f7   :  { %2610 = vset.pattern.permute.xlu0 %v4632_v60 }
 0x4f8   :  { %1514 = vperm.xlu0 %2610, %v3641_v4  }
 0x4fa   :  { %2600 = vset.pattern.permute.xlu1 %v4633_v56 }
 0x4fb   :  { %1566 = vperm.xlu1 %2600, %v3619_v44  }
 0x4fc   :  { %2612 = vset.pattern.permute.xlu0 %v4598_v42 }
 0x4fd   :  { %1434 = vperm.xlu0 %2612, %v3619_v44  }
 0x4ff   :  { %2601 = vset.pattern.permute.xlu1 %v4631_v45 }
 0x500   :  { %1576 = vperm.xlu1 %2601, %v3619_v44  }
 0x501   :  { %2615 = vset.pattern.permute.xlu0 %v4634_v47 }
 0x502   :  { %1742 = vperm.xlu0 %2615, %v3619_v44  }
 0x504   :  { %2603 = vset.pattern.permute.xlu1 %v4629_v27  ;;  %v4647_v27 = vmov 37  }
 0x505   :  { %1502 = vperm.xlu1 %2603, %v3641_v4  }
 0x506   :  { %2618 = vset.pattern.permute.xlu0 %v4635_v31 }
 0x507   :  { %1526 = vperm.xlu0 %2618, %v3641_v4  }
 0x509   :  { %2604 = vset.pattern.permute.xlu1 %v4633_v56 }
 0x50a   :  { %1570 = vperm.xlu1 %2604, %v3641_v4  }
 0x50b   :  { %2621 = vset.pattern.permute.xlu0 %v4636_v33 }
 0x50c   :  { %1756 = vperm.xlu0 %2621, %v3641_v4  }
 0x50e   :  { %2607 = vset.pattern.permute.xlu1 %v4632_v60 }
 0x50f   :  { %1510 = vperm.xlu1 %2607, %v3619_v44  }
 0x510   :  { %2624 = vset.pattern.permute.xlu0 %v4637_v34 }
 0x511   :  { %1612 = vperm.xlu0 %2624, %v3619_v44  }
 0x513   :  { %2608 = vset.pattern.permute.xlu1 %v4638_v24 }
 0x514   :  { %1588 = vperm.xlu1 %2608, %v3619_v44  }
 0x515   :  { %2627 = vset.pattern.permute.xlu0 %v4639_v25 }
 0x516   :  { %1842 = vperm.xlu0 %2627, %v3619_v44  }
 0x518   :  { %2609 = vset.pattern.permute.xlu1 %v4624_v41  ;;  %v2255_v41 = vld [vmem:[%s4422_s5 + $0xb] ss:$0 sm:$0xff] }
 0x519   :  { %v848_v35 = vpop.permute.xlu0 %847  ;;  %v660_v49 = vpop.permute.xlu1 %659  ;;  %1426 = vperm.xlu1 %2609, %v3641_v4   ;;  %v946_v17 = vmul.f32 %v2255_v41, %v939_v58  ;;  %v945_v56 = vmul.f32 %v2255_v41, %v3657_v50  ;;  %v2704_v41 = vld [vmem:[%s4419_s6 + $0x70] sm:$0xff] }
 0x51a   :  { %2629 = vset.pattern.permute.xlu0 %v4640_v13  ;;  %v667_v36 = vmul.f32 %v2252_v39, %v660_v49  ;;  %v855_v10 = vmul.f32 %v2254_v55, %v848_v35 }
 0x51b   :  { %1538 = vperm.xlu0 %2629, %v3641_v4  }
 0x51d   :  { %v753_v26 = vpop.permute.xlu1 %752  ;;  %2611 = vset.pattern.permute.xlu1 %v4638_v24  ;;  %v1034_v11 = vpop.permute.xlu0 %1033  ;;  %v4683_v24 = vmov 25  }
 0x51e   :  { %v760_v29 = vmul.f32 %v2253_v9, %v753_v26  ;;  %1592 = vperm.xlu1 %2611, %v3641_v4   ;;  %v1041_v19 = vmul.f32 %v2256_v18, %v1034_v11 }
 0x51f   :  { %2632 = vset.pattern.permute.xlu0 %v4641_v62 }
 0x520   :  { %v762_v20 = vadd.f32 %v760_v29, %v667_v36  ;;  %1836 = vperm.xlu0 %2632, %v3641_v4   ;;  %v35_v29 = vld [vmem:[%s4421_s1 + $0x38] sm:$0xff] }
 0x522   :  { %v857_v40 = vadd.f32 %v855_v10, %v762_v20  ;;  %2613 = vset.pattern.permute.xlu1 %v4635_v31  ;;  %v1224_v61 = vpop.permute.xlu1 %1223  ;;  %v4653_v20 = vmov 34  }
 0x523   :  { %1522 = vperm.xlu1 %2613, %v3619_v44   ;;  %v1129_v8 = vpop.permute.xlu0 %1128  ;;  %v1231_v59 = vmul.f32 %v2258_v3, %v1224_v61 }
 0x524   :  { %v948_v5 = vadd.f32 %v946_v17, %v857_v40  ;;  %2634 = vset.pattern.permute.xlu0 %v4642_v57  ;;  %v1136_v16 = vmul.f32 %v3725_v14, %v1129_v8  ;;  %v2705_v17 = vld [vmem:[%s4419_s6 + $0x68] sm:$0xff]  ;;  %v4654_v40 = vmov 46   ;;  %v2708_v8 = vld [vmem:[%s4419_s6 + $0x50] sm:$0xff] }
 0x525   :  { %1458 = vperm.xlu0 %2634, %v3619_v44  }
 0x526   :  { %v1043_v0 = vadd.f32 %v1041_v19, %v948_v5  ;;  %v4655_v5 = vmov 41  }
 0x527   :  { %2614 = vset.pattern.permute.xlu1 %v4643_v6 }
 0x528   :  { %v1138_v2 = vadd.f32 %v1136_v16, %v1043_v0  ;;  %1600 = vperm.xlu1 %2614, %v3619_v44   ;;  %v2711_v0 = vld [vmem:[%s4419_s6 + $0x38] sm:$0xff]  ;;  %v2712_v16 = vld [vmem:[%s4419_s6 + $0x30] sm:$0xff] }
 0x529   :  { %2637 = vset.pattern.permute.xlu0 %v4644_v15 }
 0x52a   :  { %v1233_v38 = vadd.f32 %v1231_v59, %v1138_v2  ;;  %1776 = vperm.xlu0 %2637, %v3619_v44   ;;  %v2713_v59 = vld [vmem:[%s4419_s6 + $0x28] sm:$0xff] }
 0x52c   :  { %2616 = vset.pattern.permute.xlu1 %v4636_v33  ;;  %v1243_v46 = vmul.f32 %v1240_v23, %v1233_v38  ;;  %v2714_v38 = vld [vmem:[%s4419_s6 + $0x20] sm:$0xff] }
 0x52d   :  { %1752 = vperm.xlu1 %2616, %v3619_v44  }
 0x52e   :  { %2640 = vset.pattern.permute.xlu0 %v4645_v63 }
 0x52f   :  { %v1250_v51 = vpop.permute.xlu1 %1249  ;;  %1932 = vperm.xlu0 %2640, %v3619_v44  }
 0x530   :  { %v1253_v52 = vadd.f32 %v1250_v51, %v1243_v46  ;;  %v2715_v46 = vld [vmem:[%s4419_s6 + $0x18] sm:$0xff] }
 0x531   :  { %2617 = vset.pattern.permute.xlu1 %v4598_v42 }
 0x532   :  { %v1255_v53 = vmax.f32 %v1253_v52, 0.0  ;;  %1438 = vperm.xlu1 %2617, %v3641_v4   ;;  %v2716_v52 = vld [vmem:[%s4419_s6 + $0x10] sm:$0xff] }
 0x533   :  { %2642 = vset.pattern.permute.xlu0 %v4646_v7 }
 0x534   :  { %2383 = vmatprep.subr.mxu1 %v1255_v53  ;;  %1550 = vperm.xlu0 %2642, %v3641_v4  }
 0x535   :  { %2384 = vmatpush3.msra.mxu1 %v1255_v53  ;;  %v2717_v53 = vld [vmem:[%s4419_s6 + $0x8] sm:$0xff] }
 0x536   :  { %2619 = vset.pattern.permute.xlu1 %v4643_v6  ;;  %v751_v1 = vpop.permute.xlu1 %750  ;;  %v658_v37 = vpop.permute.xlu0 %657  ;;  %v4656_v6 = vmov 19  }
 0x537   :  { %1604 = vperm.xlu1 %2619, %v3641_v4   ;;  %v759_v42 = vmul.f32 %v2253_v9, %v751_v1  ;;  %v666_v21 = vmul.f32 %v2252_v39, %v658_v37  ;;  %v4651_v39 = vmov 30   ;;  %v2718_v1 = vld [vmem:[%s4419_s6] sm:$0xff] }
 0x538   :  { %2645 = vset.pattern.permute.xlu0 %v4647_v27 }
 0x539   :  { %1858 = vperm.xlu0 %2645, %v3641_v4   ;;  %v761_v32 = vadd.f32 %v759_v42, %v666_v21 }
 0x53a   :  { %v846_v22 = vpop.permute.xlu1 %845 }
 0x53b   :  { %2620 = vset.pattern.permute.xlu1 %v4634_v47  ;;  %v854_v48 = vmul.f32 %v2254_v55, %v846_v22  ;;  %v4652_v55 = vmov 39  }
 0x53c   :  { %1746 = vperm.xlu1 %2620, %v3641_v4  }
 0x53d   :  { %2649 = vset.pattern.permute.xlu0 %v4648_v30  ;;  %v856_v45 = vadd.f32 %v854_v48, %v761_v32  ;;  %v4659_v48 = vmov 20   ;;  %v4660_v30 = vmov 38  }
 0x53e   :  { %1788 = vperm.xlu0 %2649, %v3619_v44   ;;  %v1032_v60 = vpop.permute.xlu1 %1031 }
 0x53f   :  { %v947_v47 = vadd.f32 %v945_v56, %v856_v45  ;;  %v1040_v33 = vmul.f32 %v2256_v18, %v1032_v60  ;;  %v4662_v60 = vmov 33  }
 0x540   :  { %2622 = vset.pattern.permute.xlu1 %v4649_v12 }
 0x541   :  { %1446 = vperm.xlu1 %2622, %v3619_v44   ;;  %v1042_v49 = vadd.f32 %v1040_v33, %v947_v47 }
 0x542   :  { %1792 = vperm.xlu0 %2649, %v3641_v4   ;;  %v1222_v23 = vpop.permute.xlu1 %1221 }
 0x543   :  { %v1236_v31 = vpop.permute.xlu0 %1235  ;;  %v1230_v50 = vmul.f32 %v2258_v3, %v1222_v23  ;;  %v2709_v3 = vld [vmem:[%s4419_s6 + $0x48] sm:$0xff]  ;;  %v4667_v23 = vmov 40  }
 0x545   :  { %2623 = vset.pattern.permute.xlu1 %v4640_v13 }
 0x546   :  { %1534 = vperm.xlu1 %2623, %v3619_v44   ;;  %2654 = vset.pattern.permute.xlu0 %v4650_v54 }
 0x547   :  { %v1127_v35 = vpop.permute.xlu0 %1126  ;;  %1948 = vperm.xlu0 %2654, %v3641_v4  }
 0x548   :  { %v1135_v28 = vmul.f32 %v3725_v14, %v1127_v35  ;;  %v2707_v14 = vld [vmem:[%s4419_s6 + $0x58] sm:$0xff] }
 0x54a   :  { %2625 = vset.pattern.permute.xlu1 %v4651_v39  ;;  %v1137_v9 = vadd.f32 %v1135_v28, %v1042_v49 }
 0x54b   :  { %1764 = vperm.xlu1 %2625, %v3619_v44   ;;  %2656 = vset.pattern.permute.xlu0 %v4652_v55  ;;  %v1246_v26 = vpop.permute.xlu0 %1245 }
 0x54c   :  { %v1232_v13 = vadd.f32 %v1230_v50, %v1137_v9  ;;  %1878 = vperm.xlu0 %2656, %v3619_v44  }
 0x54e   :  { %v1242_v58 = vmul.f32 %v1236_v31, %v1232_v13  ;;  %v4663_v31 = vmov 45  }
 0x54f   :  { %2626 = vset.pattern.permute.xlu1 %v4641_v62  ;;  %v3775_v10 = vpop.permute.xlu1 %1257  ;;  %v2703_v62 = vld [vmem:[%s4419_s6 + $0x78] sm:$0xff] }
 0x550   :  { %1832 = vperm.xlu1 %2626, %v3619_v44   ;;  %v1252_v36 = vadd.f32 %v1246_v26, %v1242_v58  ;;  %1882 = vperm.xlu0 %2656, %v3641_v4   ;;  %v3930_v55 = vpop.permute.xlu0 %1387 }
 0x552   :  { %v1254_v11 = vmax.f32 %v1252_v36, 0.0 }
 0x553   :  { %v3789_v18 = vpop.permute.xlu1 %1261 }
 0x554   :  { %2628 = vset.pattern.permute.xlu1 %v4649_v12  ;;  %2385 = vmatprep.subr.mxu1 %v1254_v11 }
 0x555   :  { %1450 = vperm.xlu1 %2628, %v3641_v4   ;;  %2386 = vmatpush3.msra.mxu1 %v1254_v11  ;;  %v3934_v26 = vpop.permute.xlu0 %1486 }
 0x556   :  { %2660 = vset.pattern.permute.xlu0 %v4653_v20  ;;  %2388 = vmatmul.mubr.msk.f32.vlgmr.msra.gmra.mxu1 %vm133_vm0, %v35_v29 }
 0x557   :  { %1812 = vperm.xlu0 %2660, %v3619_v44   ;;  %2390 = vmatprep.subr.mxu1 %v2703_v62 }
 0x558   :  { %2391 = vmatpush3.msra.mxu1 %v2703_v62  ;;  %v3804_v19 = vpop.permute.xlu1 %1398 }
 0x559   :  { %2630 = vset.pattern.permute.xlu1 %v4637_v34  ;;  %2392 = vmatprep.subr.mxu1 %v2704_v41  ;;  %v2706_v34 = vld [vmem:[%s4419_s6 + $0x60] sm:$0xff] }
 0x55a   :  { %1616 = vperm.xlu1 %2630, %v3641_v4   ;;  %2393 = vmatpush3.msra.mxu1 %v2704_v41  ;;  %v3938_v36 = vpop.permute.xlu0 %1480 }
 0x55b   :  { %1816 = vperm.xlu0 %2660, %v3641_v4   ;;  %2394 = vmatprep.subr.mxu1 %v2705_v17 }
 0x55c   :  { %2395 = vmatpush3.msra.mxu1 %v2705_v17 }
 0x55d   :  { %2396 = vmatprep.subr.mxu1 %v2706_v34  ;;  %v3816_v61 = vpop.permute.xlu1 %1476 }
 0x55e   :  { %2631 = vset.pattern.permute.xlu1 %v4651_v39  ;;  %2397 = vmatpush3.msra.mxu1 %v2706_v34  ;;  %v4668_v39 = vmov 47  }
 0x55f   :  { %1768 = vperm.xlu1 %2631, %v3641_v4   ;;  %2664 = vset.pattern.permute.xlu0 %v4654_v40  ;;  %v3942_v29 = vpop.permute.xlu0 %1498 }
 0x560   :  { %1972 = vperm.xlu0 %2664, %v3641_v4   ;;  %2398 = vmatprep.subr.mxu1 %v2707_v14 }
 0x561   :  { %2399 = vmatpush3.msra.mxu1 %v2707_v14 }
 0x562   :  { %2400 = vmatprep.subr.mxu1 %v2708_v8  ;;  %v3830_v2 = vpop.permute.xlu1 %1392 }
 0x563   :  { %2633 = vset.pattern.permute.xlu1 %v4639_v25  ;;  %2401 = vmatpush3.msra.mxu1 %v2708_v8  ;;  %v2710_v25 = vld [vmem:[%s4419_s6 + $0x40] sm:$0xff] }
 0x564   :  { %1846 = vperm.xlu1 %2633, %v3641_v4   ;;  %2667 = vset.pattern.permute.xlu0 %v4655_v5  ;;  %v3946_v62 = vpop.permute.xlu0 %1414 }
 0x565   :  { %2402 = vmatprep.subr.mxu1 %v2709_v3 }
 0x566   :  { %2403 = vmatpush3.msra.mxu1 %v2709_v3 }
 0x567   :  { %2404 = vmatprep.subr.mxu1 %v2710_v25  ;;  %v3843_v51 = vpop.permute.xlu1 %1402 }
 0x568   :  { %2635 = vset.pattern.permute.xlu1 %v4646_v7  ;;  %2405 = vmatpush3.msra.mxu1 %v2710_v25  ;;  %v4657_v7 = vmov 42  }
 0x569   :  { %1546 = vperm.xlu1 %2635, %v3619_v44   ;;  %2406 = vmatprep.subr.mxu1 %v2711_v0  ;;  %v3950_v17 = vpop.permute.xlu0 %1580 }
 0x56a   :  { %2407 = vmatpush3.msra.mxu1 %v2711_v0 }
 0x56b   :  { %2408 = vmatprep.subr.mxu1 %v2712_v16 }
 0x56c   :  { %2409 = vmatpush3.msra.mxu1 %v2712_v16  ;;  %v3856_v37 = vpop.permute.xlu1 %1490 }
 0x56d   :  { %2636 = vset.pattern.permute.xlu1 %v4656_v6  ;;  %2410 = vmatprep.subr.mxu1 %v2713_v59 }
 0x56e   :  { %1624 = vperm.xlu1 %2636, %v3619_v44   ;;  %2411 = vmatpush3.msra.mxu1 %v2713_v59 }
 0x56f   :  { %2412 = vmatprep.subr.mxu1 %v2714_v38 }
 0x570   :  { %2413 = vmatpush3.msra.mxu1 %v2714_v38 }
 0x571   :  { %2414 = vmatprep.subr.mxu1 %v2715_v46 }
 0x572   :  { %2638 = vset.pattern.permute.xlu1 %v4647_v27  ;;  %2415 = vmatpush3.msra.mxu1 %v2715_v46  ;;  %v3860_v27 = vpop.permute.xlu1 %1410 }
 0x573   :  { %1854 = vperm.xlu1 %2638, %v3619_v44   ;;  %2416 = vmatprep.subr.mxu1 %v2716_v52 }
 0x574   :  { %2417 = vmatpush3.msra.mxu1 %v2716_v52 }
 0x575   :  { %2418 = vmatprep.subr.mxu1 %v2717_v53 }
 0x576   :  { %2419 = vmatpush3.msra.mxu1 %v2717_v53  ;;  %v3865_v22 = vpop.permute.xlu1 %1566 }
 0x577   :  { %2639 = vset.pattern.permute.xlu1 %v4657_v7  ;;  %2420 = vmatprep.subr.mxu1 %v2718_v1  ;;  %4658 = vst [vmem:[#allocation15_spill] sm:$0xff] %v3865_v22 }
 0x578   :  { %1922 = vperm.xlu1 %2639, %v3619_v44   ;;  %2421 = vmatpush3.msra.mxu1 %v2718_v1 }
 0x57b   :  { %v3870_v42 = vpop.permute.xlu1 %1576 }
 0x57c   :  { %2641 = vset.pattern.permute.xlu1 %v4642_v57 }
 0x57d   :  { %1462 = vperm.xlu1 %2641, %v3641_v4  }
 0x580   :  { %v3874_v21 = vpop.permute.xlu1 %1502 }
 0x581   :  { %2643 = vset.pattern.permute.xlu1 %v4656_v6 }
 0x582   :  { %1628 = vperm.xlu1 %2643, %v3641_v4  }
 0x586   :  { %2644 = vset.pattern.permute.xlu1 %v4644_v15  ;;  %v3878_v15 = vpop.permute.xlu1 %1570 }
 0x587   :  { %1780 = vperm.xlu1 %2644, %v3641_v4  }
 0x58a   :  { %v3882_v32 = vpop.permute.xlu1 %1510 }
 0x58b   :  { %2646 = vset.pattern.permute.xlu1 %v4657_v7 }
 0x58c   :  { %1926 = vperm.xlu1 %2646, %v3641_v4  }
 0x590   :  { %2647 = vset.pattern.permute.xlu1 %v4645_v63  ;;  %v3887_v63 = vpop.permute.xlu1 %1588 }
 0x591   :  { %1936 = vperm.xlu1 %2647, %v3641_v4   ;;  %4661 = vst [vmem:[#allocation4_spill] sm:$0xff] %v3887_v63 }
 0x594   :  { %v3892_v45 = vpop.permute.xlu1 %1426 }
 0x595   :  { %2648 = vset.pattern.permute.xlu1 %v4659_v48 }
 0x596   :  { %1636 = vperm.xlu1 %2648, %v3619_v44  }
 0x599   :  { %v3896_v56 = vpop.permute.xlu1 %1592 }
 0x59a   :  { %2650 = vset.pattern.permute.xlu1 %v4660_v30 }
 0x59b   :  { %1866 = vperm.xlu1 %2650, %v3619_v44  }
 0x59e   :  { %v3900_v47 = vpop.permute.xlu1 %1522 }
 0x59f   :  { %2651 = vset.pattern.permute.xlu1 %v4650_v54  ;;  %4664 = vst [vmem:[#allocation5_spill] sm:$0xff] %v3900_v47 }
 0x5a0   :  { %1944 = vperm.xlu1 %2651, %v3619_v44  }
 0x5a3   :  { %v3904_v33 = vpop.permute.xlu1 %1600 }
 0x5a4   :  { %2652 = vset.pattern.permute.xlu1 %v4659_v48  ;;  %4665 = vst [vmem:[#allocation7_spill] sm:$0xff] %v3904_v33 }
 0x5a5   :  { %1640 = vperm.xlu1 %2652, %v3641_v4  }
 0x5a8   :  { %v3908_v54 = vpop.permute.xlu1 %1752 }
 0x5a9   :  { %2653 = vset.pattern.permute.xlu1 %v4660_v30  ;;  %4666 = vst [vmem:[#allocation23_spill] sm:$0xff] %v3908_v54  ;;  %v4679_v30 = vmov 48  }
 0x5aa   :  { %1870 = vperm.xlu1 %2653, %v3641_v4  }
 0x5ad   :  { %v3913_v35 = vpop.permute.xlu1 %1438 }
 0x5ae   :  { %2655 = vset.pattern.permute.xlu1 %v4662_v60 }
 0x5af   :  { %1800 = vperm.xlu1 %2655, %v3619_v44  }
 0x5b2   :  { %v3918_v49 = vpop.permute.xlu1 %1604 }
 0x5b3   :  { %2657 = vset.pattern.permute.xlu1 %v4663_v31 }
 0x5b4   :  { %1956 = vperm.xlu1 %2657, %v3619_v44  }
 0x5b7   :  { %v3922_v28 = vpop.permute.xlu1 %1746 }
 0x5b8   :  { %2658 = vset.pattern.permute.xlu1 %v4662_v60 }
 0x5b9   :  { %1804 = vperm.xlu1 %2658, %v3641_v4  }
 0x5bc   :  { %v3926_v50 = vpop.permute.xlu1 %1446 }
 0x5bd   :  { %2659 = vset.pattern.permute.xlu1 %v4663_v31  ;;  %4669 = vst [vmem:[#allocation43_spill] sm:$0xff] %v3926_v50 }
 0x5be   :  { %1960 = vperm.xlu1 %2659, %v3641_v4  }
 0x5c1   :  { %v3928_v9 = vpop.permute.xlu1 %1534 }
 0x5c2   :  { %2661 = vset.pattern.permute.xlu1 %v4667_v23  ;;  %4670 = vst [vmem:[#allocation3_spill] sm:$0xff] %v3928_v9 }
 0x5c3   :  { %1890 = vperm.xlu1 %2661, %v3619_v44  }
 0x5c6   :  { %v3932_v13 = vpop.permute.xlu1 %1764 }
 0x5c7   :  { %2662 = vset.pattern.permute.xlu1 %v4654_v40  ;;  %4671 = vst [vmem:[#allocation17_spill] sm:$0xff] %v3932_v13  ;;  %v3954_v40 = vpop.permute.xlu0 %1422 }
 0x5c8   :  { %1968 = vperm.xlu1 %2662, %v3619_v44  }
 0x5cb   :  { %v3936_v58 = vpop.permute.xlu1 %1832  ;;  %v3958_v8 = vpop.permute.xlu0 %1514 }
 0x5cc   :  { %2663 = vset.pattern.permute.xlu1 %v4667_v23  ;;  %4672 = vst [vmem:[#allocation2_spill] sm:$0xff] %v3936_v58 }
 0x5cd   :  { %1894 = vperm.xlu1 %2663, %v3641_v4  }
 0x5cf   :  { %v3962_v3 = vpop.permute.xlu0 %1434 }
 0x5d0   :  { %v3940_v11 = vpop.permute.xlu1 %1450  ;;  %4675 = vst [vmem:[#allocation26_spill] sm:$0xff] %v3962_v3 }
 0x5d1   :  { %2665 = vset.pattern.permute.xlu1 %v4655_v5 }
 0x5d2   :  { %1902 = vperm.xlu1 %2665, %v3619_v44  }
 0x5d3   :  { %v3967_v6 = vpop.permute.xlu0 %1742 }
 0x5d4   :  { %4677 = vst [vmem:[#allocation19_spill] sm:$0xff] %v3967_v6 }
 0x5d5   :  { %v3944_v20 = vpop.permute.xlu1 %1616 }
 0x5d6   :  { %2666 = vset.pattern.permute.xlu1 %v4668_v39  ;;  %v4681_v39 = vmov 21  }
 0x5d7   :  { %1980 = vperm.xlu1 %2666, %v3619_v44   ;;  %v3980_v7 = vpop.permute.xlu0 %1526 }
 0x5da   :  { %v3948_v41 = vpop.permute.xlu1 %1768 }
 0x5df   :  { %v3952_v34 = vpop.permute.xlu1 %1846 }
 0x5e4   :  { %v3956_v14 = vpop.permute.xlu1 %1546 }
 0x5e5   :  { %4673 = vst [vmem:[#allocation6_spill] sm:$0xff] %v3956_v14 }
 0x5e9   :  { %v3960_v5 = vpop.permute.xlu1 %1624 }
 0x5ea   :  { %4674 = vst [vmem:[#allocation20_spill] sm:$0xff] %v3960_v5 }
 0x5ee   :  { %v3964_v25 = vpop.permute.xlu1 %1854 }
 0x5ef   :  { %4676 = vst [vmem:[#allocation9_spill] sm:$0xff] %v3964_v25 }
 0x5f3   :  { %v3972_v52 = vpop.permute.xlu1 %1922 }
 0x616   :  { %v2389_v0 = vpop.f32.mrf.mxu1 }
 0x617   :  { %v1342_v16 = vadd.f32 %v2389_v0, %v3789_v18  ;;  %v3986_v18 = vpop.permute.xlu1 %1462 }
 0x618   :  { %v1336_v59 = vpop.f32.mrf.mxu1 }
 0x619   :  { %v3969_v38 = vmax.f32 %v1342_v16, 0.0  ;;  %v1337_v46 = vadd.f32 %v1336_v59, %v3775_v10  ;;  %v3992_v10 = vpop.permute.xlu0 %1756  ;;  %v4682_v16 = vmov 23  }
 0x61b   :  { %1375 = vrot.lane.b32.xlu0 %v3969_v38, %s2782_s17  ;;  %1349 = vrot.lane.b32.xlu1 %v3969_v38, %s2778_s13  ;;  %v3978_v53 = vmax.f32 %v1337_v46, 0.0  ;;  %v3994_v1 = vpop.permute.xlu1 %1628 }
 0x61d   :  { %v3999_v48 = vpop.permute.xlu0 %1612 }
 0x61e   :  { %4678 = vst [vmem:[#allocation8_spill] sm:$0xff] %v3999_v48  ;;  %v4686_v48 = vmov 26  }
 0x61f   :  { %1355 = vrot.lane.b32.xlu1 %v3969_v38, %s2780_s15  ;;  %1347 = vrot.lane.b32.xlu0 %v3978_v53, %s2778_s13  ;;  %v4006_v60 = vpop.permute.xlu1 %1780 }
 0x621   :  { %v4011_v31 = vpop.permute.xlu0 %1842 }
 0x622   :  { %4680 = vst [vmem:[#allocation12_spill] sm:$0xff] %v4011_v31 }
 0x623   :  { %1361 = vrot.lane.b32.xlu1 %v3969_v38, %s2777_s12  ;;  %1359 = vrot.lane.b32.xlu0 %v3978_v53, %s2777_s12  ;;  %v4013_v23 = vpop.permute.xlu1 %1926 }
 0x625   :  { %v4019_v0 = vpop.permute.xlu0 %1538 }
 0x627   :  { %1369 = vrot.lane.b32.xlu1 %v3969_v38, %s2781_s16  ;;  %1906 = vperm.xlu0 %2667, %v3641_v4   ;;  %v4024_v59 = vpop.permute.xlu1 %1936 }
 0x629   :  { %v4028_v46 = vpop.permute.xlu0 %1836 }
 0x62b   :  { %1381 = vrot.lane.b32.xlu1 %v3969_v38, %s2779_s14  ;;  %1379 = vrot.lane.b32.xlu0 %v3978_v53, %s2779_s14  ;;  %v4032_v5 = vpop.permute.xlu1 %1636 }
 0x62c   :  { %2669 = vset.pattern.permute.xlu0 %v4679_v30  ;;  %4684 = vst [vmem:[#allocation16_spill] sm:$0xff] %v4032_v5 }
 0x62d   :  { %v4036_v25 = vpop.permute.xlu0 %1458 }
 0x62e   :  { %4685 = vst [vmem:[#allocation36_spill] sm:$0xff] %v4036_v25 }
 0x62f   :  { %1353 = vrot.lane.b32.xlu1 %v3978_v53, %s2780_s15  ;;  %1996 = vperm.xlu0 %2669, %v3641_v4   ;;  %v4041_v31 = vpop.permute.xlu1 %1866 }
 0x630   :  { %4687 = vst [vmem:[#allocation24_spill] sm:$0xff] %v4041_v31 }
 0x631   :  { %v4045_v58 = vpop.permute.xlu0 %1776 }
 0x632   :  { %4688 = vst [vmem:[#allocation18_spill] sm:$0xff] %v4045_v58 }
 0x633   :  { %1367 = vrot.lane.b32.xlu1 %v3978_v53, %s2781_s16  ;;  %2672 = vset.pattern.permute.xlu0 %v4681_v39  ;;  %v4050_v5 = vpop.permute.xlu1 %1944 }
 0x634   :  { %1660 = vperm.xlu0 %2672, %v3641_v4  }
 0x635   :  { %v4052_v33 = vpop.permute.xlu0 %1932 }
 0x637   :  { %1373 = vrot.lane.b32.xlu1 %v3978_v53, %s2782_s17 }
 0x638   :  { %2674 = vset.pattern.permute.xlu0 %v4682_v16 }
 0x639   :  { %1682 = vperm.xlu0 %2674, %v3641_v4   ;;  %v4059_v31 = vpop.permute.xlu0 %1550 }
 0x63b   :  { %1984 = vperm.xlu1 %2666, %v3641_v4  }
 0x63d   :  { %2676 = vset.pattern.permute.xlu0 %v4683_v24  ;;  %v4064_v58 = vpop.permute.xlu0 %1858 }
 0x63e   :  { %1702 = vperm.xlu0 %2676, %v3619_v44  }
 0x63f   :  { %2668 = vset.pattern.permute.xlu1 %v4679_v30  ;;  %v4689_v30 = vmov 22  }
 0x640   :  { %1992 = vperm.xlu1 %2668, %v3619_v44  }
 0x642   :  { %2679 = vset.pattern.permute.xlu0 %v4686_v48 }
 0x643   :  { %1718 = vperm.xlu0 %2679, %v3641_v4  }
 0x644   :  { %2670 = vset.pattern.permute.xlu1 %v4681_v39  ;;  %v4056_v39 = vpop.permute.xlu1 %1640 }
 0x645   :  { %1656 = vperm.xlu1 %2670, %v3619_v44  }
 0x647   :  { %2681 = vset.pattern.permute.xlu0 %v4649_v12 }
 0x648   :  { %2012 = vperm.xlu0 %2681, %v3601_v43   ;;  %v1871_v43 = vpop.permute.xlu1 %1870 }
 0x649   :  { %2671 = vset.pattern.permute.xlu1 %v4689_v30  ;;  %v4690_v30 = vmov 24  }
 0x64a   :  { %1666 = vperm.xlu1 %2671, %v3619_v44  }
 0x64c   :  { %2684 = vset.pattern.permute.xlu0 %v4642_v57  ;;  %v4066_v13 = vpop.permute.xlu1 %1800  ;;  %v4069_v57 = vpop.permute.xlu0 %1788 }
 0x64d   :  { %4691 = vst [vmem:[#allocation34_spill] sm:$0xff] %v4066_v13  ;;  %4692 = vst [vmem:[#allocation25_spill] sm:$0xff] %v4069_v57 }
 0x64e   :  { %1670 = vperm.xlu1 %2671, %v3641_v4  }
 0x650   :  { %v4073_v14 = vpop.permute.xlu0 %1792 }
 0x652   :  { %2673 = vset.pattern.permute.xlu1 %v4682_v16  ;;  %v1957_v16 = vpop.permute.xlu1 %1956 }
 0x653   :  { %1678 = vperm.xlu1 %2673, %v3619_v44  }
 0x654   :  { %v4080_v13 = vpop.permute.xlu0 %1948 }
 0x656   :  { %v4075_v54 = vpop.permute.xlu1 %1804 }
 0x657   :  { %2675 = vset.pattern.permute.xlu1 %v4690_v30  ;;  %v4693_v30 = vmov 27  }
 0x658   :  { %1690 = vperm.xlu1 %2675, %v3619_v44   ;;  %v4088_v57 = vpop.permute.xlu0 %1878 }
 0x659   :  { %4696 = vst [vmem:[#allocation32_spill] sm:$0xff] %v4088_v57 }
 0x65a   :  { %v4082_v25 = vpop.permute.xlu1 %1960 }
 0x65b   :  { %4694 = vst [vmem:[#allocation27_spill] sm:$0xff] %v4082_v25 }
 0x65c   :  { %1694 = vperm.xlu1 %2675, %v3641_v4  }
 0x660   :  { %2677 = vset.pattern.permute.xlu1 %v4683_v24  ;;  %v4086_v24 = vpop.permute.xlu1 %1890 }
 0x661   :  { %1706 = vperm.xlu1 %2677, %v3641_v4   ;;  %4695 = vst [vmem:[#allocation11_spill] sm:$0xff] %v4086_v24 }
 0x664   :  { %v4091_v6 = vpop.permute.xlu1 %1968 }
 0x665   :  { %2678 = vset.pattern.permute.xlu1 %v4686_v48  ;;  %4697 = vst [vmem:[#allocation10_spill] sm:$0xff] %v4091_v6  ;;  %v4093_v48 = vpop.permute.xlu0 %1882 }
 0x666   :  { %1714 = vperm.xlu1 %2678, %v3619_v44  }
 0x668   :  { %v1895_v63 = vpop.permute.xlu1 %1894 }
 0x66a   :  { %2680 = vset.pattern.permute.xlu1 %v4693_v30  ;;  %v4095_v30 = vpop.permute.xlu0 %1812 }
 0x66b   :  { %1726 = vperm.xlu1 %2680, %v3619_v44   ;;  %4698 = vst [vmem:[#allocation28_spill] sm:$0xff] %v4095_v30 }
 0x66c   :  { %v4097_v9 = vpop.permute.xlu1 %1902 }
 0x66d   :  { %4699 = vst [vmem:[#allocation14_spill] sm:$0xff] %v4097_v9  ;;  %v2720_v9 = vld [vmem:[%s4422_s5] ss:$0 sm:$0xff] }
 0x66e   :  { %v4099_v25 = vpop.permute.xlu0 %1816 }
 0x66f   :  { %1730 = vperm.xlu1 %2680, %v3641_v4  }
 0x670   :  { %v4101_v44 = vpop.permute.xlu1 %1980 }
 0x671   :  { %4700 = vst [vmem:[#allocation13_spill] sm:$0xff] %v4101_v44  ;;  %v4122_v44 = vld [vmem:[%s4422_s5 + $0x5] ss:$0 sm:$0xff] }
 0x672   :  { %v4103_v4 = vpop.permute.xlu0 %1972  ;;  %4704 = vst [vmem:[#allocation39_spill] sm:$0xff] %v4122_v44 }
 0x673   :  { %2682 = vset.pattern.permute.xlu1 %v4649_v12  ;;  %4701 = vst [vmem:[#allocation22_spill] sm:$0xff] %v4103_v4  ;;  %v2719_v12 = vld [vmem:[%s4422_s5 + $0x3] ss:$0 sm:$0xff] }
 0x674   :  { %v4109_v57 = vmul.f32 %v2719_v12, %v3969_v38  ;;  %v4112_v50 = vmul.f32 %v2719_v12, %v3978_v53  ;;  %v4130_v53 = vld [vmem:[%s4422_s5 + $0x1] ss:$0 sm:$0xff] }
 0x676   :  { %4702 = vst [vmem:[#allocation21_spill] sm:$0xff] %v4109_v57  ;;  %4703 = vst [vmem:[#allocation31_spill] sm:$0xff] %v4112_v50  ;;  %v1430_v47 = vmul.f32 %v3892_v45, %v4109_v57  ;;  %v1608_v22 = vmul.f32 %v3918_v49, %v4109_v57  ;;  %v4148_v3 = vmul.f32 %v3954_v40, %v4112_v50 }
 0x678   :  { %4705 = vst [vmem:[#allocation30_spill] sm:$0xff] %v4148_v3 }
 0x68d   :  { %v1350_v24 = vpop.permute.xlu1 %1349  ;;  %v1376_v6 = vpop.permute.xlu0 %1375 }
 0x68e   :  { %v4117_v30 = vmul.f32 %v2720_v9, %v1350_v24  ;;  %v4125_v4 = vmul.f32 %v4122_v44, %v1376_v6  ;;  %v1518_v24 = vmul.f32 %v3958_v8, %v4109_v57  ;;  %v4142_v6 = vmul.f32 %v1871_v43, %v4109_v57 }
 0x68f   :  { %v1784_v44 = vmul.f32 %v4006_v60, %v4109_v57  ;;  %v4155_v8 = vmul.f32 %v1957_v16, %v4112_v50 }
 0x690   :  { %v1840_v45 = vmul.f32 %v4028_v46, %v4117_v30  ;;  %v4164_v40 = vmul.f32 %v1895_v63, %v4125_v4  ;;  %v1396_v63 = vmul.f32 %v3830_v2, %v4117_v30 }
 0x691   :  { %v1356_v38 = vpop.permute.xlu1 %1355  ;;  %4707 = vst [vmem:[#allocation33_spill] sm:$0xff] %v4155_v8  ;;  %v1348_v57 = vpop.permute.xlu0 %1347  ;;  %v1574_v8 = vmul.f32 %v3878_v15, %v4117_v30 }
 0x692   :  { %v4133_v12 = vmul.f32 %v4130_v53, %v1356_v38  ;;  %v4152_v38 = vmul.f32 %v3882_v32, %v4112_v50  ;;  %4708 = vst [vmem:[#allocation35_spill] sm:$0xff] %v4164_v40  ;;  %v1484_v32 = vmul.f32 %v3938_v36, %v4117_v30  ;;  %v1454_v36 = vmul.f32 %v3940_v11, %v4125_v4 }
 0x694   :  { %4706 = vst [vmem:[#allocation37_spill] sm:$0xff] %v4152_v38  ;;  %v1494_v49 = vmul.f32 %v3856_v37, %v4133_v12  ;;  %v1406_v60 = vmul.f32 %v3843_v51, %v4133_v12  ;;  %v1584_v16 = vmul.f32 %v3950_v17, %v4133_v12  ;;  %v1760_v50 = vmul.f32 %v3992_v10, %v4133_v12  ;;  %v2723_v37 = vld [vmem:[%s4422_s5 + $0x2] ss:$0 sm:$0xff] }
 0x695   :  { %v1362_v43 = vpop.permute.xlu1 %1361  ;;  %v1542_v51 = vmul.f32 %v4019_v0, %v4125_v4  ;;  %v1850_v17 = vmul.f32 %v3952_v34, %v4133_v12  ;;  %v1632_v34 = vmul.f32 %v3994_v1, %v4125_v4 }
 0x696   :  { %v4175_v46 = vmul.f32 %v2723_v37, %v1362_v43  ;;  %v1496_v10 = vadd.f32 %v1494_v49, %v1484_v32  ;;  %v1750_v43 = vmul.f32 %v3922_v28, %v4117_v30  ;;  %v1408_v40 = vadd.f32 %v1406_v60, %v1396_v63 }
 0x697   :  { %v1586_v3 = vadd.f32 %v1584_v16, %v1574_v8  ;;  %v4199_v28 = vmul.f32 %v2720_v9, %v1348_v57  ;;  %v1852_v1 = vadd.f32 %v1850_v17, %v1840_v45  ;;  %v4214_v9 = vmul.f32 %v4013_v23, %v4117_v30 }
 0x698   :  { %v1506_v0 = vmul.f32 %v3874_v21, %v4175_v46  ;;  %v1418_v2 = vmul.f32 %v3946_v62, %v4175_v46  ;;  %v1596_v11 = vmul.f32 %v3896_v56, %v4175_v46  ;;  %v1762_v49 = vadd.f32 %v1760_v50, %v1750_v43  ;;  %v2724_v21 = vld [vmem:[%s4422_s5 + $0x4] ss:$0 sm:$0xff] }
 0x699   :  { %v1370_v38 = vpop.permute.xlu1 %1369  ;;  %v1772_v15 = vmul.f32 %v3948_v41, %v4175_v46  ;;  %v1862_v56 = vmul.f32 %v4064_v58, %v4175_v46  ;;  %v1808_v50 = vmul.f32 %v4075_v54, %v4125_v4  ;;  %v2725_v54 = vld [vmem:[%s4422_s5 + $0x6] ss:$0 sm:$0xff]  ;;  %v1395_v23 = vmul.f32 %v3930_v55, %v4199_v28 }
 0x69a   :  { %v4204_v60 = vmul.f32 %v2724_v21, %v1370_v38  ;;  %v1508_v62 = vadd.f32 %v1506_v0, %v1496_v10  ;;  %v1420_v32 = vadd.f32 %v1418_v2, %v1408_v40  ;;  %v1598_v8 = vadd.f32 %v1596_v11, %v1586_v3  ;;  %v1360_v38 = vpop.permute.xlu0 %1359 }
 0x69b   :  { %v1774_v16 = vadd.f32 %v1772_v15, %v1762_v49  ;;  %v1864_v17 = vadd.f32 %v1862_v56, %v1852_v1 }
 0x69c   :  { %v1520_v41 = vadd.f32 %v1518_v24, %v1508_v62  ;;  %v1530_v57 = vmul.f32 %v3980_v7, %v4204_v60  ;;  %v1432_v40 = vadd.f32 %v1430_v47, %v1420_v32  ;;  %v1442_v58 = vmul.f32 %v3913_v35, %v4204_v60 }
 0x69d   :  { %v1382_v63 = vpop.permute.xlu1 %1381  ;;  %v1610_v3 = vadd.f32 %v1608_v22, %v1598_v8  ;;  %v1620_v10 = vmul.f32 %v3944_v20, %v4204_v60  ;;  %v1786_v45 = vadd.f32 %v1784_v44, %v1774_v16  ;;  %v1796_v22 = vmul.f32 %v4073_v14, %v4204_v60 }
 0x69e   :  { %v4223_v24 = vmul.f32 %v2725_v54, %v1382_v63  ;;  %v1532_v7 = vadd.f32 %v1530_v57, %v1520_v41  ;;  %v1444_v47 = vadd.f32 %v1442_v58, %v1432_v40  ;;  %v4229_v35 = vmul.f32 %v2723_v37, %v1360_v38  ;;  %v4709_v58 = vld [vmem:[#allocation26_spill] sm:$0xff] }
 0x69f   :  { %v1622_v43 = vadd.f32 %v1620_v10, %v1610_v3  ;;  %v1798_v15 = vadd.f32 %v1796_v22, %v1786_v45  ;;  %v1940_v8 = vmul.f32 %v4024_v59, %v4133_v12  ;;  %v1952_v41 = vmul.f32 %v4080_v13, %v4175_v46  ;;  %v4710_v10 = vld [vmem:[#allocation15_spill] sm:$0xff] }
 0x6a0   :  { %v1544_v20 = vadd.f32 %v1542_v51, %v1532_v7  ;;  %v1554_v0 = vmul.f32 %v4059_v31, %v4223_v24  ;;  %v1466_v2 = vmul.f32 %v3986_v18, %v4223_v24  ;;  %v1456_v44 = vadd.f32 %v1454_v36, %v1444_v47  ;;  %v4711_v7 = vld [vmem:[#allocation39_spill] sm:$0xff] }
 0x6a1   :  { %v1354_v11 = vpop.permute.xlu1 %1353  ;;  %v1634_v49 = vadd.f32 %v1632_v34, %v1622_v43  ;;  %v1644_v55 = vmul.f32 %v4056_v39, %v4223_v24  ;;  %v1483_v51 = vmul.f32 %v3816_v61, %v4199_v28  ;;  %v1929_v31 = vmul.f32 %v3972_v52, %v4199_v28  ;;  %v4714_v43 = vld [vmem:[#allocation5_spill] sm:$0xff] }
 0x6a2   :  { %v4238_v62 = vmul.f32 %v4130_v53, %v1354_v11  ;;  %v1907_v14 = vpop.permute.xlu0 %1906  ;;  %v1556_v37 = vadd.f32 %v1554_v0, %v1544_v20  ;;  %v1876_v18 = vadd.f32 %v4142_v6, %v1864_v17  ;;  %v1886_v36 = vmul.f32 %v4093_v48, %v4204_v60  ;;  %v4713_v17 = vld [vmem:[#allocation37_spill] sm:$0xff] }
 0x6a3   :  { %v1468_v34 = vadd.f32 %v1466_v2, %v1456_v44  ;;  %v1820_v39 = vmul.f32 %v4099_v25, %v4223_v24  ;;  %v1810_v53 = vadd.f32 %v1808_v50, %v1798_v15  ;;  %v1646_v48 = vadd.f32 %v1644_v55, %v1634_v49  ;;  %v4716_v2 = vld [vmem:[#allocation33_spill] sm:$0xff]  ;;  %v4717_v55 = vld [vmem:[#allocation43_spill] sm:$0xff] }
 0x6a4   :  { %1559 = vrot.lane.b32.xlu1 %v1556_v37, %s2793_s11  ;;  %v1405_v32 = vmul.f32 %v3804_v19, %v4238_v62  ;;  %v1493_v61 = vmul.f32 %v3934_v26, %v4238_v62  ;;  %v1939_v52 = vmul.f32 %v4052_v33, %v4238_v62  ;;  %v1417_v56 = vmul.f32 %v3860_v27, %v4229_v35  ;;  %v4718_v37 = vld [vmem:[#allocation3_spill] sm:$0xff] }
 0x6a5   :  { %1471 = vrot.lane.b32.xlu0 %v1468_v34, %s2791_s9  ;;  %v1368_v6 = vpop.permute.xlu1 %1367  ;;  %v1505_v25 = vmul.f32 %v3942_v29, %v4229_v35  ;;  %v1888_v33 = vadd.f32 %v1886_v36, %v1876_v18  ;;  %v1951_v57 = vmul.f32 %v4050_v5, %v4229_v35  ;;  %v1583_v27 = vmul.f32 %v3870_v42, %v4238_v62  ;;  %v4712_v42 = vld [vmem:[#allocation30_spill] sm:$0xff]  ;;  %v4719_v36 = vld [vmem:[#allocation4_spill] sm:$0xff] }
 0x6a6   :  { %v4263_v19 = vmul.f32 %v2724_v21, %v1368_v6  ;;  %v1380_v16 = vpop.permute.xlu0 %1379  ;;  %v1407_v26 = vadd.f32 %v1405_v32, %v1395_v23  ;;  %v1495_v50 = vadd.f32 %v1493_v61, %v1483_v51  ;;  %v1941_v1 = vadd.f32 %v1939_v52, %v1929_v31  ;;  %v4721_v32 = vld [vmem:[#allocation36_spill] sm:$0xff]  ;;  %v4722_v6 = vld [vmem:[#allocation23_spill] sm:$0xff] }
 0x6a7   :  { %v1910_v29 = vmul.f32 %v1907_v14, %v4223_v24  ;;  %v1822_v59 = vadd.f32 %v1820_v39, %v1810_v53  ;;  %v4273_v63 = vmul.f32 %v2725_v54, %v1380_v16  ;;  %v1573_v5 = vmul.f32 %v4710_v10, %v4199_v28  ;;  %v4715_v54 = vld [vmem:[#allocation35_spill] sm:$0xff] }
 0x6a8   :  { %1649 = vrot.lane.b32.xlu1 %v1646_v48, %s2790_s8  ;;  %v1419_v21 = vadd.f32 %v1417_v56, %v1407_v26  ;;  %v1507_v38 = vadd.f32 %v1505_v25, %v1495_v50  ;;  %v1441_v3 = vmul.f32 %v4709_v58, %v4263_v19  ;;  %v1953_v13 = vadd.f32 %v1951_v57, %v1941_v1  ;;  %v4723_v56 = vld [vmem:[#allocation21_spill] sm:$0xff]  ;;  %v4724_v25 = vld [vmem:[#allocation27_spill] sm:$0xff]  ;;  %v4725_v50 = vld [vmem:[#allocation6_spill] sm:$0xff] }
 0x6a9   :  { %v1374_v40 = vpop.permute.xlu1 %1373  ;;  %v1529_v22 = vmul.f32 %v4714_v43, %v4263_v19  ;;  %v1900_v20 = vadd.f32 %v4715_v54, %v1888_v33  ;;  %v1942_v0 = vadd.f32 %v1940_v8, %v4214_v9  ;;  %v1585_v44 = vadd.f32 %v1583_v27, %v1573_v5  ;;  %v4720_v9 = vld [vmem:[#allocation19_spill] sm:$0xff] }
 0x6aa   :  { %v4280_v45 = vmul.f32 %v4711_v7, %v1374_v40  ;;  %v1431_v23 = vadd.f32 %v4712_v42, %v1419_v21  ;;  %v1519_v47 = vadd.f32 %v4713_v17, %v1507_v38  ;;  %v1965_v11 = vadd.f32 %v4716_v2, %v1953_v13  ;;  %v4727_v27 = vld [vmem:[#allocation31_spill] sm:$0xff]  ;;  %v4730_v40 = vld [vmem:[#allocation2_spill] sm:$0xff]  ;;  %v4735_v2 = vld [vmem:[#allocation9_spill] sm:$0xff] }
 0x6ab   :  { %v1912_v31 = vadd.f32 %v1910_v29, %v1900_v20  ;;  %v1954_v18 = vadd.f32 %v1952_v41, %v1942_v0  ;;  %v1595_v34 = vmul.f32 %v4719_v36, %v4229_v35  ;;  %v1749_v39 = vmul.f32 %v4720_v9, %v4199_v28  ;;  %v4726_v41 = vld [vmem:[#allocation17_spill] sm:$0xff]  ;;  %v4728_v29 = vld [vmem:[#allocation18_spill] sm:$0xff]  ;;  %v4729_v21 = vld [vmem:[#allocation7_spill] sm:$0xff] }
 0x6ac   :  { %1825 = vrot.lane.b32.xlu1 %v1822_v59, %s2792_s10  ;;  %v1443_v49 = vadd.f32 %v1441_v3, %v1431_v23  ;;  %v1453_v15 = vmul.f32 %v4717_v55, %v4280_v45  ;;  %v1531_v14 = vadd.f32 %v1529_v22, %v1519_v47  ;;  %v1541_v51 = vmul.f32 %v4718_v37, %v4280_v45  ;;  %v4731_v3 = vld [vmem:[#allocation12_spill] sm:$0xff]  ;;  %v4732_v7 = vld [vmem:[#allocation22_spill] sm:$0xff]  ;;  %v4733_v22 = vld [vmem:[#allocation25_spill] sm:$0xff] }
 0x6ad   :  { %v1465_v61 = vmul.f32 %v4721_v32, %v4273_v63  ;;  %v1759_v48 = vmul.f32 %v4722_v6, %v4238_v62  ;;  %v1964_v8 = vmul.f32 %v4724_v25, %v4723_v56  ;;  %v1597_v16 = vadd.f32 %v1595_v34, %v1585_v44  ;;  %v4734_v20 = vld [vmem:[#allocation8_spill] sm:$0xff] }
 0x6ae   :  { %v1455_v53 = vadd.f32 %v1453_v15, %v1443_v49  ;;  %v1543_v52 = vadd.f32 %v1541_v51, %v1531_v14  ;;  %v1553_v1 = vmul.f32 %v4725_v50, %v4273_v63  ;;  %v1771_v57 = vmul.f32 %v4726_v41, %v4229_v35  ;;  %v1997_v49 = vpop.permute.xlu0 %1996  ;;  %v4736_v14 = vld [vmem:[#allocation10_spill] sm:$0xff]  ;;  %v4737_v36 = vld [vmem:[#allocation20_spill] sm:$0xff] }
 0x6af   :  { %v1761_v33 = vadd.f32 %v1759_v48, %v1749_v39  ;;  %v1783_v59 = vmul.f32 %v4728_v29, %v4727_v27  ;;  %v1607_v38 = vmul.f32 %v4729_v21, %v4727_v27  ;;  %v1839_v58 = vmul.f32 %v4730_v40, %v4199_v28  ;;  %v2726_v39 = vld [vmem:[%s4423_s2 + $0x8] sm:$0xff]  ;;  %v4740_v50 = vld [vmem:[#allocation34_spill] sm:$0xff]  ;;  %v4743_v21 = vld [vmem:[#allocation32_spill] sm:$0xff] }
 0x6b0   :  { %1915 = vrot.lane.b32.xlu1 %v1912_v31, %s2795_s18  ;;  %v1467_v26 = vadd.f32 %v1465_v61, %v1455_v53  ;;  %v1849_v13 = vmul.f32 %v4731_v3, %v4238_v62  ;;  %v1555_v10 = vadd.f32 %v1553_v1, %v1543_v52  ;;  %v1966_v5 = vadd.f32 %v1964_v8, %v1954_v18  ;;  %v4738_v53 = vld [vmem:[#allocation13_spill] sm:$0xff]  ;;  %v4739_v52 = vld [vmem:[#allocation24_spill] sm:$0xff] }
 0x6b1   :  { %v1976_v42 = vmul.f32 %v4732_v7, %v4204_v60  ;;  %v1773_v23 = vadd.f32 %v1771_v57, %v1761_v33  ;;  %v1609_v17 = vadd.f32 %v1607_v38, %v1597_v16  ;;  %v1795_v54 = vmul.f32 %v4733_v22, %v4263_v19  ;;  %v2727_v22 = vld [vmem:[%s4423_s2] sm:$0xff] }
 0x6b2   :  { %1469 = vrot.lane.b32.xlu0 %v1467_v26, %s2791_s9  ;;  %v1851_v47 = vadd.f32 %v1849_v13, %v1839_v58  ;;  %v1619_v0 = vmul.f32 %v4734_v20, %v4263_v19  ;;  %v1861_v44 = vmul.f32 %v4735_v2, %v4229_v35  ;;  %v1975_v37 = vmul.f32 %v4736_v14, %v4263_v19  ;;  %v4746_v20 = vld [vmem:[#allocation14_spill] sm:$0xff] }
 0x6b3   :  { %v1785_v43 = vadd.f32 %v1783_v59, %v1773_v23  ;;  %v1978_v15 = vadd.f32 %v1976_v42, %v1966_v5  ;;  %v1631_v34 = vmul.f32 %v4737_v36, %v4280_v45  ;;  %v1987_v32 = vmul.f32 %v4738_v53, %v4280_v45  ;;  %v4745_v42 = vld [vmem:[#allocation28_spill] sm:$0xff] }
 0x6b4   :  { %1557 = vrot.lane.b32.xlu1 %v1555_v10, %s2793_s11  ;;  %v1621_v18 = vadd.f32 %v1619_v0, %v1609_v17  ;;  %v1863_v9 = vadd.f32 %v1861_v44, %v1851_v47  ;;  %v1977_v61 = vadd.f32 %v1975_v37, %v1965_v11  ;;  %v1873_v6 = vmul.f32 %v4739_v52, %v4727_v27  ;;  %v4742_v11 = vld [vmem:[#allocation16_spill] sm:$0xff]  ;;  %v4744_v10 = vld [vmem:[#allocation11_spill] sm:$0xff]  ;;  %v1661_v17 = vpop.permute.xlu0 %1660 }
 0x6b5   :  { %v1797_v51 = vadd.f32 %v1795_v54, %v1785_v43  ;;  %v2000_v48 = vmul.f32 %v1997_v49, %v4223_v24  ;;  %v1807_v1 = vmul.f32 %v4740_v50, %v4280_v45  ;;  %v4741_v29 = vmov 6  }
 0x6b6   :  { %v1985_v55 = vpop.permute.xlu1 %1984  ;;  %v1633_v26 = vadd.f32 %v1631_v34, %v1621_v18  ;;  %v1875_v33 = vadd.f32 %v1873_v6, %v1863_v9  ;;  %v1989_v41 = vadd.f32 %v1987_v32, %v1977_v61  ;;  %v1643_v59 = vmul.f32 %v4742_v11, %v4273_v63 }
 0x6b7   :  { %v1988_v31 = vmul.f32 %v1985_v55, %v4125_v4  ;;  %v1885_v38 = vmul.f32 %v4743_v21, %v4263_v19  ;;  %v1809_v3 = vadd.f32 %v1807_v1, %v1797_v51  ;;  %v1897_v5 = vmul.f32 %v4744_v10, %v4280_v45 }
 0x6b8   :  { %2016 = vperm.xlu1 %2682, %v2726_v39   ;;  %v1645_v58 = vadd.f32 %v1643_v59, %v1633_v26  ;;  %v1819_v23 = vmul.f32 %v4745_v42, %v4273_v63  ;;  %v1909_v0 = vmul.f32 %v4746_v20, %v4273_v63  ;;  %v1683_v14 = vpop.permute.xlu0 %1682  ;;  %v1664_v51 = vmul.f32 %v1661_v17, %v4117_v30 }
 0x6b9   :  { %v1990_v25 = vadd.f32 %v1988_v31, %v1978_v15  ;;  %v1887_v13 = vadd.f32 %v1885_v38, %v1875_v33  ;;  %v4747_v15 = vmov 16   ;;  %v1686_v18 = vmul.f32 %v1683_v14, %v4175_v46 }
 0x6ba   :  { %v1821_v47 = vadd.f32 %v1819_v23, %v1809_v3 }
 0x6bb   :  { %v2002_v8 = vadd.f32 %v2000_v48, %v1990_v25  ;;  %v1993_v16 = vpop.permute.xlu1 %1992  ;;  %v1899_v43 = vadd.f32 %v1897_v5, %v1887_v13 }
 0x6bc   :  { %v1999_v57 = vmul.f32 %v1993_v16, %v4273_v63  ;;  %2683 = vset.pattern.permute.xlu1 %v4741_v29  ;;  %v1703_v53 = vpop.permute.xlu0 %1702 }
 0x6bd   :  { %2005 = vrot.lane.b32.xlu0 %v2002_v8, %s2794_s0  ;;  %v1911_v49 = vadd.f32 %v1909_v0, %v1899_v43  ;;  %v1709_v52 = vmul.f32 %v1703_v53, %v4263_v19 }
 0x6be   :  { %v2001_v40 = vadd.f32 %v1999_v57, %v1989_v41 }
 0x6c0   :  { %v1657_v7 = vpop.permute.xlu1 %1656  ;;  %2003 = vrot.lane.b32.xlu1 %v2001_v40, %s2794_s0  ;;  %v1719_v48 = vpop.permute.xlu0 %1718 }
 0x6c1   :  { %1647 = vrot.lane.b32.xlu0 %v1645_v58, %s2790_s8  ;;  %v1663_v2 = vmul.f32 %v1657_v7, %v4199_v28  ;;  %v2728_v58 = vld [vmem:[%s4422_s5 + $0x9] ss:$0 sm:$0xff]  ;;  %v2730_v7 = vld [vmem:[%s4422_s5 + $0xa] ss:$0 sm:$0xff] }
 0x6c4   :  { %2022 = vperm.xlu1 %2683, %v2727_v22   ;;  %v2013_v11 = vpop.permute.xlu0 %2012 }
 0x6c5   :  { %v1667_v54 = vpop.permute.xlu1 %1666  ;;  %1823 = vrot.lane.b32.xlu0 %v1821_v47, %s2792_s10 }
 0x6c6   :  { %v1673_v44 = vmul.f32 %v1667_v54, %v4238_v62 }
 0x6c8   :  { %v1675_v55 = vadd.f32 %v1673_v44, %v1663_v2  ;;  %2685 = vset.pattern.permute.xlu1 %v4747_v15 }
 0x6c9   :  { %v1671_v37 = vpop.permute.xlu1 %1670  ;;  %1913 = vrot.lane.b32.xlu0 %v1911_v49, %s2795_s18 }
 0x6ca   :  { %v1674_v31 = vmul.f32 %v1671_v37, %v4133_v12 }
 0x6cc   :  { %v1676_v36 = vadd.f32 %v1674_v31, %v1664_v51 }
 0x6cd   :  { %2026 = vperm.xlu0 %2684, %v2726_v39  }
 0x6ce   :  { %v1679_v34 = vpop.permute.xlu1 %1678  ;;  %v1688_v28 = vadd.f32 %v1686_v18, %v1676_v36 }
 0x6cf   :  { %v1685_v62 = vmul.f32 %v1679_v34, %v4229_v35  ;;  %v1722_v35 = vmul.f32 %v1719_v48, %v4125_v4  ;;  %v2733_v34 = vld [vmem:[%s4422_s5 + $0xd] ss:$0 sm:$0xff] }
 0x6d1   :  { %v1687_v9 = vadd.f32 %v1685_v62, %v1675_v55  ;;  %2686 = vset.pattern.permute.xlu0 %v4747_v15  ;;  %v2732_v55 = vld [vmem:[%s4422_s5 + $0xc] ss:$0 sm:$0xff] }
 0x6d3   :  { %v1691_v32 = vpop.permute.xlu1 %1690 }
 0x6d4   :  { %v1697_v61 = vmul.f32 %v1691_v32, %v4727_v27 }
 0x6d6   :  { %v1699_v30 = vadd.f32 %v1697_v61, %v1687_v9  ;;  %v2734_v9 = vld [vmem:[%s4422_s5 + $0xe] ss:$0 sm:$0xff] }
 0x6d7   :  { %v1695_v6 = vpop.permute.xlu1 %1694 }
 0x6d8   :  { %v1711_v12 = vadd.f32 %v1709_v52, %v1699_v30  ;;  %v1698_v46 = vmul.f32 %v1695_v6, %v4723_v56 }
 0x6da   :  { %v1700_v25 = vadd.f32 %v1698_v46, %v1688_v28 }
 0x6dc   :  { %v1707_v39 = vpop.permute.xlu1 %1706 }
 0x6dd   :  { %v1710_v8 = vmul.f32 %v1707_v39, %v4204_v60 }
 0x6df   :  { %v1712_v16 = vadd.f32 %v1710_v8, %v1700_v25 }
 0x6e1   :  { %v1715_v26 = vpop.permute.xlu1 %1714  ;;  %v1724_v50 = vadd.f32 %v1722_v35, %v1712_v16 }
 0x6e2   :  { %v1721_v1 = vmul.f32 %v1715_v26, %v4280_v45 }
 0x6e4   :  { %v1723_v27 = vadd.f32 %v1721_v1, %v1711_v12  ;;  %v2109_v1 = vld [vmem:[%s4425_s4 + $0x8] sm:$0x1] }
 0x6e6   :  { %v1727_v33 = vpop.permute.xlu1 %1726 }
 0x6e7   :  { %v1733_v19 = vmul.f32 %v1727_v33, %v4273_v63  ;;  %v2729_v63 = vld [vmem:[%s4422_s5 + $0x8] ss:$0 sm:$0xff] }
 0x6e9   :  { %v1735_v41 = vadd.f32 %v1733_v19, %v1723_v27 }
 0x6ea   :  { %v1731_v57 = vpop.permute.xlu1 %1730 }
 0x6eb   :  { %v1734_v3 = vmul.f32 %v1731_v57, %v4223_v24  ;;  %v2731_v24 = vld [vmem:[%s4422_s5 + $0xb] ss:$0 sm:$0xff] }
 0x6ec   :  { %v1737_v20 = vmul.f32 %v2731_v24, %v1735_v41 }
 0x6ed   :  { %v1736_v43 = vadd.f32 %v1734_v3, %v1724_v50  ;;  %v2108_v50 = vld [vmem:[%s4425_s4] sm:$0xff] }
 0x6ee   :  { %2429 = vmatprep.mubr.msk.f32.mxu0 %vm133_vm0, %v2108_v50  ;;  %2112 = vperm.xlu1 %2685, %v2108_v50  }
 0x6ef   :  { %v1738_v14 = vmul.f32 %v2731_v24, %v1736_v43 }
 0x6f2   :  { %2117 = vperm.xlu1 %2685, %v2109_v1  }
 0x716   :  { %v1560_v29 = vpop.permute.xlu1 %1559 }
 0x717   :  { %v1472_v21 = vpop.permute.xlu0 %1471  ;;  %v1562_v13 = vmul.f32 %v2728_v58, %v1560_v29 }
 0x718   :  { %v1474_v10 = vmul.f32 %v2729_v63, %v1472_v21 }
 0x71a   :  { %v1650_v56 = vpop.permute.xlu1 %1649  ;;  %v1564_v22 = vadd.f32 %v1562_v13, %v1474_v10 }
 0x71b   :  { %v1652_v42 = vmul.f32 %v2730_v7, %v1650_v56 }
 0x71d   :  { %v1654_v2 = vadd.f32 %v1652_v42, %v1564_v22 }
 0x71e   :  { %v1826_v59 = vpop.permute.xlu1 %1825 }
 0x71f   :  { %v1740_v37 = vadd.f32 %v1738_v14, %v1654_v2  ;;  %v1828_v51 = vmul.f32 %v2732_v55, %v1826_v59 }
 0x721   :  { %v1830_v61 = vadd.f32 %v1828_v51, %v1740_v37 }
 0x722   :  { %v1916_v38 = vpop.permute.xlu1 %1915 }
 0x723   :  { %v1918_v62 = vmul.f32 %v2733_v34, %v1916_v38 }
 0x724   :  { %v1470_v60 = vpop.permute.xlu0 %1469 }
 0x725   :  { %v1473_v5 = vmul.f32 %v2729_v63, %v1470_v60  ;;  %v1920_v6 = vadd.f32 %v1918_v62, %v1830_v61 }
 0x726   :  { %v1558_v40 = vpop.permute.xlu1 %1557 }
 0x727   :  { %v1561_v45 = vmul.f32 %v2728_v58, %v1558_v40 }
 0x729   :  { %v1563_v17 = vadd.f32 %v1561_v45, %v1473_v5 }
 0x72f   :  { %v2006_v4 = vpop.permute.xlu0 %2005 }
 0x730   :  { %v2008_v52 = vmul.f32 %v2734_v9, %v2006_v4 }
 0x732   :  { %v2010_v48 = vadd.f32 %v2008_v52, %v1920_v6 }
 0x733   :  { %v1648_v23 = vpop.permute.xlu0 %1647  ;;  %v2017_v54 = vpop.permute.xlu1 %2016 }
 0x734   :  { %v1651_v47 = vmul.f32 %v2730_v7, %v1648_v23  ;;  %v2020_v8 = vmul.f32 %v2017_v54, %v2010_v48 }
 0x736   :  { %v1653_v0 = vadd.f32 %v1651_v47, %v1563_v17 }
 0x737   :  { %v1824_v44 = vpop.permute.xlu0 %1823  ;;  %v2004_v31 = vpop.permute.xlu1 %2003 }
 0x738   :  { %v1739_v49 = vadd.f32 %v1737_v20, %v1653_v0  ;;  %v1827_v15 = vmul.f32 %v2732_v55, %v1824_v44  ;;  %v2007_v53 = vmul.f32 %v2734_v9, %v2004_v31 }
 0x73a   :  { %v1829_v36 = vadd.f32 %v1827_v15, %v1739_v49 }
 0x73b   :  { %v1914_v18 = vpop.permute.xlu0 %1913 }
 0x73c   :  { %v1917_v28 = vmul.f32 %v2733_v34, %v1914_v18 }
 0x73e   :  { %v1919_v32 = vadd.f32 %v1917_v28, %v1829_v36 }
 0x73f   :  { %v2023_v12 = vpop.permute.xlu1 %2022 }
 0x740   :  { %v2009_v30 = vadd.f32 %v2007_v53, %v1919_v32 }
 0x742   :  { %v2019_v46 = vmul.f32 %v2013_v11, %v2009_v30 }
 0x744   :  { %v2029_v39 = vadd.f32 %v2023_v12, %v2019_v46 }
 0x746   :  { %v2031_v25 = vmax.f32 %v2029_v39, 0.0 }
 0x748   :  { %2422 = vmatprep.mubr.f32.mxu1 %v2031_v25  ;;  %v2027_v35 = vpop.permute.xlu0 %2026 }
 0x749   :  { %v2030_v16 = vadd.f32 %v2027_v35, %v2020_v8 }
 0x74b   :  { %v2032_v26 = vmax.f32 %v2030_v16, 0.0 }
 0x74d   :  { %2423 = vmatmul.mubr.f32.vlgmr.msra.gmra.mxu1 %v2032_v26 }
 0x769   :  { %v2113_v19 = vpop.permute.xlu1 %2112 }
 0x76d   :  { %v2118_v41 = vpop.permute.xlu1 %2117 }
 0x80d   :  { %v2424_v27 = vpop.f32.mrf.mxu1 }
 0x80e   :  { %2425 = vmatprep.subr.mxu0 %v2424_v27 }
 0x80f   :  { %v2099_v33 = vpop.f32.mrf.mxu1  ;;  %2426 = vmatpush3.msra.mxu0 %v2424_v27 }
 0x810   :  { %2427 = vmatprep.subr.mxu0 %v2099_v33 }
 0x811   :  { %2428 = vmatpush3.msra.mxu0 %v2099_v33 }
 0x812   :  { %2430 = vmatmul.mubr.msk.f32.vlgmr.msra.gmra.mxu0 %vm133_vm0, %v2109_v1 }
 0x8d2   :  { %v2431_v57 = vpop.f32.mrf.mxu0 }
 0x8d3   :  { %v2196_v29 = vadd.f32 %v2431_v57, %v2118_v41 }
 0x8d4   :  { %v2190_v56 = vpop.f32.mrf.mxu0 }
 0x8d5   :  { %v2191_v11 = vadd.f32 %v2190_v56, %v2113_v19  ;;  %v2201_v59 = vsel %vm2200_vm3, %v2196_v29, -inf }
 0x8d7   :  { %v2199_v21 = vsel %vm228_vm2, %v2191_v11, -inf }
 0x8d8   :  { %v2202_v38 = vmax.f32 %v2199_v21, %v2201_v59 }
 0x8da   :  { %v2203_v60 = vrot.slane %v2202_v38, 4 }
 0x8dc   :  { %v2204_v40 = vmax.f32 %v2202_v38, %v2203_v60 }
 0x8de   :  { %v2205_v4 = vrot.slane %v2204_v40, 2 }
 0x8e0   :  { %v2206_v58 = vmax.f32 %v2204_v40, %v2205_v4 }
 0x8e2   :  { %v2207_v45 = vrot.slane %v2206_v58, 1 }
 0x8e4   :  { %v2208_v3 = vmax.f32 %v2206_v58, %v2207_v45 }
 0x8e6   :  { %v2209_v13 = vsub.f32 %v2191_v11, %v2208_v3  ;;  %v2210_v63 = vsub.f32 %v2196_v29, %v2208_v3 }
 0x8e8   :  { %v2211_v10 = vmul.f32 1.442695, %v2209_v13  ;;  %v2213_v5 = vmul.f32 1.442695, %v2210_v63 }
 0x8ea   :  { %2695 = vpow2.f32 %v2211_v10 }
 0x8eb   :  { %2697 = vpow2.f32 %v2213_v5 }
 0x8f7   :  { %v2696_v7 = vpop.eup %2695 }
 0x8f8   :  { %v2698_v42 = vpop.eup %2697  ;;  %v2215_v23 = vsel %vm228_vm2, %v2696_v7, 0.0 }
 0x8f9   :  { %v2216_v17 = vsel %vm2200_vm3, %v2698_v42, 0.0 }
 0x8fa   :  { %v2217_v47 = vadd.f32 %v2216_v17, %v2215_v23 }
 0x8fc   :  { %v2218_v43 = vrot.slane %v2217_v47, 4 }
 0x8fe   :  { %v2219_v22 = vadd.f32 %v2218_v43, %v2217_v47 }
 0x900   :  { %v2220_v54 = vrot.slane %v2219_v22, 2 }
 0x902   :  { %v2221_v24 = vadd.f32 %v2220_v54, %v2219_v22 }
 0x904   :  { %v2222_v20 = vrot.slane %v2221_v24, 1 }
 0x906   :  { %v2223_v0 = vadd.f32 %v2222_v20, %v2221_v24 }
 0x908   :  { %2699 = vlog2.f32 %v2223_v0 }
 0x915   :  { %v2700_v2 = vpop.eup %2699 }
 0x916   :  { %v2225_v44 = vmul.f32 0.6931472, %v2700_v2 }
 0x918   :  { %v2226_v49 = vsub.f32 %v2209_v13, %v2225_v44  ;;  %v2227_v55 = vsub.f32 %v2210_v63, %v2225_v44 }
 0x91a   :  { %2228 = vst.msk [vmem:[%s4426_s7] sm:$0xff] %vm228_vm2, %v2226_v49 }
 0x91b   :  { %2229 = vst.msk [vmem:[%s4426_s7 + $0x8] sm:$0x1] %vm2200_vm3, %v2227_v55 }

</bundles_post_ra>
